<compile_context>
chip_gen: v7x
topology: tpu7x:2x2x1
jax: 0.10.0
libtpu: 0.0.40
codegen_flags: <defaults>
</compile_context>

<pallas_src>
import jax
import jax.numpy as jnp
from jax.experimental import pallas as pl
from jax.experimental.pallas import tpu as pltpu

BN_EPS = 1e-5

# --- VMEM planning -----------------------------------------------------------
# Request 32 MiB scoped VMEM (raises v5e's 16 MiB default, equals v6e/v7x
# defaults, well under v7x's 64 MiB physical) and size the live blocks to a
# ~12 MiB budget so auto-pipelining always double-buffers.
_VMEM_LIMIT_BYTES = 32 * 1024 * 1024
_TILE_BUDGET_BYTES = 12 * 1024 * 1024
_ROW_CAP = 2048
_MIN_TILES = 4          # keep both megacore TCs busy with >= 2 steps each


def _divisors(n):
    ds, d = set(), 1
    while d * d <= n:
        if n % d == 0:
            ds.add(d)
            ds.add(n // d)
        d += 1
    return sorted(ds)


def _pick_rows(groups, row_unit, bytes_per_row, fixed_bytes=0):
    """Row tile = g*row_unit with g | groups, 8-aligned (or full extent),
    within the VMEM tile budget / row cap; prefer >= _MIN_TILES grid steps."""
    cands = [g for g in _divisors(groups)
             if (g * row_unit) % 8 == 0 or g == groups]

    def fits(g):
        tm = g * row_unit
        return (tm <= _ROW_CAP
                and fixed_bytes + tm * bytes_per_row <= _TILE_BUDGET_BYTES)

    feasible = [g for g in cands if fits(g)] or [min(cands)]
    g = max(feasible, key=lambda g: (groups // g >= _MIN_TILES, g * row_unit))
    return g * row_unit


def _compiler_params():
    return pltpu.CompilerParams(dimension_semantics=("parallel",),
                                vmem_limit_bytes=_VMEM_LIMIT_BYTES)


# ----------------------------- Pallas kernels --------------------------------

def _stats_tile(out_f32, mask):
    """Per-channel [sum, sum_sq] of this tile, from the f32 accumulator
    (before the bf16 downcast) so the next BatchNorm keeps full precision.
    Note: E[x^2]-E[x]^2 in f32; acceptable for ReLU6-bounded activations."""
    v = out_f32 if mask is None else jnp.where(mask, out_f32, 0.0)
    s1 = jnp.sum(v, axis=0, keepdims=True)
    s2 = jnp.sum(v * v, axis=0, keepdims=True)
    return jnp.concatenate([s1, s2], axis=0)[None]          # (1, 2, Cout)


def _make_conv1x1_kernel(has_res, emit_stats):
    """out = clip(a*scale + shift, 0, 6) @ w + b [+ res]  (BN+ReLU6 fused)."""
    def kernel(a_ref, scale_ref, shift_ref, w_ref, b_ref, *rest):
        rest = list(rest)
        res_ref = rest.pop(0) if has_res else None
        o_ref = rest.pop(0)
        st_ref = rest.pop(0) if emit_stats else None
        # Fused BN + ReLU6 on the A operand (f32 VPU work under the MXU).
        y = jnp.clip(a_ref[...] * scale_ref[...] + shift_ref[...], 0.0, 6.0)
        out = jnp.dot(y.astype(jnp.bfloat16), w_ref[...],
                      preferred_element_type=jnp.float32) + b_ref[...]
        if has_res:
            out = out + res_ref[...].astype(jnp.float32)
        o_ref[...] = out.astype(o_ref.dtype)                # bf16 writeback
        if emit_stats:
            st_ref[...] = _stats_tile(out, None)
    return kernel


def _make_conv3x3_kernel(apply_bn, emit_stats, tm, wpad, stride, wo):
    """3x3 conv on a dy-folded slab.

    A rows are indexed by (n, ho, wp), wp in [0, W+2); A channels are
    dy*Cin + ci (3 dy taps folded into K).  The 3 dx taps are realized by
    rolling each tap's matmul result down by dx rows:  out[r] += p_dx[r+dx].
    Rows with wp >= W (and odd wp when stride=2) are padding positions: they
    absorb the roll wrap-around, are masked out of the BN stats, and get
    sliced away by the wrapper.
    """
    def kernel(*refs):
        refs = list(refs)
        a_ref = refs.pop(0)
        inv_ref = refs.pop(0) if apply_bn else None
        w_ref = refs.pop(0)
        b_ref = refs.pop(0)
        o_ref = refs.pop(0)
        st_ref = refs.pop(0) if emit_stats else None

        a = a_ref[...]                                      # (tm, 3*Cin) bf16
        if apply_bn:
            # Slab holds (x - mean); halo rows are exactly 0 and stay 0 after
            # the scale+clip, preserving the conv's zero-padding semantics.
            act = jnp.clip(a * inv_ref[...], 0.0, 6.0).astype(jnp.bfloat16)
        else:
            act = a
        acc = jnp.dot(act, w_ref[0], preferred_element_type=jnp.float32)
        for dx in (1, 2):
            p = jnp.dot(act, w_ref[dx], preferred_element_type=jnp.float32)
            acc = acc + pltpu.roll(p, shift=tm - dx, axis=0)  # out[r] += p[r+dx]
        out = acc + b_ref[...]
        o_ref[...] = out.astype(o_ref.dtype)                # bf16 writeback
        if emit_stats:
            wp = jax.lax.broadcasted_iota(jnp.int32, (tm, 1), 0) % wpad
            mask = wp <= stride * (wo - 1)
            if stride > 1:
                mask = jnp.logical_and(mask, wp % stride == 0)
            st_ref[...] = _stats_tile(out, mask)
    return kernel


# ------------------------------ conv wrappers --------------------------------

def conv1x1_bn_relu6(x_nhwc, scale, shift, w, b, res_nhwc=None,
                     emit_stats=True):
    """1x1 conv with BN+ReLU6 fused on the input; returns (out, bn_stats)."""
    N, H, W, Cin = x_nhwc.shape
    Cout = w.shape[1]
    M = N * H * W

    bytes_per_row = (8 * Cin + 12 * Cout
                     + (4 * Cout if res_nhwc is not None else 0))
    tm = _pick_rows(M, 1, bytes_per_row, fixed_bytes=4 * Cin * Cout)
    nt = M // tm

    a = x_nhwc.reshape(M, Cin).astype(jnp.bfloat16)

    in_specs = [
        pl.BlockSpec((tm, Cin), lambda i: (i, 0)),
        pl.BlockSpec((1, Cin), lambda i: (0, 0)),
        pl.BlockSpec((1, Cin), lambda i: (0, 0)),
        pl.BlockSpec((Cin, Cout), lambda i: (0, 0)),
        pl.BlockSpec((1, Cout), lambda i: (0, 0)),
    ]
    args = [a, scale[None, :], shift[None, :], w, b[None, :]]
    if res_nhwc is not None:
        in_specs.append(pl.BlockSpec((tm, Cout), lambda i: (i, 0)))
        args.append(res_nhwc.reshape(M, Cout).astype(jnp.bfloat16))

    out_shape = [jax.ShapeDtypeStruct((M, Cout), jnp.bfloat16)]
    out_specs = [pl.BlockSpec((tm, Cout), lambda i: (i, 0))]
    if emit_stats:
        out_shape.append(jax.ShapeDtypeStruct((nt, 2, Cout), jnp.float32))
        out_specs.append(pl.BlockSpec((1, 2, Cout), lambda i: (i, 0, 0)))

    res = pl.pallas_call(
        _make_conv1x1_kernel(res_nhwc is not None, emit_stats),
        out_shape=tuple(out_shape) if emit_stats else out_shape[0],
        grid=(nt,),
        in_specs=in_specs,
        out_specs=tuple(out_specs) if emit_stats else out_specs[0],
        compiler_params=_compiler_params(),
    )(*args)

    if emit_stats:
        out, stats = res
        stats = jnp.sum(stats, axis=0)
    else:
        out, stats = res, None
    return out.reshape(N, H, W, Cout), stats


def conv3x3_maybe_bn_relu6(x_nhwc, mean, inv, w3, b, stride, emit_stats=True):
    """3x3 conv (padding=1).  If mean/inv are given, BN+ReLU6 is fused into
    the A path.  w3: (3, 3*Cin, Cout) bf16 -- dx-major taps, dy folded into K.
    """
    N, H, W, Cin = x_nhwc.shape
    Cout = w3.shape[2]
    apply_bn = mean is not None
    Ho = (H - 1) // stride + 1
    Wo = (W - 1) // stride + 1
    Wp = W + 2
    K = 3 * Cin

    xc = x_nhwc.astype(jnp.float32) - mean if apply_bn else x_nhwc
    xc = xc.astype(jnp.bfloat16)
    xp = jnp.pad(xc, ((0, 0), (1, 1), (1, 1), (0, 0)))       # (N, H+2, W+2, Cin)
    # 3 dy slabs (H already strided), concatenated along channels (dy-major),
    # keeping the W halo so the dx taps can be applied in-VMEM by row shifts.
    # TODO(synk): replace the 3-slab materialization with one manual halo DMA
    # of the padded NHWC activation (memory_space=pl.ANY + make_async_copy)
    # to cut A traffic from ~3x to ~1.1x.
    hs = stride * (Ho - 1) + 1
    slabs = [xp[:, dy:dy + hs:stride, :, :] for dy in range(3)]
    a = jnp.concatenate(slabs, axis=-1).reshape(N * Ho * Wp, K)

    NR = N * Ho
    bytes_per_row = 24 * Cin + 12 * Cout
    tm = _pick_rows(NR, Wp, bytes_per_row, fixed_bytes=36 * Cin * Cout)
    nt = (NR * Wp) // tm

    in_specs = [pl.BlockSpec((tm, K), lambda i: (i, 0))]
    args = [a]
    if apply_bn:
        in_specs.append(pl.BlockSpec((1, K), lambda i: (0, 0)))
        args.append(jnp.tile(inv, 3)[None, :])
    # Constant index_map -> all weight taps stay VMEM-resident (DMA'd once).
    in_specs += [pl.BlockSpec((3, K, Cout), lambda i: (0, 0, 0)),
                 pl.BlockSpec((1, Cout), lambda i: (0, 0))]
    args += [w3, b[None, :]]

    out_shape = [jax.ShapeDtypeStruct((NR * Wp, Cout), jnp.bfloat16)]
    out_specs = [pl.BlockSpec((tm, Cout), lambda i: (i, 0))]
    if emit_stats:
        out_shape.append(jax.ShapeDtypeStruct((nt, 2, Cout), jnp.float32))
        out_specs.append(pl.BlockSpec((1, 2, Cout), lambda i: (i, 0, 0)))

    res = pl.pallas_call(
        _make_conv3x3_kernel(apply_bn, emit_stats, tm, Wp, stride, Wo),
        out_shape=tuple(out_shape) if emit_stats else out_shape[0],
        grid=(nt,),
        in_specs=in_specs,
        out_specs=tuple(out_specs) if emit_stats else out_specs[0],
        compiler_params=_compiler_params(),
    )(*args)

    if emit_stats:
        out_slab, stats = res
        stats = jnp.sum(stats, axis=0)
    else:
        out_slab, stats = res, None
    out = out_slab.reshape(N, Ho, Wp, Cout)[:, :, 0:stride * (Wo - 1) + 1:stride, :]
    return out, stats


# ------------------------------ BN helpers -----------------------------------

def _bn_from_stats(stats, count):
    # Train-mode BatchNorm: batch mean, biased variance, gamma=1, beta=0.
    mean = stats[0] / count
    var = jnp.maximum(stats[1] / count - mean * mean, 0.0)
    return mean, jax.lax.rsqrt(var + BN_EPS)


def _bn_from_tensor(x_f32):
    mean = jnp.mean(x_f32, axis=(0, 1, 2))
    var = jnp.mean(jnp.square(x_f32 - mean), axis=(0, 1, 2))   # two-pass
    return mean, jax.lax.rsqrt(var + BN_EPS)


def _npix(nhwc):
    return nhwc.shape[0] * nhwc.shape[1] * nhwc.shape[2]


# ---------------------------- parameter setup --------------------------------

def _kaiming_uniform(key, cout, cin, kh, kw):
    fan_in = cin * kh * kw
    bound = (6.0 / fan_in) ** 0.5          # gain=sqrt(2) * sqrt(3/fan_in)
    return jax.random.uniform(key, (cout, cin, kh, kw), jnp.float32,
                              minval=-bound, maxval=bound)


def conv_params_1x1(key, cin, cout):
    w = _kaiming_uniform(key, cout, cin, 1, 1)
    return (w.reshape(cout, cin).T.astype(jnp.bfloat16),
            jnp.zeros((cout,), jnp.float32))


def conv_params_3x3(key, cin, cout):
    w = _kaiming_uniform(key, cout, cin, 3, 3)     # (Cout, Cin, KY, KX)
    # dx-major taps; dy folded into K (dy-major, ci-minor) to match the slab.
    w3 = jnp.transpose(w, (3, 2, 1, 0)).reshape(3, 3 * cin, cout)
    return w3.astype(jnp.bfloat16), jnp.zeros((cout,), jnp.float32)


def init_downsample_params(key, cin, expansion):
    ch = cin // 4
    cout = cin * expansion
    k1, k2, k3, k4 = jax.random.split(key, 4)
    return {
        "kind": "down",
        "conv_shrink": conv_params_1x1(k1, cin, ch),
        "conv_3x3": conv_params_3x3(k2, ch, ch),
        "conv_expand": conv_params_1x1(k3, ch, cout),
        "conv_shortcut": conv_params_3x3(k4, cin, cout),
    }


def init_residual_params(key, cin):
    ch = cin // 4
    k1, k2, k3 = jax.random.split(key, 3)
    return {
        "kind": "res",
        "conv_shrink": conv_params_1x1(k1, cin, ch),
        "conv_3x3": conv_params_3x3(k2, ch, ch),
        "conv_expand": conv_params_1x1(k3, ch, cin),
    }


def init_block_params(key, in_channels, repeats, expansion=2):
    keys = jax.random.split(key, repeats)
    out_channels = in_channels * expansion
    params = [init_downsample_params(keys[0], in_channels, expansion)]
    for i in range(repeats - 1):
        params.append(init_residual_params(keys[i + 1], out_channels))
    return params


# ------------------------------ forward pass ---------------------------------

def downsample_bottleneck_fwd(p, x, mean, inv, want_out_stats):
    out, st = conv1x1_bn_relu6(x, inv, -mean * inv, *p["conv_shrink"])
    m, i = _bn_from_stats(st, _npix(out))
    out, st = conv3x3_maybe_bn_relu6(out, m, i, *p["conv_3x3"], stride=2)
    m, i = _bn_from_stats(st, _npix(out))
    # Shortcut conv consumes the raw block input; its stats are never used.
    shortcut, _ = conv3x3_maybe_bn_relu6(x, None, None, *p["conv_shortcut"],
                                         stride=2, emit_stats=False)
    out, st = conv1x1_bn_relu6(out, i, -m * i, *p["conv_expand"],
                               res_nhwc=shortcut, emit_stats=want_out_stats)
    if want_out_stats:
        m, i = _bn_from_stats(st, _npix(out))
    else:
        m = i = None
    return out, m, i


def residual_bottleneck_fwd(p, x, mean, inv, want_out_stats):
    out, st = conv1x1_bn_relu6(x, inv, -mean * inv, *p["conv_shrink"])
    m, i = _bn_from_stats(st, _npix(out))
    out, st = conv3x3_maybe_bn_relu6(out, m, i, *p["conv_3x3"], stride=1)
    m, i = _bn_from_stats(st, _npix(out))
    out, st = conv1x1_bn_relu6(out, i, -m * i, *p["conv_expand"],
                               res_nhwc=x, emit_stats=want_out_stats)
    if want_out_stats:
        m, i = _bn_from_stats(st, _npix(out))
    else:
        m = i = None
    return out, m, i


def block_forward(params, x_nchw):
    x = jnp.transpose(x_nchw, (0, 2, 3, 1)).astype(jnp.float32)  # NCHW -> NHWC
    mean, inv = _bn_from_tensor(x)          # stats for the first bn_shrink
    x = x.astype(jnp.bfloat16)
    n = len(params)
    for idx, p in enumerate(params):
        want = idx + 1 < n                  # last expand conv's stats unused
        if p["kind"] == "down":
            x, mean, inv = downsample_bottleneck_fwd(p, x, mean, inv, want)
        else:
            x, mean, inv = residual_bottleneck_fwd(p, x, mean, inv, want)
    return jnp.transpose(x.astype(jnp.float32), (0, 3, 1, 2))    # NHWC -> NCHW


# ---------------------------------- main --------------------------------------

if __name__ == "__main__":
    in_channels, repeats, expansion = 8, 2, 2
    N, H, W = 2, 16, 16

    key = jax.random.PRNGKey(0)
    kx, kp = jax.random.split(key)
    x_nchw = jax.random.normal(kx, (N, in_channels, H, W), jnp.float32)
    params = init_block_params(kp, in_channels, repeats, expansion)

    fwd = jax.jit(lambda x: block_forward(params, x))
    y = fwd(x_nchw)
    jax.block_until_ready(y)

    expected_shape = (N, in_channels * expansion, H // 2, W // 2)
    assert y.shape == expected_shape, (y.shape, expected_shape)
    assert bool(jnp.all(jnp.isfinite(y)))
    print("KERNEL_OK")
</pallas_src>

<mosaic_0001>
module attributes {stable_mosaic.version = 11 : i64} {
  func.func @kernel(%arg0: i32, %arg1: memref<72x24xbf16, #tpu.memory_space<vmem>>, %arg2: memref<3x24x16xbf16, #tpu.memory_space<vmem>>, %arg3: memref<1x16xf32, #tpu.memory_space<vmem>>, %arg4: memref<72x16xbf16, #tpu.memory_space<vmem>>) attributes {dimension_semantics = [#tpu.dimension_semantics<parallel>], iteration_bounds = array<i64: 4>, scalar_prefetch = 0 : i64, scratch_operands = 0 : i64, tpu.core_type = #tpu.core_type<tc>, window_params = [{transform_indices = @transform_0, window_bounds = array<i64: 72, 24>}, {pipeline_mode = #tpu.pipeline_mode<synchronous>, transform_indices = @transform_1, window_bounds = array<i64: 3, 24, 16>}, {pipeline_mode = #tpu.pipeline_mode<synchronous>, transform_indices = @transform_2, window_bounds = array<i64: 1, 16>}, {transform_indices = @transform_3, window_bounds = array<i64: 72, 16>}]} {
    %c0 = arith.constant 0 : index
    %c0_0 = arith.constant 0 : index
    %0 = vector.load %arg1[%c0, %c0_0] : memref<72x24xbf16, #tpu.memory_space<vmem>>, vector<72x24xbf16>
    %c0_1 = arith.constant 0 : index
    %c0_2 = arith.constant 0 : index
    %c0_3 = arith.constant 0 : index
    %1 = vector.load %arg2[%c0_1, %c0_2, %c0_3] : memref<3x24x16xbf16, #tpu.memory_space<vmem>>, vector<1x24x16xbf16>
    %2 = vector.shape_cast %1 : vector<1x24x16xbf16> to vector<24x16xbf16>
    %cst = arith.constant dense<0.000000e+00> : vector<72x16xf32>
    %3 = tpu.matmul %0, %2, %cst {dimension_numbers = #tpu.dot_dimension_numbers<[1], [0], [0], [1], [0, 0, 1, 1], [], []>} : vector<72x24xbf16>, vector<24x16xbf16>, vector<72x16xf32> -> vector<72x16xf32>
    %c1 = arith.constant 1 : index
    %c0_4 = arith.constant 0 : index
    %c0_5 = arith.constant 0 : index
    %4 = vector.load %arg2[%c1, %c0_4, %c0_5] : memref<3x24x16xbf16, #tpu.memory_space<vmem>>, vector<1x24x16xbf16>
    %5 = vector.shape_cast %4 : vector<1x24x16xbf16> to vector<24x16xbf16>
    %cst_6 = arith.constant dense<0.000000e+00> : vector<72x16xf32>
    %6 = tpu.matmul %0, %5, %cst_6 {dimension_numbers = #tpu.dot_dimension_numbers<[1], [0], [0], [1], [0, 0, 1, 1], [], []>} : vector<72x24xbf16>, vector<24x16xbf16>, vector<72x16xf32> -> vector<72x16xf32>
    %c71_i32 = arith.constant 71 : i32
    %7 = tpu.dynamic_rotate %6 by %c71_i32 dim 0 : vector<72x16xf32>, i32 -> vector<72x16xf32>
    %8 = arith.addf %3, %7 : vector<72x16xf32>
    %c2 = arith.constant 2 : index
    %c0_7 = arith.constant 0 : index
    %c0_8 = arith.constant 0 : index
    %9 = vector.load %arg2[%c2, %c0_7, %c0_8] : memref<3x24x16xbf16, #tpu.memory_space<vmem>>, vector<1x24x16xbf16>
    %10 = vector.shape_cast %9 : vector<1x24x16xbf16> to vector<24x16xbf16>
    %cst_9 = arith.constant dense<0.000000e+00> : vector<72x16xf32>
    %11 = tpu.matmul %0, %10, %cst_9 {dimension_numbers = #tpu.dot_dimension_numbers<[1], [0], [0], [1], [0, 0, 1, 1], [], []>} : vector<72x24xbf16>, vector<24x16xbf16>, vector<72x16xf32> -> vector<72x16xf32>
    %c70_i32 = arith.constant 70 : i32
    %12 = tpu.dynamic_rotate %11 by %c70_i32 dim 0 : vector<72x16xf32>, i32 -> vector<72x16xf32>
    %13 = arith.addf %8, %12 : vector<72x16xf32>
    %c0_10 = arith.constant 0 : index
    %c0_11 = arith.constant 0 : index
    %14 = vector.load %arg3[%c0_10, %c0_11] : memref<1x16xf32, #tpu.memory_space<vmem>>, vector<1x16xf32>
    %15 = vector.broadcast %14 : vector<1x16xf32> to vector<72x16xf32>
    %16 = arith.addf %13, %15 : vector<72x16xf32>
    %17 = arith.truncf %16 : vector<72x16xf32> to vector<72x16xbf16>
    %c0_12 = arith.constant 0 : index
    %c0_13 = arith.constant 0 : index
    %18 = vector.load %arg4[%c0_12, %c0_13] : memref<72x16xbf16, #tpu.memory_space<vmem>>, vector<72x16xbf16>
    tpu.vector_store %arg4[%c0_12, %c0_13], %17 {strides = array<i32>} : memref<72x16xbf16, #tpu.memory_space<vmem>>, vector<72x16xbf16>,
    return
  }
  func.func @transform_0(%arg0: i32) -> (i32, i32) {
    %c0_i32 = arith.constant 0 : i32
    %c0_i32_0 = arith.constant 0 : i32
    return %arg0, %c0_i32 : i32, i32
  }
  func.func @transform_1(%arg0: i32) -> (i32, i32, i32) {
    %c0_i32 = arith.constant 0 : i32
    %c0_i32_0 = arith.constant 0 : i32
    %c0_i32_1 = arith.constant 0 : i32
    %c0_i32_2 = arith.constant 0 : i32
    return %c0_i32, %c0_i32_0, %c0_i32_1 : i32, i32, i32
  }
  func.func @transform_2(%arg0: i32) -> (i32, i32) {
    %c0_i32 = arith.constant 0 : i32
    %c0_i32_0 = arith.constant 0 : i32
    %c0_i32_1 = arith.constant 0 : i32
    return %c0_i32, %c0_i32_0 : i32, i32
  }
  func.func @transform_3(%arg0: i32) -> (i32, i32) {
    %c0_i32 = arith.constant 0 : i32
    %c0_i32_0 = arith.constant 0 : i32
    return %arg0, %c0_i32 : i32, i32
  }
}

module attributes {stable_mosaic.version = 11 : i64} {
  func.func @kernel(%arg0: i32, %arg1: memref<128x8xbf16, #tpu.memory_space<vmem>>, %arg2: memref<1x8xf32, #tpu.memory_space<vmem>>, %arg3: memref<1x8xf32, #tpu.memory_space<vmem>>, %arg4: memref<8x2xbf16, #tpu.memory_space<vmem>>, %arg5: memref<1x2xf32, #tpu.memory_space<vmem>>, %arg6: memref<128x2xbf16, #tpu.memory_space<vmem>>, %arg7: memref<1x2x2xf32, #tpu.memory_space<vmem>>) attributes {dimension_semantics = [#tpu.dimension_semantics<parallel>], iteration_bounds = array<i64: 4>, scalar_prefetch = 0 : i64, scratch_operands = 0 : i64, tpu.core_type = #tpu.core_type<tc>, window_params = [{transform_indices = @transform_0, window_bounds = array<i64: 128, 8>}, {pipeline_mode = #tpu.pipeline_mode<synchronous>, transform_indices = @transform_1, window_bounds = array<i64: 1, 8>}, {pipeline_mode = #tpu.pipeline_mode<synchronous>, transform_indices = @transform_2, window_bounds = array<i64: 1, 8>}, {pipeline_mode = #tpu.pipeline_mode<synchronous>, transform_indices = @transform_3, window_bounds = array<i64: 8, 2>}, {pipeline_mode = #tpu.pipeline_mode<synchronous>, transform_indices = @transform_4, window_bounds = array<i64: 1, 2>}, {transform_indices = @transform_5, window_bounds = array<i64: 128, 2>}, {transform_indices = @transform_6, window_bounds = array<i64: 1, 2, 2>}]} {
    %c0 = arith.constant 0 : index
    %c0_0 = arith.constant 0 : index
    %0 = vector.load %arg1[%c0, %c0_0] : memref<128x8xbf16, #tpu.memory_space<vmem>>, vector<128x8xbf16>
    %c0_1 = arith.constant 0 : index
    %c0_2 = arith.constant 0 : index
    %1 = vector.load %arg2[%c0_1, %c0_2] : memref<1x8xf32, #tpu.memory_space<vmem>>, vector<1x8xf32>
    %2 = arith.extf %0 : vector<128x8xbf16> to vector<128x8xf32>
    %3 = vector.broadcast %1 : vector<1x8xf32> to vector<128x8xf32>
    %4 = arith.mulf %2, %3 : vector<128x8xf32>
    %c0_3 = arith.constant 0 : index
    %c0_4 = arith.constant 0 : index
    %5 = vector.load %arg3[%c0_3, %c0_4] : memref<1x8xf32, #tpu.memory_space<vmem>>, vector<1x8xf32>
    %6 = vector.broadcast %5 : vector<1x8xf32> to vector<128x8xf32>
    %7 = arith.addf %4, %6 : vector<128x8xf32>
    %cst = arith.constant 0.000000e+00 : f32
    %cst_5 = arith.constant 6.000000e+00 : f32
    %8 = vector.broadcast %cst : f32 to vector<128x8xf32>
    %9 = arith.maximumf %8, %7 : vector<128x8xf32>
    %10 = vector.broadcast %cst_5 : f32 to vector<128x8xf32>
    %11 = arith.minimumf %10, %9 : vector<128x8xf32>
    %12 = arith.truncf %11 : vector<128x8xf32> to vector<128x8xbf16>
    %c0_6 = arith.constant 0 : index
    %c0_7 = arith.constant 0 : index
    %13 = vector.load %arg4[%c0_6, %c0_7] : memref<8x2xbf16, #tpu.memory_space<vmem>>, vector<8x2xbf16>
    %cst_8 = arith.constant dense<0.000000e+00> : vector<128x2xf32>
    %14 = tpu.matmul %12, %13, %cst_8 {dimension_numbers = #tpu.dot_dimension_numbers<[1], [0], [0], [1], [0, 0, 1, 1], [], []>} : vector<128x8xbf16>, vector<8x2xbf16>, vector<128x2xf32> -> vector<128x2xf32>
    %c0_9 = arith.constant 0 : index
    %c0_10 = arith.constant 0 : index
    %15 = vector.load %arg5[%c0_9, %c0_10] : memref<1x2xf32, #tpu.memory_space<vmem>>, vector<1x2xf32>
    %16 = vector.broadcast %15 : vector<1x2xf32> to vector<128x2xf32>
    %17 = arith.addf %14, %16 : vector<128x2xf32>
    %18 = arith.truncf %17 : vector<128x2xf32> to vector<128x2xbf16>
    %c0_11 = arith.constant 0 : index
    %c0_12 = arith.constant 0 : index
    %19 = vector.load %arg6[%c0_11, %c0_12] : memref<128x2xbf16, #tpu.memory_space<vmem>>, vector<128x2xbf16>
    tpu.vector_store %arg6[%c0_11, %c0_12], %18 {strides = array<i32>} : memref<128x2xbf16, #tpu.memory_space<vmem>>, vector<128x2xbf16>,
    %cst_13 = arith.constant dense<0.000000e+00> : vector<2xf32>
    %20 = vector.multi_reduction <add>, %17, %cst_13 [0] : vector<128x2xf32> to vector<2xf32>
    %21 = vector.shape_cast %20 : vector<2xf32> to vector<1x2xf32>
    %22 = arith.mulf %17, %17 : vector<128x2xf32>
    %cst_14 = arith.constant dense<0.000000e+00> : vector<2xf32>
    %23 = vector.multi_reduction <add>, %22, %cst_14 [0] : vector<128x2xf32> to vector<2xf32>
    %24 = vector.shape_cast %23 : vector<2xf32> to vector<1x2xf32>
    %25 = tpu.concatenate %21, %24 in 0 : vector<1x2xf32>, vector<1x2xf32> -> vector<2x2xf32>
    %26 = vector.shape_cast %25 : vector<2x2xf32> to vector<1x2x2xf32>
    %c0_15 = arith.constant 0 : index
    %c0_16 = arith.constant 0 : index
    %c0_17 = arith.constant 0 : index
    %27 = vector.load %arg7[%c0_15, %c0_16, %c0_17] : memref<1x2x2xf32, #tpu.memory_space<vmem>>, vector<1x2x2xf32>
    tpu.vector_store %arg7[%c0_15, %c0_16, %c0_17], %26 {strides = array<i32>} : memref<1x2x2xf32, #tpu.memory_space<vmem>>, vector<1x2x2xf32>,
    return
  }
  func.func @transform_0(%arg0: i32) -> (i32, i32) {
    %c0_i32 = arith.constant 0 : i32
    %c0_i32_0 = arith.constant 0 : i32
    return %arg0, %c0_i32 : i32, i32
  }
  func.func @transform_1(%arg0: i32) -> (i32, i32) {
    %c0_i32 = arith.constant 0 : i32
    %c0_i32_0 = arith.constant 0 : i32
    %c0_i32_1 = arith.constant 0 : i32
    return %c0_i32, %c0_i32_0 : i32, i32
  }
  func.func @transform_2(%arg0: i32) -> (i32, i32) {
    %c0_i32 = arith.constant 0 : i32
    %c0_i32_0 = arith.constant 0 : i32
    %c0_i32_1 = arith.constant 0 : i32
    return %c0_i32, %c0_i32_0 : i32, i32
  }
  func.func @transform_3(%arg0: i32) -> (i32, i32) {
    %c0_i32 = arith.constant 0 : i32
    %c0_i32_0 = arith.constant 0 : i32
    %c0_i32_1 = arith.constant 0 : i32
    return %c0_i32, %c0_i32_0 : i32, i32
  }
  func.func @transform_4(%arg0: i32) -> (i32, i32) {
    %c0_i32 = arith.constant 0 : i32
    %c0_i32_0 = arith.constant 0 : i32
    %c0_i32_1 = arith.constant 0 : i32
    return %c0_i32, %c0_i32_0 : i32, i32
  }
  func.func @transform_5(%arg0: i32) -> (i32, i32) {
    %c0_i32 = arith.constant 0 : i32
    %c0_i32_0 = arith.constant 0 : i32
    return %arg0, %c0_i32 : i32, i32
  }
  func.func @transform_6(%arg0: i32) -> (i32, i32, i32) {
    %c0_i32 = arith.constant 0 : i32
    %c0_i32_0 = arith.constant 0 : i32
    %c0_i32_1 = arith.constant 0 : i32
    return %arg0, %c0_i32, %c0_i32_0 : i32, i32, i32
  }
}

module attributes {stable_mosaic.version = 11 : i64} {
  func.func @kernel(%arg0: i32, %arg1: memref<72x6xbf16, #tpu.memory_space<vmem>>, %arg2: memref<1x6xf32, #tpu.memory_space<vmem>>, %arg3: memref<3x6x2xbf16, #tpu.memory_space<vmem>>, %arg4: memref<1x2xf32, #tpu.memory_space<vmem>>, %arg5: memref<72x2xbf16, #tpu.memory_space<vmem>>, %arg6: memref<1x2x2xf32, #tpu.memory_space<vmem>>) attributes {dimension_semantics = [#tpu.dimension_semantics<parallel>], iteration_bounds = array<i64: 4>, scalar_prefetch = 0 : i64, scratch_operands = 0 : i64, tpu.core_type = #tpu.core_type<tc>, window_params = [{transform_indices = @transform_0, window_bounds = array<i64: 72, 6>}, {pipeline_mode = #tpu.pipeline_mode<synchronous>, transform_indices = @transform_1, window_bounds = array<i64: 1, 6>}, {pipeline_mode = #tpu.pipeline_mode<synchronous>, transform_indices = @transform_2, window_bounds = array<i64: 3, 6, 2>}, {pipeline_mode = #tpu.pipeline_mode<synchronous>, transform_indices = @transform_3, window_bounds = array<i64: 1, 2>}, {transform_indices = @transform_4, window_bounds = array<i64: 72, 2>}, {transform_indices = @transform_5, window_bounds = array<i64: 1, 2, 2>}]} {
    %c0 = arith.constant 0 : index
    %c0_0 = arith.constant 0 : index
    %0 = vector.load %arg1[%c0, %c0_0] : memref<72x6xbf16, #tpu.memory_space<vmem>>, vector<72x6xbf16>
    %c0_1 = arith.constant 0 : index
    %c0_2 = arith.constant 0 : index
    %1 = vector.load %arg2[%c0_1, %c0_2] : memref<1x6xf32, #tpu.memory_space<vmem>>, vector<1x6xf32>
    %2 = arith.extf %0 : vector<72x6xbf16> to vector<72x6xf32>
    %3 = vector.broadcast %1 : vector<1x6xf32> to vector<72x6xf32>
    %4 = arith.mulf %2, %3 : vector<72x6xf32>
    %cst = arith.constant 0.000000e+00 : f32
    %cst_3 = arith.constant 6.000000e+00 : f32
    %5 = vector.broadcast %cst : f32 to vector<72x6xf32>
    %6 = arith.maximumf %5, %4 : vector<72x6xf32>
    %7 = vector.broadcast %cst_3 : f32 to vector<72x6xf32>
    %8 = arith.minimumf %7, %6 : vector<72x6xf32>
    %9 = arith.truncf %8 : vector<72x6xf32> to vector<72x6xbf16>
    %c0_4 = arith.constant 0 : index
    %c0_5 = arith.constant 0 : index
    %c0_6 = arith.constant 0 : index
    %10 = vector.load %arg3[%c0_4, %c0_5, %c0_6] : memref<3x6x2xbf16, #tpu.memory_space<vmem>>, vector<1x6x2xbf16>
    %11 = vector.shape_cast %10 : vector<1x6x2xbf16> to vector<6x2xbf16>
    %cst_7 = arith.constant dense<0.000000e+00> : vector<72x2xf32>
    %12 = tpu.matmul %9, %11, %cst_7 {dimension_numbers = #tpu.dot_dimension_numbers<[1], [0], [0], [1], [0, 0, 1, 1], [], []>} : vector<72x6xbf16>, vector<6x2xbf16>, vector<72x2xf32> -> vector<72x2xf32>
    %c1 = arith.constant 1 : index
    %c0_8 = arith.constant 0 : index
    %c0_9 = arith.constant 0 : index
    %13 = vector.load %arg3[%c1, %c0_8, %c0_9] : memref<3x6x2xbf16, #tpu.memory_space<vmem>>, vector<1x6x2xbf16>
    %14 = vector.shape_cast %13 : vector<1x6x2xbf16> to vector<6x2xbf16>
    %cst_10 = arith.constant dense<0.000000e+00> : vector<72x2xf32>
    %15 = tpu.matmul %9, %14, %cst_10 {dimension_numbers = #tpu.dot_dimension_numbers<[1], [0], [0], [1], [0, 0, 1, 1], [], []>} : vector<72x6xbf16>, vector<6x2xbf16>, vector<72x2xf32> -> vector<72x2xf32>
    %c71_i32 = arith.constant 71 : i32
    %16 = tpu.dynamic_rotate %15 by %c71_i32 dim 0 : vector<72x2xf32>, i32 -> vector<72x2xf32>
    %17 = arith.addf %12, %16 : vector<72x2xf32>
    %c2 = arith.constant 2 : index
    %c0_11 = arith.constant 0 : index
    %c0_12 = arith.constant 0 : index
    %18 = vector.load %arg3[%c2, %c0_11, %c0_12] : memref<3x6x2xbf16, #tpu.memory_space<vmem>>, vector<1x6x2xbf16>
    %19 = vector.shape_cast %18 : vector<1x6x2xbf16> to vector<6x2xbf16>
    %cst_13 = arith.constant dense<0.000000e+00> : vector<72x2xf32>
    %20 = tpu.matmul %9, %19, %cst_13 {dimension_numbers = #tpu.dot_dimension_numbers<[1], [0], [0], [1], [0, 0, 1, 1], [], []>} : vector<72x6xbf16>, vector<6x2xbf16>, vector<72x2xf32> -> vector<72x2xf32>
    %c70_i32 = arith.constant 70 : i32
    %21 = tpu.dynamic_rotate %20 by %c70_i32 dim 0 : vector<72x2xf32>, i32 -> vector<72x2xf32>
    %22 = arith.addf %17, %21 : vector<72x2xf32>
    %c0_14 = arith.constant 0 : index
    %c0_15 = arith.constant 0 : index
    %23 = vector.load %arg4[%c0_14, %c0_15] : memref<1x2xf32, #tpu.memory_space<vmem>>, vector<1x2xf32>
    %24 = vector.broadcast %23 : vector<1x2xf32> to vector<72x2xf32>
    %25 = arith.addf %22, %24 : vector<72x2xf32>
    %26 = arith.truncf %25 : vector<72x2xf32> to vector<72x2xbf16>
    %c0_16 = arith.constant 0 : index
    %c0_17 = arith.constant 0 : index
    %27 = vector.load %arg5[%c0_16, %c0_17] : memref<72x2xbf16, #tpu.memory_space<vmem>>, vector<72x2xbf16>
    tpu.vector_store %arg5[%c0_16, %c0_17], %26 {strides = array<i32>} : memref<72x2xbf16, #tpu.memory_space<vmem>>, vector<72x2xbf16>,
    %28 = tpu.iota {dimensions = array<i32: 0>} : vector<72x1xi32>
    %c18_i32 = arith.constant 18 : i32
    %c0_i32 = arith.constant 0 : i32
    %29 = arith.cmpi eq, %c18_i32, %c0_i32 : i32
    %c1_i32 = arith.constant 1 : i32
    %30 = arith.select %29, %c1_i32, %c18_i32 : i32
    %31 = vector.broadcast %30 : i32 to vector<72x1xi32>
    %32 = arith.remsi %28, %31 : vector<72x1xi32>
    %c0_i32_18 = arith.constant 0 : i32
    %33 = vector.broadcast %c0_i32_18 : i32 to vector<72x1xi32>
    %34 = arith.cmpi ne, %32, %33 : vector<72x1xi32>
    %c0_i32_19 = arith.constant 0 : i32
    %35 = vector.broadcast %c0_i32_19 : i32 to vector<72x1xi32>
    %36 = arith.cmpi slt, %32, %35 : vector<72x1xi32>
    %c0_i32_20 = arith.constant 0 : i32
    %37 = arith.cmpi slt, %30, %c0_i32_20 : i32
    %38 = vector.broadcast %37 : i1 to vector<72x1xi1>
    %39 = vector.broadcast %38 : vector<72x1xi1> to vector<72x1xi1>
    %40 = arith.xori %36, %39 : vector<72x1xi1>
    %41 = arith.andi %40, %34 : vector<72x1xi1>
    %42 = vector.broadcast %30 : i32 to vector<72x1xi32>
    %43 = arith.addi %32, %42 : vector<72x1xi32>
    %44 = arith.select %41, %43, %32 : vector<72x1xi1>, vector<72x1xi32>
    %c14_i32 = arith.constant 14 : i32
    %45 = vector.broadcast %c14_i32 : i32 to vector<72x1xi32>
    %46 = arith.cmpi sle, %44, %45 : vector<72x1xi32>
    %c2_i32 = arith.constant 2 : i32
    %c0_i32_21 = arith.constant 0 : i32
    %47 = arith.cmpi eq, %c2_i32, %c0_i32_21 : i32
    %c1_i32_22 = arith.constant 1 : i32
    %48 = arith.select %47, %c1_i32_22, %c2_i32 : i32
    %49 = vector.broadcast %48 : i32 to vector<72x1xi32>
    %50 = arith.remsi %44, %49 : vector<72x1xi32>
    %c0_i32_23 = arith.constant 0 : i32
    %51 = vector.broadcast %c0_i32_23 : i32 to vector<72x1xi32>
    %52 = arith.cmpi ne, %50, %51 : vector<72x1xi32>
    %c0_i32_24 = arith.constant 0 : i32
    %53 = vector.broadcast %c0_i32_24 : i32 to vector<72x1xi32>
    %54 = arith.cmpi slt, %50, %53 : vector<72x1xi32>
    %c0_i32_25 = arith.constant 0 : i32
    %55 = arith.cmpi slt, %48, %c0_i32_25 : i32
    %56 = vector.broadcast %55 : i1 to vector<72x1xi1>
    %57 = vector.broadcast %56 : vector<72x1xi1> to vector<72x1xi1>
    %58 = arith.xori %54, %57 : vector<72x1xi1>
    %59 = arith.andi %58, %52 : vector<72x1xi1>
    %60 = vector.broadcast %48 : i32 to vector<72x1xi32>
    %61 = arith.addi %50, %60 : vector<72x1xi32>
    %62 = arith.select %59, %61, %50 : vector<72x1xi1>, vector<72x1xi32>
    %c0_i32_26 = arith.constant 0 : i32
    %63 = vector.broadcast %c0_i32_26 : i32 to vector<72x1xi32>
    %64 = arith.cmpi eq, %62, %63 : vector<72x1xi32>
    %65 = arith.andi %46, %64 : vector<72x1xi1>
    %cst_27 = arith.constant 0.000000e+00 : f32
    %66 = vector.shape_cast %65 : vector<72x1xi1> to vector<72x1xi1>
    %67 = vector.broadcast %66 : vector<72x1xi1> to vector<72x2xi1>
    %68 = vector.broadcast %cst_27 : f32 to vector<72x2xf32>
    %69 = arith.select %67, %25, %68 : vector<72x2xi1>, vector<72x2xf32>
    %cst_28 = arith.constant dense<0.000000e+00> : vector<2xf32>
    %70 = vector.multi_reduction <add>, %69, %cst_28 [0] : vector<72x2xf32> to vector<2xf32>
    %71 = vector.shape_cast %70 : vector<2xf32> to vector<1x2xf32>
    %72 = arith.mulf %69, %69 : vector<72x2xf32>
    %cst_29 = arith.constant dense<0.000000e+00> : vector<2xf32>
    %73 = vector.multi_reduction <add>, %72, %cst_29 [0] : vector<72x2xf32> to vector<2xf32>
    %74 = vector.shape_cast %73 : vector<2xf32> to vector<1x2xf32>
    %75 = tpu.concatenate %71, %74 in 0 : vector<1x2xf32>, vector<1x2xf32> -> vector<2x2xf32>
    %76 = vector.shape_cast %75 : vector<2x2xf32> to vector<1x2x2xf32>
    %c0_30 = arith.constant 0 : index
    %c0_31 = arith.constant 0 : index
    %c0_32 = arith.constant 0 : index
    %77 = vector.load %arg6[%c0_30, %c0_31, %c0_32] : memref<1x2x2xf32, #tpu.memory_space<vmem>>, vector<1x2x2xf32>
    tpu.vector_store %arg6[%c0_30, %c0_31, %c0_32], %76 {strides = array<i32>} : memref<1x2x2xf32, #tpu.memory_space<vmem>>, vector<1x2x2xf32>,
    return
  }
  func.func @transform_0(%arg0: i32) -> (i32, i32) {
    %c0_i32 = arith.constant 0 : i32
    %c0_i32_0 = arith.constant 0 : i32
    return %arg0, %c0_i32 : i32, i32
  }
  func.func @transform_1(%arg0: i32) -> (i32, i32) {
    %c0_i32 = arith.constant 0 : i32
    %c0_i32_0 = arith.constant 0 : i32
    %c0_i32_1 = arith.constant 0 : i32
    return %c0_i32, %c0_i32_0 : i32, i32
  }
  func.func @transform_2(%arg0: i32) -> (i32, i32, i32) {
    %c0_i32 = arith.constant 0 : i32
    %c0_i32_0 = arith.constant 0 : i32
    %c0_i32_1 = arith.constant 0 : i32
    %c0_i32_2 = arith.constant 0 : i32
    return %c0_i32, %c0_i32_0, %c0_i32_1 : i32, i32, i32
  }
  func.func @transform_3(%arg0: i32) -> (i32, i32) {
    %c0_i32 = arith.constant 0 : i32
    %c0_i32_0 = arith.constant 0 : i32
    %c0_i32_1 = arith.constant 0 : i32
    return %c0_i32, %c0_i32_0 : i32, i32
  }
  func.func @transform_4(%arg0: i32) -> (i32, i32) {
    %c0_i32 = arith.constant 0 : i32
    %c0_i32_0 = arith.constant 0 : i32
    return %arg0, %c0_i32 : i32, i32
  }
  func.func @transform_5(%arg0: i32) -> (i32, i32, i32) {
    %c0_i32 = arith.constant 0 : i32
    %c0_i32_0 = arith.constant 0 : i32
    %c0_i32_1 = arith.constant 0 : i32
    return %arg0, %c0_i32, %c0_i32_0 : i32, i32, i32
  }
}

module attributes {stable_mosaic.version = 11 : i64} {
  func.func @kernel(%arg0: i32, %arg1: memref<32x16xbf16, #tpu.memory_space<vmem>>, %arg2: memref<1x16xf32, #tpu.memory_space<vmem>>, %arg3: memref<1x16xf32, #tpu.memory_space<vmem>>, %arg4: memref<16x4xbf16, #tpu.memory_space<vmem>>, %arg5: memref<1x4xf32, #tpu.memory_space<vmem>>, %arg6: memref<32x4xbf16, #tpu.memory_space<vmem>>, %arg7: memref<1x2x4xf32, #tpu.memory_space<vmem>>) attributes {dimension_semantics = [#tpu.dimension_semantics<parallel>], iteration_bounds = array<i64: 4>, scalar_prefetch = 0 : i64, scratch_operands = 0 : i64, tpu.core_type = #tpu.core_type<tc>, window_params = [{transform_indices = @transform_0, window_bounds = array<i64: 32, 16>}, {pipeline_mode = #tpu.pipeline_mode<synchronous>, transform_indices = @transform_1, window_bounds = array<i64: 1, 16>}, {pipeline_mode = #tpu.pipeline_mode<synchronous>, transform_indices = @transform_2, window_bounds = array<i64: 1, 16>}, {pipeline_mode = #tpu.pipeline_mode<synchronous>, transform_indices = @transform_3, window_bounds = array<i64: 16, 4>}, {pipeline_mode = #tpu.pipeline_mode<synchronous>, transform_indices = @transform_4, window_bounds = array<i64: 1, 4>}, {transform_indices = @transform_5, window_bounds = array<i64: 32, 4>}, {transform_indices = @transform_6, window_bounds = array<i64: 1, 2, 4>}]} {
    %c0 = arith.constant 0 : index
    %c0_0 = arith.constant 0 : index
    %0 = vector.load %arg1[%c0, %c0_0] : memref<32x16xbf16, #tpu.memory_space<vmem>>, vector<32x16xbf16>
    %c0_1 = arith.constant 0 : index
    %c0_2 = arith.constant 0 : index
    %1 = vector.load %arg2[%c0_1, %c0_2] : memref<1x16xf32, #tpu.memory_space<vmem>>, vector<1x16xf32>
    %2 = arith.extf %0 : vector<32x16xbf16> to vector<32x16xf32>
    %3 = vector.broadcast %1 : vector<1x16xf32> to vector<32x16xf32>
    %4 = arith.mulf %2, %3 : vector<32x16xf32>
    %c0_3 = arith.constant 0 : index
    %c0_4 = arith.constant 0 : index
    %5 = vector.load %arg3[%c0_3, %c0_4] : memref<1x16xf32, #tpu.memory_space<vmem>>, vector<1x16xf32>
    %6 = vector.broadcast %5 : vector<1x16xf32> to vector<32x16xf32>
    %7 = arith.addf %4, %6 : vector<32x16xf32>
    %cst = arith.constant 0.000000e+00 : f32
    %cst_5 = arith.constant 6.000000e+00 : f32
    %8 = vector.broadcast %cst : f32 to vector<32x16xf32>
    %9 = arith.maximumf %8, %7 : vector<32x16xf32>
    %10 = vector.broadcast %cst_5 : f32 to vector<32x16xf32>
    %11 = arith.minimumf %10, %9 : vector<32x16xf32>
    %12 = arith.truncf %11 : vector<32x16xf32> to vector<32x16xbf16>
    %c0_6 = arith.constant 0 : index
    %c0_7 = arith.constant 0 : index
    %13 = vector.load %arg4[%c0_6, %c0_7] : memref<16x4xbf16, #tpu.memory_space<vmem>>, vector<16x4xbf16>
    %cst_8 = arith.constant dense<0.000000e+00> : vector<32x4xf32>
    %14 = tpu.matmul %12, %13, %cst_8 {dimension_numbers = #tpu.dot_dimension_numbers<[1], [0], [0], [1], [0, 0, 1, 1], [], []>} : vector<32x16xbf16>, vector<16x4xbf16>, vector<32x4xf32> -> vector<32x4xf32>
    %c0_9 = arith.constant 0 : index
    %c0_10 = arith.constant 0 : index
    %15 = vector.load %arg5[%c0_9, %c0_10] : memref<1x4xf32, #tpu.memory_space<vmem>>, vector<1x4xf32>
    %16 = vector.broadcast %15 : vector<1x4xf32> to vector<32x4xf32>
    %17 = arith.addf %14, %16 : vector<32x4xf32>
    %18 = arith.truncf %17 : vector<32x4xf32> to vector<32x4xbf16>
    %c0_11 = arith.constant 0 : index
    %c0_12 = arith.constant 0 : index
    %19 = vector.load %arg6[%c0_11, %c0_12] : memref<32x4xbf16, #tpu.memory_space<vmem>>, vector<32x4xbf16>
    tpu.vector_store %arg6[%c0_11, %c0_12], %18 {strides = array<i32>} : memref<32x4xbf16, #tpu.memory_space<vmem>>, vector<32x4xbf16>,
    %cst_13 = arith.constant dense<0.000000e+00> : vector<4xf32>
    %20 = vector.multi_reduction <add>, %17, %cst_13 [0] : vector<32x4xf32> to vector<4xf32>
    %21 = vector.shape_cast %20 : vector<4xf32> to vector<1x4xf32>
    %22 = arith.mulf %17, %17 : vector<32x4xf32>
    %cst_14 = arith.constant dense<0.000000e+00> : vector<4xf32>
    %23 = vector.multi_reduction <add>, %22, %cst_14 [0] : vector<32x4xf32> to vector<4xf32>
    %24 = vector.shape_cast %23 : vector<4xf32> to vector<1x4xf32>
    %25 = tpu.concatenate %21, %24 in 0 : vector<1x4xf32>, vector<1x4xf32> -> vector<2x4xf32>
    %26 = vector.shape_cast %25 : vector<2x4xf32> to vector<1x2x4xf32>
    %c0_15 = arith.constant 0 : index
    %c0_16 = arith.constant 0 : index
    %c0_17 = arith.constant 0 : index
    %27 = vector.load %arg7[%c0_15, %c0_16, %c0_17] : memref<1x2x4xf32, #tpu.memory_space<vmem>>, vector<1x2x4xf32>
    tpu.vector_store %arg7[%c0_15, %c0_16, %c0_17], %26 {strides = array<i32>} : memref<1x2x4xf32, #tpu.memory_space<vmem>>, vector<1x2x4xf32>,
    return
  }
  func.func @transform_0(%arg0: i32) -> (i32, i32) {
    %c0_i32 = arith.constant 0 : i32
    %c0_i32_0 = arith.constant 0 : i32
    return %arg0, %c0_i32 : i32, i32
  }
  func.func @transform_1(%arg0: i32) -> (i32, i32) {
    %c0_i32 = arith.constant 0 : i32
    %c0_i32_0 = arith.constant 0 : i32
    %c0_i32_1 = arith.constant 0 : i32
    return %c0_i32, %c0_i32_0 : i32, i32
  }
  func.func @transform_2(%arg0: i32) -> (i32, i32) {
    %c0_i32 = arith.constant 0 : i32
    %c0_i32_0 = arith.constant 0 : i32
    %c0_i32_1 = arith.constant 0 : i32
    return %c0_i32, %c0_i32_0 : i32, i32
  }
  func.func @transform_3(%arg0: i32) -> (i32, i32) {
    %c0_i32 = arith.constant 0 : i32
    %c0_i32_0 = arith.constant 0 : i32
    %c0_i32_1 = arith.constant 0 : i32
    return %c0_i32, %c0_i32_0 : i32, i32
  }
  func.func @transform_4(%arg0: i32) -> (i32, i32) {
    %c0_i32 = arith.constant 0 : i32
    %c0_i32_0 = arith.constant 0 : i32
    %c0_i32_1 = arith.constant 0 : i32
    return %c0_i32, %c0_i32_0 : i32, i32
  }
  func.func @transform_5(%arg0: i32) -> (i32, i32) {
    %c0_i32 = arith.constant 0 : i32
    %c0_i32_0 = arith.constant 0 : i32
    return %arg0, %c0_i32 : i32, i32
  }
  func.func @transform_6(%arg0: i32) -> (i32, i32, i32) {
    %c0_i32 = arith.constant 0 : i32
    %c0_i32_0 = arith.constant 0 : i32
    %c0_i32_1 = arith.constant 0 : i32
    return %arg0, %c0_i32, %c0_i32_0 : i32, i32, i32
  }
}

module attributes {stable_mosaic.version = 11 : i64} {
  func.func @kernel(%arg0: i32, %arg1: memref<32x2xbf16, #tpu.memory_space<vmem>>, %arg2: memref<1x2xf32, #tpu.memory_space<vmem>>, %arg3: memref<1x2xf32, #tpu.memory_space<vmem>>, %arg4: memref<2x16xbf16, #tpu.memory_space<vmem>>, %arg5: memref<1x16xf32, #tpu.memory_space<vmem>>, %arg6: memref<32x16xbf16, #tpu.memory_space<vmem>>, %arg7: memref<32x16xbf16, #tpu.memory_space<vmem>>, %arg8: memref<1x2x16xf32, #tpu.memory_space<vmem>>) attributes {dimension_semantics = [#tpu.dimension_semantics<parallel>], iteration_bounds = array<i64: 4>, scalar_prefetch = 0 : i64, scratch_operands = 0 : i64, tpu.core_type = #tpu.core_type<tc>, window_params = [{transform_indices = @transform_0, window_bounds = array<i64: 32, 2>}, {pipeline_mode = #tpu.pipeline_mode<synchronous>, transform_indices = @transform_1, window_bounds = array<i64: 1, 2>}, {pipeline_mode = #tpu.pipeline_mode<synchronous>, transform_indices = @transform_2, window_bounds = array<i64: 1, 2>}, {pipeline_mode = #tpu.pipeline_mode<synchronous>, transform_indices = @transform_3, window_bounds = array<i64: 2, 16>}, {pipeline_mode = #tpu.pipeline_mode<synchronous>, transform_indices = @transform_4, window_bounds = array<i64: 1, 16>}, {transform_indices = @transform_5, window_bounds = array<i64: 32, 16>}, {transform_indices = @transform_6, window_bounds = array<i64: 32, 16>}, {transform_indices = @transform_7, window_bounds = array<i64: 1, 2, 16>}]} {
    %c0 = arith.constant 0 : index
    %c0_0 = arith.constant 0 : index
    %0 = vector.load %arg1[%c0, %c0_0] : memref<32x2xbf16, #tpu.memory_space<vmem>>, vector<32x2xbf16>
    %c0_1 = arith.constant 0 : index
    %c0_2 = arith.constant 0 : index
    %1 = vector.load %arg2[%c0_1, %c0_2] : memref<1x2xf32, #tpu.memory_space<vmem>>, vector<1x2xf32>
    %2 = arith.extf %0 : vector<32x2xbf16> to vector<32x2xf32>
    %3 = vector.broadcast %1 : vector<1x2xf32> to vector<32x2xf32>
    %4 = arith.mulf %2, %3 : vector<32x2xf32>
    %c0_3 = arith.constant 0 : index
    %c0_4 = arith.constant 0 : index
    %5 = vector.load %arg3[%c0_3, %c0_4] : memref<1x2xf32, #tpu.memory_space<vmem>>, vector<1x2xf32>
    %6 = vector.broadcast %5 : vector<1x2xf32> to vector<32x2xf32>
    %7 = arith.addf %4, %6 : vector<32x2xf32>
    %cst = arith.constant 0.000000e+00 : f32
    %cst_5 = arith.constant 6.000000e+00 : f32
    %8 = vector.broadcast %cst : f32 to vector<32x2xf32>
    %9 = arith.maximumf %8, %7 : vector<32x2xf32>
    %10 = vector.broadcast %cst_5 : f32 to vector<32x2xf32>
    %11 = arith.minimumf %10, %9 : vector<32x2xf32>
    %12 = arith.truncf %11 : vector<32x2xf32> to vector<32x2xbf16>
    %c0_6 = arith.constant 0 : index
    %c0_7 = arith.constant 0 : index
    %13 = vector.load %arg4[%c0_6, %c0_7] : memref<2x16xbf16, #tpu.memory_space<vmem>>, vector<2x16xbf16>
    %cst_8 = arith.constant dense<0.000000e+00> : vector<32x16xf32>
    %14 = tpu.matmul %12, %13, %cst_8 {dimension_numbers = #tpu.dot_dimension_numbers<[1], [0], [0], [1], [0, 0, 1, 1], [], []>} : vector<32x2xbf16>, vector<2x16xbf16>, vector<32x16xf32> -> vector<32x16xf32>
    %c0_9 = arith.constant 0 : index
    %c0_10 = arith.constant 0 : index
    %15 = vector.load %arg5[%c0_9, %c0_10] : memref<1x16xf32, #tpu.memory_space<vmem>>, vector<1x16xf32>
    %16 = vector.broadcast %15 : vector<1x16xf32> to vector<32x16xf32>
    %17 = arith.addf %14, %16 : vector<32x16xf32>
    %c0_11 = arith.constant 0 : index
    %c0_12 = arith.constant 0 : index
    %18 = vector.load %arg6[%c0_11, %c0_12] : memref<32x16xbf16, #tpu.memory_space<vmem>>, vector<32x16xbf16>
    %19 = arith.extf %18 : vector<32x16xbf16> to vector<32x16xf32>
    %20 = arith.addf %17, %19 : vector<32x16xf32>
    %21 = arith.truncf %20 : vector<32x16xf32> to vector<32x16xbf16>
    %c0_13 = arith.constant 0 : index
    %c0_14 = arith.constant 0 : index
    %22 = vector.load %arg7[%c0_13, %c0_14] : memref<32x16xbf16, #tpu.memory_space<vmem>>, vector<32x16xbf16>
    tpu.vector_store %arg7[%c0_13, %c0_14], %21 {strides = array<i32>} : memref<32x16xbf16, #tpu.memory_space<vmem>>, vector<32x16xbf16>,
    %cst_15 = arith.constant dense<0.000000e+00> : vector<16xf32>
    %23 = vector.multi_reduction <add>, %20, %cst_15 [0] : vector<32x16xf32> to vector<16xf32>
    %24 = vector.shape_cast %23 : vector<16xf32> to vector<1x16xf32>
    %25 = arith.mulf %20, %20 : vector<32x16xf32>
    %cst_16 = arith.constant dense<0.000000e+00> : vector<16xf32>
    %26 = vector.multi_reduction <add>, %25, %cst_16 [0] : vector<32x16xf32> to vector<16xf32>
    %27 = vector.shape_cast %26 : vector<16xf32> to vector<1x16xf32>
    %28 = tpu.concatenate %24, %27 in 0 : vector<1x16xf32>, vector<1x16xf32> -> vector<2x16xf32>
    %29 = vector.shape_cast %28 : vector<2x16xf32> to vector<1x2x16xf32>
    %c0_17 = arith.constant 0 : index
    %c0_18 = arith.constant 0 : index
    %c0_19 = arith.constant 0 : index
    %30 = vector.load %arg8[%c0_17, %c0_18, %c0_19] : memref<1x2x16xf32, #tpu.memory_space<vmem>>, vector<1x2x16xf32>
    tpu.vector_store %arg8[%c0_17, %c0_18, %c0_19], %29 {strides = array<i32>} : memref<1x2x16xf32, #tpu.memory_space<vmem>>, vector<1x2x16xf32>,
    return
  }
  func.func @transform_0(%arg0: i32) -> (i32, i32) {
    %c0_i32 = arith.constant 0 : i32
    %c0_i32_0 = arith.constant 0 : i32
    return %arg0, %c0_i32 : i32, i32
  }
  func.func @transform_1(%arg0: i32) -> (i32, i32) {
    %c0_i32 = arith.constant 0 : i32
    %c0_i32_0 = arith.constant 0 : i32
    %c0_i32_1 = arith.constant 0 : i32
    return %c0_i32, %c0_i32_0 : i32, i32
  }
  func.func @transform_2(%arg0: i32) -> (i32, i32) {
    %c0_i32 = arith.constant 0 : i32
    %c0_i32_0 = arith.constant 0 : i32
    %c0_i32_1 = arith.constant 0 : i32
    return %c0_i32, %c0_i32_0 : i32, i32
  }
  func.func @transform_3(%arg0: i32) -> (i32, i32) {
    %c0_i32 = arith.constant 0 : i32
    %c0_i32_0 = arith.constant 0 : i32
    %c0_i32_1 = arith.constant 0 : i32
    return %c0_i32, %c0_i32_0 : i32, i32
  }
  func.func @transform_4(%arg0: i32) -> (i32, i32) {
    %c0_i32 = arith.constant 0 : i32
    %c0_i32_0 = arith.constant 0 : i32
    %c0_i32_1 = arith.constant 0 : i32
    return %c0_i32, %c0_i32_0 : i32, i32
  }
  func.func @transform_5(%arg0: i32) -> (i32, i32) {
    %c0_i32 = arith.constant 0 : i32
    %c0_i32_0 = arith.constant 0 : i32
    return %arg0, %c0_i32 : i32, i32
  }
  func.func @transform_6(%arg0: i32) -> (i32, i32) {
    %c0_i32 = arith.constant 0 : i32
    %c0_i32_0 = arith.constant 0 : i32
    return %arg0, %c0_i32 : i32, i32
  }
  func.func @transform_7(%arg0: i32) -> (i32, i32, i32) {
    %c0_i32 = arith.constant 0 : i32
    %c0_i32_0 = arith.constant 0 : i32
    %c0_i32_1 = arith.constant 0 : i32
    return %arg0, %c0_i32, %c0_i32_0 : i32, i32, i32
  }
}

module attributes {stable_mosaic.version = 11 : i64} {
  func.func @kernel(%arg0: i32, %arg1: memref<32x4xbf16, #tpu.memory_space<vmem>>, %arg2: memref<1x4xf32, #tpu.memory_space<vmem>>, %arg3: memref<1x4xf32, #tpu.memory_space<vmem>>, %arg4: memref<4x16xbf16, #tpu.memory_space<vmem>>, %arg5: memref<1x16xf32, #tpu.memory_space<vmem>>, %arg6: memref<32x16xbf16, #tpu.memory_space<vmem>>, %arg7: memref<32x16xbf16, #tpu.memory_space<vmem>>) attributes {dimension_semantics = [#tpu.dimension_semantics<parallel>], iteration_bounds = array<i64: 4>, scalar_prefetch = 0 : i64, scratch_operands = 0 : i64, tpu.core_type = #tpu.core_type<tc>, window_params = [{transform_indices = @transform_0, window_bounds = array<i64: 32, 4>}, {pipeline_mode = #tpu.pipeline_mode<synchronous>, transform_indices = @transform_1, window_bounds = array<i64: 1, 4>}, {pipeline_mode = #tpu.pipeline_mode<synchronous>, transform_indices = @transform_2, window_bounds = array<i64: 1, 4>}, {pipeline_mode = #tpu.pipeline_mode<synchronous>, transform_indices = @transform_3, window_bounds = array<i64: 4, 16>}, {pipeline_mode = #tpu.pipeline_mode<synchronous>, transform_indices = @transform_4, window_bounds = array<i64: 1, 16>}, {transform_indices = @transform_5, window_bounds = array<i64: 32, 16>}, {transform_indices = @transform_6, window_bounds = array<i64: 32, 16>}]} {
    %c0 = arith.constant 0 : index
    %c0_0 = arith.constant 0 : index
    %0 = vector.load %arg1[%c0, %c0_0] : memref<32x4xbf16, #tpu.memory_space<vmem>>, vector<32x4xbf16>
    %c0_1 = arith.constant 0 : index
    %c0_2 = arith.constant 0 : index
    %1 = vector.load %arg2[%c0_1, %c0_2] : memref<1x4xf32, #tpu.memory_space<vmem>>, vector<1x4xf32>
    %2 = arith.extf %0 : vector<32x4xbf16> to vector<32x4xf32>
    %3 = vector.broadcast %1 : vector<1x4xf32> to vector<32x4xf32>
    %4 = arith.mulf %2, %3 : vector<32x4xf32>
    %c0_3 = arith.constant 0 : index
    %c0_4 = arith.constant 0 : index
    %5 = vector.load %arg3[%c0_3, %c0_4] : memref<1x4xf32, #tpu.memory_space<vmem>>, vector<1x4xf32>
    %6 = vector.broadcast %5 : vector<1x4xf32> to vector<32x4xf32>
    %7 = arith.addf %4, %6 : vector<32x4xf32>
    %cst = arith.constant 0.000000e+00 : f32
    %cst_5 = arith.constant 6.000000e+00 : f32
    %8 = vector.broadcast %cst : f32 to vector<32x4xf32>
    %9 = arith.maximumf %8, %7 : vector<32x4xf32>
    %10 = vector.broadcast %cst_5 : f32 to vector<32x4xf32>
    %11 = arith.minimumf %10, %9 : vector<32x4xf32>
    %12 = arith.truncf %11 : vector<32x4xf32> to vector<32x4xbf16>
    %c0_6 = arith.constant 0 : index
    %c0_7 = arith.constant 0 : index
    %13 = vector.load %arg4[%c0_6, %c0_7] : memref<4x16xbf16, #tpu.memory_space<vmem>>, vector<4x16xbf16>
    %cst_8 = arith.constant dense<0.000000e+00> : vector<32x16xf32>
    %14 = tpu.matmul %12, %13, %cst_8 {dimension_numbers = #tpu.dot_dimension_numbers<[1], [0], [0], [1], [0, 0, 1, 1], [], []>} : vector<32x4xbf16>, vector<4x16xbf16>, vector<32x16xf32> -> vector<32x16xf32>
    %c0_9 = arith.constant 0 : index
    %c0_10 = arith.constant 0 : index
    %15 = vector.load %arg5[%c0_9, %c0_10] : memref<1x16xf32, #tpu.memory_space<vmem>>, vector<1x16xf32>
    %16 = vector.broadcast %15 : vector<1x16xf32> to vector<32x16xf32>
    %17 = arith.addf %14, %16 : vector<32x16xf32>
    %c0_11 = arith.constant 0 : index
    %c0_12 = arith.constant 0 : index
    %18 = vector.load %arg6[%c0_11, %c0_12] : memref<32x16xbf16, #tpu.memory_space<vmem>>, vector<32x16xbf16>
    %19 = arith.extf %18 : vector<32x16xbf16> to vector<32x16xf32>
    %20 = arith.addf %17, %19 : vector<32x16xf32>
    %21 = arith.truncf %20 : vector<32x16xf32> to vector<32x16xbf16>
    %c0_13 = arith.constant 0 : index
    %c0_14 = arith.constant 0 : index
    %22 = vector.load %arg7[%c0_13, %c0_14] : memref<32x16xbf16, #tpu.memory_space<vmem>>, vector<32x16xbf16>
    tpu.vector_store %arg7[%c0_13, %c0_14], %21 {strides = array<i32>} : memref<32x16xbf16, #tpu.memory_space<vmem>>, vector<32x16xbf16>,
    return
  }
  func.func @transform_0(%arg0: i32) -> (i32, i32) {
    %c0_i32 = arith.constant 0 : i32
    %c0_i32_0 = arith.constant 0 : i32
    return %arg0, %c0_i32 : i32, i32
  }
  func.func @transform_1(%arg0: i32) -> (i32, i32) {
    %c0_i32 = arith.constant 0 : i32
    %c0_i32_0 = arith.constant 0 : i32
    %c0_i32_1 = arith.constant 0 : i32
    return %c0_i32, %c0_i32_0 : i32, i32
  }
  func.func @transform_2(%arg0: i32) -> (i32, i32) {
    %c0_i32 = arith.constant 0 : i32
    %c0_i32_0 = arith.constant 0 : i32
    %c0_i32_1 = arith.constant 0 : i32
    return %c0_i32, %c0_i32_0 : i32, i32
  }
  func.func @transform_3(%arg0: i32) -> (i32, i32) {
    %c0_i32 = arith.constant 0 : i32
    %c0_i32_0 = arith.constant 0 : i32
    %c0_i32_1 = arith.constant 0 : i32
    return %c0_i32, %c0_i32_0 : i32, i32
  }
  func.func @transform_4(%arg0: i32) -> (i32, i32) {
    %c0_i32 = arith.constant 0 : i32
    %c0_i32_0 = arith.constant 0 : i32
    %c0_i32_1 = arith.constant 0 : i32
    return %c0_i32, %c0_i32_0 : i32, i32
  }
  func.func @transform_5(%arg0: i32) -> (i32, i32) {
    %c0_i32 = arith.constant 0 : i32
    %c0_i32_0 = arith.constant 0 : i32
    return %arg0, %c0_i32 : i32, i32
  }
  func.func @transform_6(%arg0: i32) -> (i32, i32) {
    %c0_i32 = arith.constant 0 : i32
    %c0_i32_0 = arith.constant 0 : i32
    return %arg0, %c0_i32 : i32, i32
  }
}

module attributes {stable_mosaic.version = 11 : i64} {
  func.func @kernel(%arg0: i32, %arg1: memref<40x12xbf16, #tpu.memory_space<vmem>>, %arg2: memref<1x12xf32, #tpu.memory_space<vmem>>, %arg3: memref<3x12x4xbf16, #tpu.memory_space<vmem>>, %arg4: memref<1x4xf32, #tpu.memory_space<vmem>>, %arg5: memref<40x4xbf16, #tpu.memory_space<vmem>>, %arg6: memref<1x2x4xf32, #tpu.memory_space<vmem>>) attributes {dimension_semantics = [#tpu.dimension_semantics<parallel>], iteration_bounds = array<i64: 4>, scalar_prefetch = 0 : i64, scratch_operands = 0 : i64, tpu.core_type = #tpu.core_type<tc>, window_params = [{transform_indices = @transform_0, window_bounds = array<i64: 40, 12>}, {pipeline_mode = #tpu.pipeline_mode<synchronous>, transform_indices = @transform_1, window_bounds = array<i64: 1, 12>}, {pipeline_mode = #tpu.pipeline_mode<synchronous>, transform_indices = @transform_2, window_bounds = array<i64: 3, 12, 4>}, {pipeline_mode = #tpu.pipeline_mode<synchronous>, transform_indices = @transform_3, window_bounds = array<i64: 1, 4>}, {transform_indices = @transform_4, window_bounds = array<i64: 40, 4>}, {transform_indices = @transform_5, window_bounds = array<i64: 1, 2, 4>}]} {
    %c0 = arith.constant 0 : index
    %c0_0 = arith.constant 0 : index
    %0 = vector.load %arg1[%c0, %c0_0] : memref<40x12xbf16, #tpu.memory_space<vmem>>, vector<40x12xbf16>
    %c0_1 = arith.constant 0 : index
    %c0_2 = arith.constant 0 : index
    %1 = vector.load %arg2[%c0_1, %c0_2] : memref<1x12xf32, #tpu.memory_space<vmem>>, vector<1x12xf32>
    %2 = arith.extf %0 : vector<40x12xbf16> to vector<40x12xf32>
    %3 = vector.broadcast %1 : vector<1x12xf32> to vector<40x12xf32>
    %4 = arith.mulf %2, %3 : vector<40x12xf32>
    %cst = arith.constant 0.000000e+00 : f32
    %cst_3 = arith.constant 6.000000e+00 : f32
    %5 = vector.broadcast %cst : f32 to vector<40x12xf32>
    %6 = arith.maximumf %5, %4 : vector<40x12xf32>
    %7 = vector.broadcast %cst_3 : f32 to vector<40x12xf32>
    %8 = arith.minimumf %7, %6 : vector<40x12xf32>
    %9 = arith.truncf %8 : vector<40x12xf32> to vector<40x12xbf16>
    %c0_4 = arith.constant 0 : index
    %c0_5 = arith.constant 0 : index
    %c0_6 = arith.constant 0 : index
    %10 = vector.load %arg3[%c0_4, %c0_5, %c0_6] : memref<3x12x4xbf16, #tpu.memory_space<vmem>>, vector<1x12x4xbf16>
    %11 = vector.shape_cast %10 : vector<1x12x4xbf16> to vector<12x4xbf16>
    %cst_7 = arith.constant dense<0.000000e+00> : vector<40x4xf32>
    %12 = tpu.matmul %9, %11, %cst_7 {dimension_numbers = #tpu.dot_dimension_numbers<[1], [0], [0], [1], [0, 0, 1, 1], [], []>} : vector<40x12xbf16>, vector<12x4xbf16>, vector<40x4xf32> -> vector<40x4xf32>
    %c1 = arith.constant 1 : index
    %c0_8 = arith.constant 0 : index
    %c0_9 = arith.constant 0 : index
    %13 = vector.load %arg3[%c1, %c0_8, %c0_9] : memref<3x12x4xbf16, #tpu.memory_space<vmem>>, vector<1x12x4xbf16>
    %14 = vector.shape_cast %13 : vector<1x12x4xbf16> to vector<12x4xbf16>
    %cst_10 = arith.constant dense<0.000000e+00> : vector<40x4xf32>
    %15 = tpu.matmul %9, %14, %cst_10 {dimension_numbers = #tpu.dot_dimension_numbers<[1], [0], [0], [1], [0, 0, 1, 1], [], []>} : vector<40x12xbf16>, vector<12x4xbf16>, vector<40x4xf32> -> vector<40x4xf32>
    %c39_i32 = arith.constant 39 : i32
    %16 = tpu.dynamic_rotate %15 by %c39_i32 dim 0 : vector<40x4xf32>, i32 -> vector<40x4xf32>
    %17 = arith.addf %12, %16 : vector<40x4xf32>
    %c2 = arith.constant 2 : index
    %c0_11 = arith.constant 0 : index
    %c0_12 = arith.constant 0 : index
    %18 = vector.load %arg3[%c2, %c0_11, %c0_12] : memref<3x12x4xbf16, #tpu.memory_space<vmem>>, vector<1x12x4xbf16>
    %19 = vector.shape_cast %18 : vector<1x12x4xbf16> to vector<12x4xbf16>
    %cst_13 = arith.constant dense<0.000000e+00> : vector<40x4xf32>
    %20 = tpu.matmul %9, %19, %cst_13 {dimension_numbers = #tpu.dot_dimension_numbers<[1], [0], [0], [1], [0, 0, 1, 1], [], []>} : vector<40x12xbf16>, vector<12x4xbf16>, vector<40x4xf32> -> vector<40x4xf32>
    %c38_i32 = arith.constant 38 : i32
    %21 = tpu.dynamic_rotate %20 by %c38_i32 dim 0 : vector<40x4xf32>, i32 -> vector<40x4xf32>
    %22 = arith.addf %17, %21 : vector<40x4xf32>
    %c0_14 = arith.constant 0 : index
    %c0_15 = arith.constant 0 : index
    %23 = vector.load %arg4[%c0_14, %c0_15] : memref<1x4xf32, #tpu.memory_space<vmem>>, vector<1x4xf32>
    %24 = vector.broadcast %23 : vector<1x4xf32> to vector<40x4xf32>
    %25 = arith.addf %22, %24 : vector<40x4xf32>
    %26 = arith.truncf %25 : vector<40x4xf32> to vector<40x4xbf16>
    %c0_16 = arith.constant 0 : index
    %c0_17 = arith.constant 0 : index
    %27 = vector.load %arg5[%c0_16, %c0_17] : memref<40x4xbf16, #tpu.memory_space<vmem>>, vector<40x4xbf16>
    tpu.vector_store %arg5[%c0_16, %c0_17], %26 {strides = array<i32>} : memref<40x4xbf16, #tpu.memory_space<vmem>>, vector<40x4xbf16>,
    %28 = tpu.iota {dimensions = array<i32: 0>} : vector<40x1xi32>
    %c10_i32 = arith.constant 10 : i32
    %c0_i32 = arith.constant 0 : i32
    %29 = arith.cmpi eq, %c10_i32, %c0_i32 : i32
    %c1_i32 = arith.constant 1 : i32
    %30 = arith.select %29, %c1_i32, %c10_i32 : i32
    %31 = vector.broadcast %30 : i32 to vector<40x1xi32>
    %32 = arith.remsi %28, %31 : vector<40x1xi32>
    %c0_i32_18 = arith.constant 0 : i32
    %33 = vector.broadcast %c0_i32_18 : i32 to vector<40x1xi32>
    %34 = arith.cmpi ne, %32, %33 : vector<40x1xi32>
    %c0_i32_19 = arith.constant 0 : i32
    %35 = vector.broadcast %c0_i32_19 : i32 to vector<40x1xi32>
    %36 = arith.cmpi slt, %32, %35 : vector<40x1xi32>
    %c0_i32_20 = arith.constant 0 : i32
    %37 = arith.cmpi slt, %30, %c0_i32_20 : i32
    %38 = vector.broadcast %37 : i1 to vector<40x1xi1>
    %39 = vector.broadcast %38 : vector<40x1xi1> to vector<40x1xi1>
    %40 = arith.xori %36, %39 : vector<40x1xi1>
    %41 = arith.andi %40, %34 : vector<40x1xi1>
    %42 = vector.broadcast %30 : i32 to vector<40x1xi32>
    %43 = arith.addi %32, %42 : vector<40x1xi32>
    %44 = arith.select %41, %43, %32 : vector<40x1xi1>, vector<40x1xi32>
    %c7_i32 = arith.constant 7 : i32
    %45 = vector.broadcast %c7_i32 : i32 to vector<40x1xi32>
    %46 = arith.cmpi sle, %44, %45 : vector<40x1xi32>
    %cst_21 = arith.constant 0.000000e+00 : f32
    %47 = vector.shape_cast %46 : vector<40x1xi1> to vector<40x1xi1>
    %48 = vector.broadcast %47 : vector<40x1xi1> to vector<40x4xi1>
    %49 = vector.broadcast %cst_21 : f32 to vector<40x4xf32>
    %50 = arith.select %48, %25, %49 : vector<40x4xi1>, vector<40x4xf32>
    %cst_22 = arith.constant dense<0.000000e+00> : vector<4xf32>
    %51 = vector.multi_reduction <add>, %50, %cst_22 [0] : vector<40x4xf32> to vector<4xf32>
    %52 = vector.shape_cast %51 : vector<4xf32> to vector<1x4xf32>
    %53 = arith.mulf %50, %50 : vector<40x4xf32>
    %cst_23 = arith.constant dense<0.000000e+00> : vector<4xf32>
    %54 = vector.multi_reduction <add>, %53, %cst_23 [0] : vector<40x4xf32> to vector<4xf32>
    %55 = vector.shape_cast %54 : vector<4xf32> to vector<1x4xf32>
    %56 = tpu.concatenate %52, %55 in 0 : vector<1x4xf32>, vector<1x4xf32> -> vector<2x4xf32>
    %57 = vector.shape_cast %56 : vector<2x4xf32> to vector<1x2x4xf32>
    %c0_24 = arith.constant 0 : index
    %c0_25 = arith.constant 0 : index
    %c0_26 = arith.constant 0 : index
    %58 = vector.load %arg6[%c0_24, %c0_25, %c0_26] : memref<1x2x4xf32, #tpu.memory_space<vmem>>, vector<1x2x4xf32>
    tpu.vector_store %arg6[%c0_24, %c0_25, %c0_26], %57 {strides = array<i32>} : memref<1x2x4xf32, #tpu.memory_space<vmem>>, vector<1x2x4xf32>,
    return
  }
  func.func @transform_0(%arg0: i32) -> (i32, i32) {
    %c0_i32 = arith.constant 0 : i32
    %c0_i32_0 = arith.constant 0 : i32
    return %arg0, %c0_i32 : i32, i32
  }
  func.func @transform_1(%arg0: i32) -> (i32, i32) {
    %c0_i32 = arith.constant 0 : i32
    %c0_i32_0 = arith.constant 0 : i32
    %c0_i32_1 = arith.constant 0 : i32
    return %c0_i32, %c0_i32_0 : i32, i32
  }
  func.func @transform_2(%arg0: i32) -> (i32, i32, i32) {
    %c0_i32 = arith.constant 0 : i32
    %c0_i32_0 = arith.constant 0 : i32
    %c0_i32_1 = arith.constant 0 : i32
    %c0_i32_2 = arith.constant 0 : i32
    return %c0_i32, %c0_i32_0, %c0_i32_1 : i32, i32, i32
  }
  func.func @transform_3(%arg0: i32) -> (i32, i32) {
    %c0_i32 = arith.constant 0 : i32
    %c0_i32_0 = arith.constant 0 : i32
    %c0_i32_1 = arith.constant 0 : i32
    return %c0_i32, %c0_i32_0 : i32, i32
  }
  func.func @transform_4(%arg0: i32) -> (i32, i32) {
    %c0_i32 = arith.constant 0 : i32
    %c0_i32_0 = arith.constant 0 : i32
    return %arg0, %c0_i32 : i32, i32
  }
  func.func @transform_5(%arg0: i32) -> (i32, i32, i32) {
    %c0_i32 = arith.constant 0 : i32
    %c0_i32_0 = arith.constant 0 : i32
    %c0_i32_1 = arith.constant 0 : i32
    return %arg0, %c0_i32, %c0_i32_0 : i32, i32, i32
  }
}

</mosaic_0001>

<bundles_post_ra>
// kernel: tile.13
= control target key start
LH: loop header
LB: loop body
LE: loop exit
PB: predicated region body
PF: predicated region fallthrough
CT: control target
= control target key end

     0   :  { %s22_s0 = inlined_call_operand.vmem [shape: f32[2], index: 0, kind: input, shape index: {}]   ;;  %s23_s1 = inlined_call_operand.vmem [shape: f32[3,2], index: 1, kind: output, shape index: {}]  }
   0x1   :  { %v4_v0 = vld [vmem:[%s22_s0] ss:$0 sm:$0xff] }
   0x2   :  { %5 = vst [vmem:[%s23_s1] sm:$0xf] %v4_v0 }

// kernel: tile.14
= control target key start
LH: loop header
LB: loop body
LE: loop exit
PB: predicated region body
PF: predicated region fallthrough
CT: control target
= control target key end

     0   :  { %vm7_vm0 = vcmask 15360   ;;  %s30_s8 = smov 2   ;;  %vm13_vm1 = vcmask 48160   ;;  %vm19_vm2 = vcmask 31760   ;;  %s47_s0 = inlined_call_operand.vmem [shape: f32[3,2], index: 0, kind: input, shape index: {}]   ;;  %s48_s1 = inlined_call_operand.vmem [shape: f32[1,6], index: 1, kind: output, shape index: {}]  }
   0x1   :  { %v4_v0 = vld [vmem:[%s47_s0] sm:$0xf]  ;;  %s29_s0 = smov 4  }
   0x2   :  { %5 = vst [vmem:[#allocation1] sm:$0xf] %v4_v0 }
   0x9   :  { %v10_v1 = vld [vmem:[#allocation1 + $0x2] sm:$0x1]   ;;  %v6_v2 = vld [vmem:[#allocation1] sm:$0x1]   ;;  %v16_v3 = vld [vmem:[#allocation1 + $0x1] sm:$0x1]  }
   0xa   :  { %11 = vrot.lane.b32.xlu0 %v10_v1, %s29_s0  ;;  %8 = vst.msk [vmem:[#allocation0] sm:$0x1] %vm7_vm0, %v6_v2  }
   0xe   :  { %17 = vrot.lane.b32.xlu0 %v16_v3, %s30_s8 }
  0x7c   :  { %v12_v4 = vpop.permute.xlu0 %11  }
  0x7d   :  { %14 = vst.msk [vmem:[#allocation0] sm:$0x1] %vm13_vm1, %v12_v4  }
  0x80   :  { %v18_v5 = vpop.permute.xlu0 %17  }
  0x81   :  { %20 = vst.msk [vmem:[#allocation0] sm:$0x1] %vm19_vm2, %v18_v5  }
  0x88   :  { %v24_v6 = vld [vmem:[#allocation0] sm:$0x1] }
  0x89   :  { %26 = vst [vmem:[%s48_s1] sm:$0x1] %v24_v6 }

// kernel: _lambda_.9
= control target key start
LH: loop header
LB: loop body
LE: loop exit
PB: predicated region body
PF: predicated region fallthrough
CT: control target
= control target key end

     0   :  { %s863_s12 = smov 0   ;;  %s1051_s0 = inlined_call_operand.vmem [shape: bf16[288,24], index: 0, kind: input, shape index: {}]   ;;  %s1052_s1 = inlined_call_operand.vmem [shape: bf16[3,24,16], index: 1, kind: input, shape index: {}]   ;;  %s1053_s2 = inlined_call_operand.vmem [shape: f32[1,16], index: 2, kind: input, shape index: {}]   ;;  %s1054_s3 = inlined_call_operand.vmem [shape: bf16[288,16], index: 3, kind: output, shape index: {}]  }
   0x1 LB: > { %s655_s13 = sadd.s32 4294967295, %s839_s12   ;;  %p659_p0 = scmp.ge.s32.totalorder %s839_s12, 1  ;;  %s839_s12 = sphi %s863_s12, %s13_s12  }
   0x2   : > { %p138_p1 = scmp.lt.s32.totalorder %s839_s12, 5 }
   0x4   : > { %p139_p2 = pnand %p659_p0, %p138_p1 }
   0x5   : > { %v822_v0 = vld [vmem:[%s1052_s1 + $0xc] sm:$0xff] (!%p139_p2)   ;;  %v841_v1 = vmov (!%p139_p2), 0.0   ;;  %v823_v2 = vld [vmem:[%s1052_s1 + $0x14] ss:$0 sps:$4 sm:$0xff] (!%p139_p2)   ;;  %vm239_vm0 = vcmask (!%p139_p2), 1043456   ;;  %s162_s18 = smul.u32 (!%p139_p2), 9, %s655_s13  ;;  %v324_v15 = vlaneseq (!%p139_p2) }
   0x6   : > { %142 = sbr.rel (%p139_p2) target bundleno = 295 (0x127), region = 32  ;;  %736 = vmatprep.subr.bf16.mxu0 (!%p139_p2), %v841_v1  ;;  %808 = vmatprep.subr.bf16.mxu1 (!%p139_p2), %v841_v1  ;;  %v241_v3 = vsel (!%p139_p2), %vm239_vm0, %v823_v2, 0  ;;  %vm842_vm1 = vmmov (!%p139_p2), 0   ;;  %vm223_vm2 = vcmask (!%p139_p2), 195584   ;;  %v826_v4 = vld [vmem:[%s1052_s1 + $0x18] sm:$0xff] (!%p139_p2)   ;;  %v829_v5 = vld [vmem:[%s1052_s1] sm:$0xff] (!%p139_p2)  }
   0x7   : > { %737 = vmatpush3.bf16.msra.mxu0 (!%p139_p2), %v822_v0  ;;  %810 = vmatpush3.bf16.msra.mxu1 (!%p139_p2), %v822_v0  ;;  %p163_p3 = scmp.lt.s32.totalorder (!%p139_p2), %s162_s18, 35  ;;  %v830_v6 = vld [vmem:[%s1052_s1 + $0x20] ss:$0 sps:$4 sm:$0xff] (!%p139_p2)   ;;  %v831_v9 = vld [vmem:[%s1052_s1 + $0x8] ss:$0 sps:$4 sm:$0xff] (!%p139_p2)   ;;  %v953_v16 = vshrl.u32 (!%p139_p2), %v324_v15, 7 }
   0x8   : > { %738 = vmatprep.subr.bf16.mxu0 (!%p139_p2), %v841_v1  ;;  %809 = vmatprep.subr.bf16.mxu1 (!%p139_p2), %v841_v1  ;;  %v434_v10 = vsel (!%p139_p2), %vm239_vm0, %v830_v6, 0  ;;  %v346_v12 = vsel (!%p139_p2), %vm239_vm0, %v831_v9, 0  ;;  %vm589_vm5 = vcmask (!%p139_p2), 125952  }
   0x9   : > { %740 = vmatprep.mubr.msk.bf16.mxu0 (!%p139_p2), %vm842_vm1, %v841_v1  ;;  %752 = vmatprep.mubr.msk.bf16.mxu1 (!%p139_p2), %vm842_vm1, %v841_v1  ;;  %vm326_vm3 = vcmp.lt.s32.totalorder (!%p139_p2), %v953_v16, 7  ;;  %vm517_vm4 = vcmp.lt.s32.totalorder (!%p139_p2), %v953_v16, 6 }
   0xb   : > { %739 = vmatpush3.bf16.msra.mxu0 (!%p139_p2), %v241_v3  ;;  %811 = vmatpush3.bf16.msra.mxu1 (!%p139_p2), %v241_v3 }
   0xc   : > { %784 = vmatprep.subr.bf16.mxu0 (!%p139_p2), %v841_v1  ;;  %760 = vmatprep.subr.bf16.mxu1 (!%p139_p2), %v841_v1 }
   0xd   : > { %s1056_s18 = smov (!%p163_p3, %s162_s18), 35 }
   0xe   : > { %s660_s19 = sshll.u32 %s1056_s18, 2 }
   0xf   : > { %s166_s22 = scalar_lea.vmem %s1051_s0, %s660_s19  ;;  %s999_s8 = scalar_lea.vmem %s1054_s3, %s660_s19 }
  0x10   : > { %v824_v7 = vld [vmem:[%s166_s22] sm:$0xff]   ;;  %v825_v8 = vld [vmem:[%s166_s22 + $0x18] sm:$0xff]   ;;  %v827_v11 = vld [vmem:[%s166_s22 + $0x8] sm:$0xff]  }
  0x11   : > { %741 = vmatmul.mubr.msk.bf16.vlgmr.msra.gmra.mrb[0].mxu0 %vm223_vm2, %v824_v7  ;;  %753 = vmatmul.mubr.msk.bf16.vlgmr.msra.gmra.mrb[0].mxu1 %vm223_vm2, %v825_v8  ;;  %v828_v13 = vld [vmem:[%s166_s22 + $0x20] ss:$0 sps:$4 sm:$0xff]   ;;  %v832_v14 = vld [vmem:[%s166_s22 + $0x10] sm:$0xff]  }
  0x12   : > { %785 = vmatpush3.bf16.msra.mxu0 %v826_v4  ;;  %744 = vmatprep.mubr.msk.bf16.mxu0 %vm842_vm1, %v841_v1 }
  0x13   : > { %756 = vmatprep.mubr.msk.bf16.mxu1 %vm842_vm1, %v841_v1  ;;  %761 = vmatpush3.bf16.msra.mxu1 %v829_v5 }
  0x14   : > { %786 = vmatprep.subr.bf16.mxu0 %v841_v1  ;;  %762 = vmatprep.subr.bf16.mxu1 %v841_v1 }
  0x16   : > { %787 = vmatpush3.bf16.msra.mxu0 %v434_v10  ;;  %v991_v10 = vld [vmem:[%s1053_s2] ss:$0 sm:$0xff] }
  0x17   : > { %763 = vmatpush3.bf16.msra.mxu1 %v346_v12 }
  0x19   : > { %745 = vmatmul.mubr.msk.bf16.gmra.mrb[4].mxu0 %vm223_vm2, %v827_v11  ;;  %757 = vmatmul.mubr.msk.bf16.gmra.mrb[4].mxu1 %vm223_vm2, %v828_v13 }
  0x1a   : > { %748 = vmatprep.mubr.msk.bf16.mxu0 %vm842_vm1, %v841_v1  ;;  %764 = vmatprep.mubr.msk.bf16.mxu1 %vm842_vm1, %v841_v1 }
  0x21   : > { %749 = vmatmul.mubr.msk.bf16.gmra.mrb[8].mxu0 %vm223_vm2, %v832_v14  ;;  %765 = vmatmul.mubr.msk.bf16.vlgmr.msra.gmra.mrb[8].mxu1 %vm223_vm2, %v824_v7 }
  0x22   : > { %788 = vmatprep.mubr.msk.bf16.mxu0 %vm842_vm1, %v841_v1  ;;  %768 = vmatprep.mubr.msk.bf16.mxu1 %vm842_vm1, %v841_v1 }
  0x29   : > { %789 = vmatmul.mubr.msk.bf16.vlgmr.msra.gmra.mrb[12].mxu0 %vm223_vm2, %v824_v7  ;;  %769 = vmatmul.mubr.msk.bf16.gmra.mrb[12].mxu1 %vm223_vm2, %v827_v11 }
  0x2a   : > { %792 = vmatprep.mubr.msk.bf16.mxu0 %vm842_vm1, %v841_v1  ;;  %772 = vmatprep.mubr.msk.bf16.mxu1 %vm842_vm1, %v841_v1 }
  0x31   : > { %793 = vmatmul.mubr.msk.bf16.gmra.mrb[16].mxu0 %vm223_vm2, %v827_v11  ;;  %773 = vmatmul.mubr.msk.bf16.gmra.mrb[16].mxu1 %vm223_vm2, %v832_v14 }
  0x32   : > { %796 = vmatprep.mubr.msk.bf16.mxu0 %vm842_vm1, %v841_v1  ;;  %776 = vmatprep.mubr.msk.bf16.mxu1 %vm842_vm1, %v841_v1 }
  0x39   : > { %797 = vmatmul.mubr.msk.bf16.gmra.mrb[20].mxu0 %vm223_vm2, %v832_v14  ;;  %777 = vmatmul.mubr.msk.bf16.gmra.mrb[20].mxu1 %vm223_vm2, %v825_v8 }
  0x3a   : > { %800 = vmatprep.mubr.msk.bf16.mxu0 %vm842_vm1, %v841_v1  ;;  %780 = vmatprep.mubr.msk.bf16.mxu1 %vm842_vm1, %v841_v1 }
  0x41   : > { %801 = vmatmul.mubr.msk.bf16.gmra.mrb[24].mxu0 %vm223_vm2, %v825_v8  ;;  %781 = vmatmul.mubr.msk.bf16.gmra.mrb[24].mxu1 %vm223_vm2, %v828_v13 }
  0x42   : > { %804 = vmatprep.mubr.msk.bf16.mxu0 %vm842_vm1, %v841_v1 }
  0x49   : > { %805 = vmatmul.mubr.msk.bf16.gmra.mrb[28].mxu0 %vm223_vm2, %v828_v13 }
  0xe4   : > { %v277_v17 = vpop.f32.mrb[0].mxu0  ;;  %v301_v19 = vpop.f32.mrb[0].mxu1 }
  0xe5   : > { %v742_v18 = vpop.f32.mrb[1].mxu0  ;;  %v321_v21 = vrot.slane %v301_v19, 1  ;;  %v754_v22 = vpop.f32.mrb[1].mxu1  ;;  %v315_v23 = vrot.slane %v277_v17, 1 }
  0xe6   : > { %v280_v20 = vpop.f32.mrb[2].mxu0  ;;  %v304_v26 = vpop.f32.mrb[2].mxu1 }
  0xe7   : > { %v316_v24 = vrot.slane %v280_v20, 1  ;;  %v743_v25 = vpop.f32.mrb[3].mxu0  ;;  %v322_v27 = vrot.slane %v304_v26, 1  ;;  %v755_v28 = vpop.f32.mrb[3].mxu1 }
  0xe9   : > { %v334_v29 = vsel %vm326_vm3, %v315_v23, %v316_v24  ;;  %v960_v30 = vsel %vm326_vm3, %v321_v21, %v322_v27 }
  0xec   : > { %v285_v31 = vpop.f32.mrb[4].mxu0  ;;  %v309_v33 = vpop.f32.mrb[4].mxu1 }
  0xed   : > { %v317_v32 = vrot.slane %v285_v31, 1  ;;  %v746_v34 = vpop.f32.mrb[5].mxu0  ;;  %v323_v35 = vrot.slane %v309_v33, 1  ;;  %v758_v37 = vpop.f32.mrb[5].mxu1 }
  0xee   : > { %v288_v36 = vpop.f32.mrb[6].mxu0  ;;  %v312_v40 = vpop.f32.mrb[6].mxu1 }
  0xef   : > { %v318_v38 = vrot.slane %v288_v36, 1  ;;  %v747_v39 = vpop.f32.mrb[7].mxu0  ;;  %v333_v41 = vsel %vm326_vm3, %v316_v24, %v317_v32  ;;  %v759_v42 = vpop.f32.mrb[7].mxu1  ;;  %v966_v43 = vsel %vm326_vm3, %v322_v27, %v323_v35  ;;  %v970_v44 = vsel %vm326_vm3, %v323_v35, %v315_v23 }
  0xf1   : > { %v332_v45 = vsel %vm326_vm3, %v317_v32, %v318_v38 }
  0xf4   : > { %v293_v46 = vpop.f32.mrb[8].mxu0  ;;  %v382_v48 = vpop.f32.mrb[8].mxu1 }
  0xf5   : > { %v319_v47 = vrot.slane %v293_v46, 1  ;;  %v750_v49 = vpop.f32.mrb[9].mxu0  ;;  %v383_v50 = vadd.f32 %v382_v48, %v334_v29  ;;  %v766_v51 = vpop.f32.mrb[9].mxu1 }
  0xf6   : > { %v296_v52 = vpop.f32.mrb[10].mxu0  ;;  %v385_v54 = vpop.f32.mrb[10].mxu1 }
  0xf7   : > { %v320_v53 = vrot.slane %v296_v52, 1  ;;  %v751_v55 = vpop.f32.mrb[11].mxu0  ;;  %v331_v56 = vsel %vm326_vm3, %v318_v38, %v319_v47  ;;  %v386_v57 = vadd.f32 %v385_v54, %v333_v41  ;;  %v767_v58 = vpop.f32.mrb[11].mxu1 }
  0xf9   : > { %v330_v59 = vsel %vm326_vm3, %v319_v47, %v320_v53  ;;  %v329_v60 = vsel %vm326_vm3, %v320_v53, %v321_v21 }
  0xfc   : > { %v980_v61 = vpop.f32.mrb[12].mxu0  ;;  %v390_v62 = vpop.f32.mrb[12].mxu1 }
  0xfd   : > { %v790_v63 = vpop.f32.mrb[13].mxu0  ;;  %v391_v0 = vadd.f32 %v390_v62, %v332_v45  ;;  %v770_v1 = vpop.f32.mrb[13].mxu1  ;;  %v508_v3 = vrot.slane %v980_v61, 2 }
  0xfe   : > { %v473_v2 = vpop.f32.mrb[14].mxu0  ;;  %v393_v4 = vpop.f32.mrb[14].mxu1 }
  0xff   : > { %v509_v5 = vrot.slane %v473_v2, 2  ;;  %v791_v6 = vpop.f32.mrb[15].mxu0  ;;  %v394_v7 = vadd.f32 %v393_v4, %v331_v56  ;;  %v771_v8 = vpop.f32.mrb[15].mxu1 }
 0x101   : > { %v525_v9 = vsel %vm517_vm4, %v508_v3, %v509_v5 }
 0x102   : > { %v527_v11 = vadd.f32 %v525_v9, %v383_v50 }
 0x104   : > { %v543_v12 = vadd.f32 %v991_v10, %v527_v11  ;;  %v478_v13 = vpop.f32.mrb[16].mxu0  ;;  %v398_v14 = vpop.f32.mrb[16].mxu1 }
 0x105   : > { %v510_v15 = vrot.slane %v478_v13, 2  ;;  %v794_v17 = vpop.f32.mrb[17].mxu0  ;;  %v399_v19 = vadd.f32 %v398_v14, %v330_v59  ;;  %v774_v20 = vpop.f32.mrb[17].mxu1 }
 0x106   : > { %v706_v18 = vpack.c.bf16 %v543_v12, %v543_v12  ;;  %v481_v21 = vpop.f32.mrb[18].mxu0  ;;  %v401_v23 = vpop.f32.mrb[18].mxu1 }
 0x107   : > { %v524_v22 = vsel %vm517_vm4, %v509_v5, %v510_v15  ;;  %v511_v24 = vrot.slane %v481_v21, 2  ;;  %v795_v25 = vpop.f32.mrb[19].mxu0  ;;  %v402_v27 = vadd.f32 %v401_v23, %v329_v60  ;;  %v775_v28 = vpop.f32.mrb[19].mxu1 }
 0x108   : > { %590 = vst.msk [vmem:[%s999_s8] sm:$0xf] %vm589_vm5, %v706_v18  ;;  %v528_v26 = vadd.f32 %v524_v22, %v386_v57 }
 0x109   : > { %v523_v29 = vsel %vm517_vm4, %v510_v15, %v511_v24 }
 0x10a   : > { %v544_v31 = vadd.f32 %v991_v10, %v528_v26  ;;  %v529_v32 = vadd.f32 %v523_v29, %v391_v0 }
 0x10c   : > { %v707_v33 = vpack.c.bf16 %v544_v31, %v544_v31  ;;  %v545_v34 = vadd.f32 %v991_v10, %v529_v32  ;;  %v486_v35 = vpop.f32.mrb[20].mxu0  ;;  %v406_v36 = vpop.f32.mrb[20].mxu1 }
 0x10d   : > { %v512_v37 = vrot.slane %v486_v35, 2  ;;  %v798_v38 = vpop.f32.mrb[21].mxu0  ;;  %v407_v40 = vadd.f32 %v406_v36, %v960_v30  ;;  %v778_v41 = vpop.f32.mrb[21].mxu1 }
 0x10e   : > { %591 = vst.msk [vmem:[%s999_s8 + $0x4] sm:$0xf] %vm589_vm5, %v707_v33  ;;  %v708_v39 = vpack.c.bf16 %v545_v34, %v545_v34  ;;  %v489_v42 = vpop.f32.mrb[22].mxu0  ;;  %v409_v46 = vpop.f32.mrb[22].mxu1 }
 0x10f   : > { %v522_v45 = vsel %vm517_vm4, %v511_v24, %v512_v37  ;;  %v513_v47 = vrot.slane %v489_v42, 2  ;;  %v799_v48 = vpop.f32.mrb[23].mxu0  ;;  %v410_v50 = vadd.f32 %v409_v46, %v966_v43  ;;  %v779_v51 = vpop.f32.mrb[23].mxu1 }
 0x110   : > { %592 = vst.msk [vmem:[%s999_s8 + $0x8] sm:$0xf] %vm589_vm5, %v708_v39  ;;  %v530_v49 = vadd.f32 %v522_v45, %v394_v7 }
 0x111   : > { %v521_v52 = vsel %vm517_vm4, %v512_v37, %v513_v47 }
 0x112   : > { %v546_v30 = vadd.f32 %v991_v10, %v530_v49  ;;  %v531_v53 = vadd.f32 %v521_v52, %v399_v19 }
 0x114   : > { %v709_v54 = vpack.c.bf16 %v546_v30, %v546_v30  ;;  %v547_v55 = vadd.f32 %v991_v10, %v531_v53  ;;  %v494_v56 = vpop.f32.mrb[24].mxu0  ;;  %v414_v57 = vpop.f32.mrb[24].mxu1 }
 0x115   : > { %v514_v58 = vrot.slane %v494_v56, 2  ;;  %v802_v59 = vpop.f32.mrb[25].mxu0  ;;  %v415_v43 = vadd.f32 %v414_v57, %v970_v44  ;;  %v782_v63 = vpop.f32.mrb[25].mxu1 }
 0x116   : > { %593 = vst.msk [vmem:[%s999_s8 + $0xc] sm:$0xf] %vm589_vm5, %v709_v54  ;;  %v710_v60 = vpack.c.bf16 %v547_v55, %v547_v55  ;;  %v497_v62 = vpop.f32.mrb[26].mxu0  ;;  %v417_v4 = vpop.f32.mrb[26].mxu1 }
 0x117   : > { %v520_v0 = vsel %vm517_vm4, %v513_v47, %v514_v58  ;;  %v515_v1 = vrot.slane %v497_v62, 2  ;;  %v803_v2 = vpop.f32.mrb[27].mxu0  ;;  %v783_v6 = vpop.f32.mrb[27].mxu1 }
 0x118   : > { %594 = vst.msk [vmem:[%s999_s8 + $0x10] sm:$0xf] %vm589_vm5, %v710_v60  ;;  %v532_v5 = vadd.f32 %v520_v0, %v402_v27 }
 0x119   : > { %v519_v7 = vsel %vm517_vm4, %v514_v58, %v515_v1 }
 0x11a   : > { %v548_v8 = vadd.f32 %v991_v10, %v532_v5  ;;  %v533_v44 = vadd.f32 %v519_v7, %v407_v40 }
 0x11c   : > { %v711_v9 = vpack.c.bf16 %v548_v8, %v548_v8  ;;  %v549_v11 = vadd.f32 %v991_v10, %v533_v44  ;;  %v502_v12 = vpop.f32.mrb[28].mxu0 }
 0x11d   : > { %v516_v13 = vrot.slane %v502_v12, 2  ;;  %v806_v14 = vpop.f32.mrb[29].mxu0 }
 0x11e   : > { %595 = vst.msk [vmem:[%s999_s8 + $0x14] sm:$0xf] %vm589_vm5, %v711_v9  ;;  %v712_v15 = vpack.c.bf16 %v549_v11, %v549_v11  ;;  %v505_v17 = vpop.f32.mrb[30].mxu0 }
 0x11f   : > { %v518_v18 = vsel %vm517_vm4, %v515_v1, %v516_v13  ;;  %v526_v19 = vsel %vm517_vm4, %v516_v13, %v508_v3  ;;  %v807_v20 = vpop.f32.mrb[31].mxu0 }
 0x120   : > { %596 = vst.msk [vmem:[%s999_s8 + $0x18] sm:$0xf] %vm589_vm5, %v712_v15  ;;  %v534_v21 = vadd.f32 %v518_v18, %v410_v50  ;;  %v535_v22 = vadd.f32 %v526_v19, %v415_v43 }
 0x122   : > { %v550_v23 = vadd.f32 %v991_v10, %v534_v21  ;;  %v551_v24 = vadd.f32 %v991_v10, %v535_v22 }
 0x124   : > { %v713_v25 = vpack.c.bf16 %v550_v23, %v550_v23  ;;  %v714_v26 = vpack.c.bf16 %v551_v24, %v551_v24 }
 0x126   : > { %597 = vst.msk [vmem:[%s999_s8 + $0x1c] sm:$0xf] %vm589_vm5, %v713_v25  ;;  %598 = vst.msk [vmem:[%s999_s8 + $0x20] sm:$0xf] %vm589_vm5, %v714_v26 }
 0x127 PF: > { %s13_s12 = sadd.s32 1, %s839_s12  }
 0x128   : > { %p10_p4 = scmp.ge.s32.totalorder %s13_s12, 6  }
 0x12a   :  { %12 = sbr.rel (!%p10_p4) target bundleno = 1 (0x1), region = 64 }

// kernel: _lambda_.7
= control target key start
LH: loop header
LB: loop body
LE: loop exit
PB: predicated region body
PF: predicated region fallthrough
CT: control target
= control target key end

     0   :  { %s958_s21 = smov 0   ;;  %s1140_s0 = inlined_call_operand.vmem [shape: bf16[512,8], index: 0, kind: input, shape index: {}]   ;;  %s1141_s1 = inlined_call_operand.vmem [shape: f32[1,8], index: 1, kind: input, shape index: {}]   ;;  %s1142_s2 = inlined_call_operand.vmem [shape: f32[1,8], index: 2, kind: input, shape index: {}]   ;;  %s1143_s3 = inlined_call_operand.vmem [shape: bf16[8,2], index: 3, kind: input, shape index: {}]   ;;  %s1144_s4 = inlined_call_operand.vmem [shape: f32[1,2], index: 4, kind: input, shape index: {}]   ;;  %s1145_s5 = inlined_call_operand.vmem [shape: bf16[512,2], index: 5, kind: output, shape index: {0}]   ;;  %s1146_s6 = inlined_call_operand.vmem [shape: f32[4,2,2], index: 6, kind: output, shape index: {1}]  }
   0x1 LB: > { %s964_s22 = sadd.s32 4294967295, %s921_s21   ;;  %p786_p0 = scmp.ge.s32.totalorder %s921_s21, 1  ;;  %s921_s21 = sphi %s958_s21, %s17_s21  }
   0x2   : > { %p216_p1 = scmp.lt.s32.totalorder %s921_s21, 5 }
   0x4   : > { %p217_p2 = pnand %p786_p0, %p216_p1 }
   0x5   : > { %v385_v0 = vld [vmem:[%s1143_s3] sm:$0xf] (!%p217_p2)  ;;  %vm418_vm0 = vcmask (!%p217_p2), 1043456   ;;  %s787_s25 = sshll.u32 (!%p217_p2), %s964_s22, 4  ;;  %vm393_vm1 = vcmask (!%p217_p2), 64512   ;;  %vm583_vm2 = vcmask (!%p217_p2), 11264  }
   0x6   : > { %220 = sbr.rel (%p217_p2) target bundleno = 295 (0x127), region = 40  ;;  %905 = vmatprep.subr.msk.bf16.mxu0 (!%p217_p2), %vm418_vm0, %v385_v0  ;;  %v420_v1 = vsel (!%p217_p2), %vm418_vm0, %v385_v0, 0  ;;  %p251_p3 = scmp.lt.s32.totalorder (!%p217_p2), %s787_s25, 63  ;;  %906 = vmatprep.subr.msk.bf16.mxu1 (!%p217_p2), %vm418_vm0, %v385_v0  ;;  %v985_v2 = vld [vmem:[%s1141_s1] ss:$0 sm:$0xff] (!%p217_p2)  ;;  %vm600_vm3 = vcmask (!%p217_p2), 15360  }
   0x7   : > { %886 = vmatpush3.bf16.msra.mxu0 (!%p217_p2), %v420_v1  ;;  %904 = vmatpush3.bf16.msra.mxu1 (!%p217_p2), %v420_v1  ;;  %v994_v11 = vld [vmem:[%s1142_s2] ss:$0 sm:$0xff] (!%p217_p2)  ;;  %p262_p4 = scmp.lt.s32.totalorder (!%p217_p2), %s964_s22, 3  ;;  %vm691_vm4 = vcmask (!%p217_p2), 1040384   ;;  %vm693_vm5 = vcmask (!%p217_p2), 9216  }
   0xd   : > { %s1148_s25 = smov (!%p251_p3, %s787_s25), 63  ;;  %s1150_s22 = smov (!%p262_p4, %s964_s22), 3 }
   0xe   : > { %s788_s26 = sshll.u32 %s1148_s25, 2  ;;  %s791_s15 = sshll.u32 %s1150_s22, 1 }
   0xf   : > { %s980_s29 = scalar_lea.vmem %s1140_s0, %s788_s26  ;;  %s1051_s14 = scalar_lea.vmem %s1145_s5, %s788_s26 }
  0x10   : > { %v838_v3 = vld [vmem:[%s980_s29] sm:$0xff]   ;;  %v869_v4 = vld [vmem:[%s980_s29 + $0x8] sm:$0xff]   ;;  %v870_v5 = vld [vmem:[%s980_s29 + $0x10] sm:$0xff]   ;;  %s265_s18 = scalar_lea.vmem %s1146_s6, %s791_s15 }
  0x11   : > { %v839_v6 = vunpack.c.l.bf16 %v838_v3  ;;  %v840_v7 = vunpack.c.h.bf16 %v838_v3  ;;  %v843_v8 = vunpack.c.l.bf16 %v869_v4  ;;  %v844_v9 = vunpack.c.h.bf16 %v869_v4  ;;  %v871_v10 = vld [vmem:[%s980_s29 + $0x18] sm:$0xff]   ;;  %v872_v40 = vld [vmem:[%s980_s29 + $0x20] sm:$0xff]   ;;  %v873_v45 = vld [vmem:[%s980_s29 + $0x28] sm:$0xff]  }
  0x12   : > { %v847_v12 = vunpack.c.l.bf16 %v870_v5  ;;  %v848_v13 = vunpack.c.h.bf16 %v870_v5  ;;  %v851_v14 = vunpack.c.l.bf16 %v871_v10  ;;  %v852_v15 = vunpack.c.h.bf16 %v871_v10  ;;  %v874_v50 = vld [vmem:[%s980_s29 + $0x30] sm:$0xff]   ;;  %v875_v55 = vld [vmem:[%s980_s29 + $0x38] sm:$0xff]  }
  0x13   : > { %v306_v16 = vmul.f32 %v839_v6, %v985_v2  ;;  %v307_v17 = vmul.f32 %v840_v7, %v985_v2  ;;  %v308_v18 = vmul.f32 %v843_v8, %v985_v2  ;;  %v309_v19 = vmul.f32 %v844_v9, %v985_v2 }
  0x14   : > { %v310_v20 = vmul.f32 %v847_v12, %v985_v2  ;;  %v311_v21 = vmul.f32 %v848_v13, %v985_v2  ;;  %v312_v22 = vmul.f32 %v851_v14, %v985_v2  ;;  %v313_v23 = vmul.f32 %v852_v15, %v985_v2 }
  0x15   : > { %v329_v24 = vadd.f32 %v994_v11, %v306_v16  ;;  %v330_v25 = vadd.f32 %v994_v11, %v307_v17  ;;  %v331_v26 = vadd.f32 %v994_v11, %v308_v18  ;;  %v332_v27 = vadd.f32 %v994_v11, %v309_v19 }
  0x16   : > { %v333_v28 = vadd.f32 %v994_v11, %v310_v20  ;;  %v334_v29 = vadd.f32 %v994_v11, %v311_v21  ;;  %v335_v30 = vadd.f32 %v994_v11, %v312_v22  ;;  %v336_v31 = vadd.f32 %v994_v11, %v313_v23 }
  0x17   : > { %v345_v32 = vmax.f32 %v329_v24, 0.0  ;;  %v346_v33 = vmax.f32 %v330_v25, 0.0  ;;  %v347_v34 = vmax.f32 %v331_v26, 0.0  ;;  %v348_v35 = vmax.f32 %v332_v27, 0.0 }
  0x18   : > { %v349_v36 = vmax.f32 %v333_v28, 0.0  ;;  %v350_v37 = vmax.f32 %v334_v29, 0.0  ;;  %v351_v38 = vmax.f32 %v335_v30, 0.0  ;;  %v352_v39 = vmax.f32 %v336_v31, 0.0 }
  0x19   : > { %v361_v41 = vmin.f32 %v345_v32, 6.0  ;;  %v362_v42 = vmin.f32 %v346_v33, 6.0  ;;  %v363_v43 = vmin.f32 %v347_v34, 6.0  ;;  %v364_v44 = vmin.f32 %v348_v35, 6.0 }
  0x1a   : > { %v365_v46 = vmin.f32 %v349_v36, 6.0  ;;  %v366_v47 = vmin.f32 %v350_v37, 6.0  ;;  %v367_v48 = vmin.f32 %v351_v38, 6.0  ;;  %v368_v49 = vmin.f32 %v352_v39, 6.0  ;;  %v1043_v36 = vld [vmem:[%s1144_s4] ss:$0 sm:$0xff] }
  0x1b   : > { %v377_v51 = vpack.c.bf16 %v362_v42, %v361_v41  ;;  %v378_v52 = vpack.c.bf16 %v364_v44, %v363_v43  ;;  %v855_v53 = vunpack.c.l.bf16 %v872_v40  ;;  %v856_v54 = vunpack.c.h.bf16 %v872_v40 }
  0x1c   : > { %v379_v56 = vpack.c.bf16 %v366_v47, %v365_v46  ;;  %v380_v57 = vpack.c.bf16 %v368_v49, %v367_v48  ;;  %v859_v58 = vunpack.c.l.bf16 %v873_v45  ;;  %v860_v59 = vunpack.c.h.bf16 %v873_v45 }
  0x1d   : > { %887 = vmatprep.mubr.msk.bf16.mxu0 %vm393_vm1, %v377_v51  ;;  %v314_v60 = vmul.f32 %v855_v53, %v985_v2  ;;  %v315_v61 = vmul.f32 %v856_v54, %v985_v2  ;;  %v863_v62 = vunpack.c.l.bf16 %v874_v50  ;;  %v864_v63 = vunpack.c.h.bf16 %v874_v50 }
  0x1e   : > { %888 = vmatmul.mubr.msk.bf16.vlgmr.msra.gmra.mrb[0].mxu0 %vm393_vm1, %v378_v52  ;;  %v316_v0 = vmul.f32 %v859_v58, %v985_v2  ;;  %v317_v1 = vmul.f32 %v860_v59, %v985_v2  ;;  %v867_v3 = vunpack.c.l.bf16 %v875_v55  ;;  %v868_v4 = vunpack.c.h.bf16 %v875_v55 }
  0x1f   : > { %891 = vmatprep.mubr.msk.bf16.mxu0 %vm393_vm1, %v379_v56  ;;  %v337_v5 = vadd.f32 %v994_v11, %v314_v60  ;;  %v338_v6 = vadd.f32 %v994_v11, %v315_v61  ;;  %v318_v7 = vmul.f32 %v863_v62, %v985_v2  ;;  %v319_v8 = vmul.f32 %v864_v63, %v985_v2 }
  0x20   : > { %v339_v9 = vadd.f32 %v994_v11, %v316_v0  ;;  %v340_v10 = vadd.f32 %v994_v11, %v317_v1  ;;  %v320_v12 = vmul.f32 %v867_v3, %v985_v2  ;;  %v321_v13 = vmul.f32 %v868_v4, %v985_v2 }
  0x21   : > { %v353_v14 = vmax.f32 %v337_v5, 0.0  ;;  %v354_v15 = vmax.f32 %v338_v6, 0.0  ;;  %v341_v16 = vadd.f32 %v994_v11, %v318_v7  ;;  %v342_v17 = vadd.f32 %v994_v11, %v319_v8 }
  0x22   : > { %v355_v18 = vmax.f32 %v339_v9, 0.0  ;;  %v356_v19 = vmax.f32 %v340_v10, 0.0  ;;  %v343_v20 = vadd.f32 %v994_v11, %v320_v12  ;;  %v344_v21 = vadd.f32 %v994_v11, %v321_v13 }
  0x23   : > { %v369_v22 = vmin.f32 %v353_v14, 6.0  ;;  %v370_v23 = vmin.f32 %v354_v15, 6.0  ;;  %v357_v24 = vmax.f32 %v341_v16, 0.0  ;;  %v358_v25 = vmax.f32 %v342_v17, 0.0 }
  0x24   : > { %v371_v26 = vmin.f32 %v355_v18, 6.0  ;;  %v372_v27 = vmin.f32 %v356_v19, 6.0  ;;  %v359_v28 = vmax.f32 %v343_v20, 0.0  ;;  %v360_v2 = vmax.f32 %v344_v21, 0.0 }
  0x25   : > { %v381_v29 = vpack.c.bf16 %v370_v23, %v369_v22  ;;  %v373_v30 = vmin.f32 %v357_v24, 6.0  ;;  %v374_v31 = vmin.f32 %v358_v25, 6.0 }
  0x26   : > { %892 = vmatmul.mubr.msk.bf16.gmra.mrb[4].mxu0 %vm393_vm1, %v380_v57  ;;  %v382_v32 = vpack.c.bf16 %v372_v27, %v371_v26  ;;  %v375_v11 = vmin.f32 %v359_v28, 6.0  ;;  %v376_v34 = vmin.f32 %v360_v2, 6.0 }
  0x27   : > { %895 = vmatprep.mubr.msk.bf16.mxu1 %vm393_vm1, %v381_v29  ;;  %v383_v33 = vpack.c.bf16 %v374_v31, %v373_v30 }
  0x28   : > { %896 = vmatmul.mubr.msk.bf16.vlgmr.msra.gmra.mrb[0].mxu1 %vm393_vm1, %v382_v32  ;;  %v384_v35 = vpack.c.bf16 %v376_v34, %v375_v11 }
  0x29   : > { %899 = vmatprep.mubr.msk.bf16.mxu1 %vm393_vm1, %v383_v33 }
  0x30   : > { %900 = vmatmul.mubr.msk.bf16.gmra.mrb[4].mxu1 %vm393_vm1, %v384_v35 }
  0xf1   : > { %v889_v37 = vpop.f32.mrb[0].mxu0 }
  0xf2   : > { %v465_v38 = vadd.f32 %v889_v37, %v1043_v36  ;;  %v456_v39 = vpop.f32.mrb[1].mxu0 }
  0xf3   : > { %v457_v40 = vadd.f32 %v1043_v36, %v456_v39  ;;  %v890_v41 = vpop.f32.mrb[2].mxu0 }
  0xf4   : > { %v823_v42 = vpack.c.bf16 %v465_v38, %v465_v38  ;;  %v468_v43 = vadd.f32 %v890_v41, %v1043_v36  ;;  %v459_v44 = vpop.f32.mrb[3].mxu0  ;;  %v640_v48 = vmul.f32 %v465_v38, %v465_v38  ;;  %v604_v56 = vsel %vm600_vm3, %v465_v38, 0.0 }
  0xf5   : > { %v821_v45 = vpack.c.bf16 %v457_v40, %v457_v40  ;;  %v638_v46 = vmul.f32 %v457_v40, %v457_v40  ;;  %v460_v47 = vadd.f32 %v1043_v36, %v459_v44  ;;  %v601_v50 = vsel %vm600_vm3, %v457_v40, 0.0 }
  0xf6   : > { %586 = vst.msk [vmem:[%s1051_s14 + $0x8] sm:$0xf] %vm583_vm2, %v823_v42  ;;  %v824_v49 = vpack.c.bf16 %v468_v43, %v468_v43  ;;  %v641_v54 = vmul.f32 %v468_v43, %v468_v43  ;;  %v657_v0 = vsel %vm600_vm3, %v640_v48, 0.0  ;;  %v606_v5 = vsel %vm600_vm3, %v468_v43, 0.0 }
  0xf7   : > { %584 = vst.msk [vmem:[%s1051_s14] sm:$0xf] %vm583_vm2, %v821_v45  ;;  %v822_v51 = vpack.c.bf16 %v460_v47, %v460_v47  ;;  %v602_v52 = vsel %vm600_vm3, %v460_v47, 0.0  ;;  %v639_v53 = vmul.f32 %v460_v47, %v460_v47  ;;  %v654_v57 = vsel %vm600_vm3, %v638_v46, 0.0 }
  0xf8   : > { %587 = vst.msk [vmem:[%s1051_s14 + $0xc] sm:$0xf] %vm583_vm2, %v824_v49  ;;  %v603_v55 = vadd.f32 %v602_v52, %v601_v50  ;;  %v659_v6 = vsel %vm600_vm3, %v641_v54, 0.0 }
  0xf9   : > { %585 = vst.msk [vmem:[%s1051_s14 + $0x4] sm:$0xf] %vm583_vm2, %v822_v51  ;;  %v655_v58 = vsel %vm600_vm3, %v639_v53, 0.0  ;;  %v893_v59 = vpop.f32.mrb[4].mxu0 }
  0xfa   : > { %v605_v60 = vadd.f32 %v604_v56, %v603_v55  ;;  %v656_v61 = vadd.f32 %v655_v58, %v654_v57  ;;  %v481_v62 = vadd.f32 %v893_v59, %v1043_v36  ;;  %v472_v63 = vpop.f32.mrb[5].mxu0 }
  0xfb   : > { %v473_v1 = vadd.f32 %v1043_v36, %v472_v63  ;;  %v894_v3 = vpop.f32.mrb[6].mxu0  ;;  %v897_v4 = vpop.f32.mrb[0].mxu1 }
  0xfc   : > { %v658_v7 = vadd.f32 %v657_v0, %v656_v61  ;;  %v827_v8 = vpack.c.bf16 %v481_v62, %v481_v62  ;;  %v475_v9 = vpop.f32.mrb[7].mxu0  ;;  %v488_v10 = vpop.f32.mrb[1].mxu1  ;;  %v607_v13 = vadd.f32 %v606_v5, %v605_v60  ;;  %v644_v17 = vmul.f32 %v481_v62, %v481_v62 }
  0xfd   : > { %v825_v12 = vpack.c.bf16 %v473_v1, %v473_v1  ;;  %v608_v14 = vsel %vm600_vm3, %v473_v1, 0.0  ;;  %v642_v15 = vmul.f32 %v473_v1, %v473_v1  ;;  %v898_v16 = vpop.f32.mrb[2].mxu1  ;;  %v484_v19 = vadd.f32 %v894_v3, %v1043_v36 }
  0xfe   : > { %590 = vst.msk [vmem:[%s1051_s14 + $0x18] sm:$0xf] %vm583_vm2, %v827_v8  ;;  %v660_v18 = vadd.f32 %v659_v6, %v658_v7  ;;  %v476_v20 = vadd.f32 %v1043_v36, %v475_v9  ;;  %v491_v21 = vpop.f32.mrb[3].mxu1  ;;  %v609_v22 = vadd.f32 %v608_v14, %v607_v13  ;;  %v497_v24 = vadd.f32 %v897_v4, %v1043_v36 }
  0xff   : > { %588 = vst.msk [vmem:[%s1051_s14 + $0x10] sm:$0xf] %vm583_vm2, %v825_v12  ;;  %v661_v23 = vsel %vm600_vm3, %v642_v15, 0.0  ;;  %v489_v25 = vadd.f32 %v1043_v36, %v488_v10  ;;  %v828_v27 = vpack.c.bf16 %v484_v19, %v484_v19  ;;  %v612_v31 = vsel %vm600_vm3, %v481_v62, 0.0 }
 0x100   : > { %v662_v26 = vadd.f32 %v661_v23, %v660_v18  ;;  %v826_v28 = vpack.c.bf16 %v476_v20, %v476_v20  ;;  %v610_v2 = vsel %vm600_vm3, %v476_v20, 0.0  ;;  %v643_v29 = vmul.f32 %v476_v20, %v476_v20 }
 0x101   : > { %v831_v30 = vpack.c.bf16 %v497_v24, %v497_v24  ;;  %v665_v32 = vsel %vm600_vm3, %v644_v17, 0.0  ;;  %591 = vst.msk [vmem:[%s1051_s14 + $0x1c] sm:$0xf] %vm583_vm2, %v828_v27  ;;  %v611_v33 = vadd.f32 %v610_v2, %v609_v22  ;;  %v645_v11 = vmul.f32 %v484_v19, %v484_v19 }
 0x102   : > { %589 = vst.msk [vmem:[%s1051_s14 + $0x14] sm:$0xf] %vm583_vm2, %v826_v28  ;;  %v663_v34 = vsel %vm600_vm3, %v643_v29, 0.0  ;;  %v829_v35 = vpack.c.bf16 %v489_v25, %v489_v25  ;;  %v646_v37 = vmul.f32 %v489_v25, %v489_v25  ;;  %v614_v39 = vsel %vm600_vm3, %v484_v19, 0.0 }
 0x103   : > { %594 = vst.msk [vmem:[%s1051_s14 + $0x28] sm:$0xf] %vm583_vm2, %v831_v30  ;;  %v901_v38 = vpop.f32.mrb[4].mxu1  ;;  %v613_v40 = vadd.f32 %v612_v31, %v611_v33  ;;  %v664_v41 = vadd.f32 %v663_v34, %v662_v26  ;;  %v500_v42 = vadd.f32 %v898_v16, %v1043_v36  ;;  %v616_v44 = vsel %vm600_vm3, %v489_v25, 0.0 }
 0x104   : > { %v504_v43 = vpop.f32.mrb[5].mxu1  ;;  %592 = vst.msk [vmem:[%s1051_s14 + $0x20] sm:$0xf] %vm583_vm2, %v829_v35  ;;  %v492_v45 = vadd.f32 %v1043_v36, %v491_v21  ;;  %v513_v46 = vadd.f32 %v901_v38, %v1043_v36  ;;  %v667_v53 = vsel %vm600_vm3, %v645_v11, 0.0  ;;  %v669_v54 = vsel %vm600_vm3, %v646_v37, 0.0 }
 0x105   : > { %v505_v47 = vadd.f32 %v1043_v36, %v504_v43  ;;  %v902_v48 = vpop.f32.mrb[6].mxu1  ;;  %v666_v49 = vadd.f32 %v665_v32, %v664_v41  ;;  %v615_v50 = vadd.f32 %v614_v39, %v613_v40  ;;  %v832_v51 = vpack.c.bf16 %v500_v42, %v500_v42 }
 0x106   : > { %v507_v52 = vpop.f32.mrb[7].mxu1  ;;  %v830_v55 = vpack.c.bf16 %v492_v45, %v492_v45  ;;  %v647_v56 = vmul.f32 %v492_v45, %v492_v45  ;;  %v648_v57 = vmul.f32 %v497_v24, %v497_v24  ;;  %v835_v60 = vpack.c.bf16 %v513_v46, %v513_v46 }
 0x107   : > { %v617_v58 = vadd.f32 %v616_v44, %v615_v50  ;;  %v668_v59 = vadd.f32 %v667_v53, %v666_v49  ;;  %595 = vst.msk [vmem:[%s1051_s14 + $0x2c] sm:$0xf] %vm583_vm2, %v832_v51  ;;  %v618_v61 = vsel %vm600_vm3, %v492_v45, 0.0  ;;  %v833_v62 = vpack.c.bf16 %v505_v47, %v505_v47 }
 0x108   : > { %593 = vst.msk [vmem:[%s1051_s14 + $0x24] sm:$0xf] %vm583_vm2, %v830_v55  ;;  %v620_v63 = vsel %vm600_vm3, %v497_v24, 0.0  ;;  %v649_v1 = vmul.f32 %v500_v42, %v500_v42  ;;  %598 = vst.msk [vmem:[%s1051_s14 + $0x38] sm:$0xf] %vm583_vm2, %v835_v60  ;;  %v671_v4 = vsel %vm600_vm3, %v647_v56, 0.0  ;;  %v650_v5 = vmul.f32 %v505_v47, %v505_v47 }
 0x109   : > { %v670_v0 = vadd.f32 %v669_v54, %v668_v59  ;;  %v619_v3 = vadd.f32 %v618_v61, %v617_v58  ;;  %596 = vst.msk [vmem:[%s1051_s14 + $0x30] sm:$0xf] %vm583_vm2, %v833_v62  ;;  %v516_v6 = vadd.f32 %v902_v48, %v1043_v36  ;;  %v508_v7 = vadd.f32 %v1043_v36, %v507_v52 }
 0x10a   : > { %v673_v8 = vsel %vm600_vm3, %v648_v57, 0.0  ;;  %v622_v12 = vsel %vm600_vm3, %v500_v42, 0.0  ;;  %v624_v13 = vsel %vm600_vm3, %v505_v47, 0.0  ;;  %v675_v18 = vsel %vm600_vm3, %v649_v1, 0.0 }
 0x10b   : > { %v621_v9 = vadd.f32 %v620_v63, %v619_v3  ;;  %v672_v10 = vadd.f32 %v671_v4, %v670_v0  ;;  %v836_v14 = vpack.c.bf16 %v516_v6, %v516_v6  ;;  %v834_v15 = vpack.c.bf16 %v508_v7, %v508_v7 }
 0x10c   : > { %v677_v19 = vsel %vm600_vm3, %v650_v5, 0.0  ;;  %v651_v36 = vmul.f32 %v508_v7, %v508_v7  ;;  %v652_v22 = vmul.f32 %v513_v46, %v513_v46  ;;  %v626_v23 = vsel %vm600_vm3, %v508_v7, 0.0 }
 0x10d   : > { %v674_v16 = vadd.f32 %v673_v8, %v672_v10  ;;  %v623_v17 = vadd.f32 %v622_v12, %v621_v9  ;;  %599 = vst.msk [vmem:[%s1051_s14 + $0x3c] sm:$0xf] %vm583_vm2, %v836_v14  ;;  %597 = vst.msk [vmem:[%s1051_s14 + $0x34] sm:$0xf] %vm583_vm2, %v834_v15  ;;  %v628_v26 = vsel %vm600_vm3, %v513_v46, 0.0  ;;  %v653_v27 = vmul.f32 %v516_v6, %v516_v6 }
 0x10e   : > { %v679_v28 = vsel %vm600_vm3, %v651_v36, 0.0  ;;  %v681_v30 = vsel %vm600_vm3, %v652_v22, 0.0  ;;  %v630_v31 = vsel %vm600_vm3, %v516_v6, 0.0 }
 0x10f   : > { %v625_v20 = vadd.f32 %v624_v13, %v623_v17  ;;  %v676_v21 = vadd.f32 %v675_v18, %v674_v16  ;;  %v683_v11 = vsel %vm600_vm3, %v653_v27, 0.0 }
 0x111   : > { %v678_v24 = vadd.f32 %v677_v19, %v676_v21  ;;  %v627_v25 = vadd.f32 %v626_v23, %v625_v20 }
 0x113   : > { %v629_v2 = vadd.f32 %v628_v26, %v627_v25  ;;  %v680_v29 = vadd.f32 %v679_v28, %v678_v24 }
 0x115   : > { %v631_v32 = vadd.f32 %v630_v31, %v629_v2  ;;  %v682_v33 = vadd.f32 %v681_v30, %v680_v29 }
 0x117   : > { %v632_v34 = vrot.slane %v631_v32, 4  ;;  %v684_v35 = vadd.f32 %v683_v11, %v682_v33 }
 0x119   : > { %v633_v37 = vadd.f32 %v632_v34, %v631_v32  ;;  %v685_v38 = vrot.slane %v684_v35, 4 }
 0x11b   : > { %v634_v39 = vrot.slane %v633_v37, 2  ;;  %v686_v40 = vadd.f32 %v685_v38, %v684_v35 }
 0x11d   : > { %v635_v41 = vadd.f32 %v634_v39, %v633_v37  ;;  %v687_v42 = vrot.slane %v686_v40, 2 }
 0x11f   : > { %v636_v43 = vrot.slane %v635_v41, 1  ;;  %v688_v44 = vadd.f32 %v687_v42, %v686_v40 }
 0x121   : > { %v689_v45 = vrot.slane %v688_v44, 1  ;;  %v637_v46 = vadd.f32 %v636_v43, %v635_v41 }
 0x123   : > { %v690_v47 = vadd.f32 %v689_v45, %v688_v44 }
 0x125   : > { %v692_v48 = vsel %vm691_vm4, %v637_v46, %v690_v47 }
 0x126   : > { %694 = vst.msk [vmem:[%s265_s18] sm:$0x3] %vm693_vm5, %v692_v48 }
 0x127 PF: > { %s17_s21 = sadd.s32 1, %s921_s21  }
 0x128   : > { %p14_p5 = scmp.ge.s32.totalorder %s17_s21, 6  }
 0x12a   :  { %16 = sbr.rel (!%p14_p5) target bundleno = 1 (0x1), region = 82 }

// kernel: tile.18
= control target key start
LH: loop header
LB: loop body
LE: loop exit
PB: predicated region body
PF: predicated region fallthrough
CT: control target
= control target key end

     0   :  { %s22_s0 = inlined_call_operand.vmem [shape: f32[4], index: 0, kind: input, shape index: {}]   ;;  %s23_s1 = inlined_call_operand.vmem [shape: f32[3,4], index: 1, kind: output, shape index: {}]  }
   0x1   :  { %v4_v0 = vld [vmem:[%s22_s0] ss:$0 sm:$0xff] }
   0x2   :  { %5 = vst [vmem:[%s23_s1] sm:$0xf] %v4_v0 }

// kernel: tile.19
= control target key start
LH: loop header
LB: loop body
LE: loop exit
PB: predicated region body
PF: predicated region fallthrough
CT: control target
= control target key end

     0   :  { %vm7_vm0 = vcmask 31744   ;;  %s30_s8 = smov 4   ;;  %vm13_vm1 = vcmask 97344   ;;  %vm19_vm2 = vcmask 64544   ;;  %s47_s0 = inlined_call_operand.vmem [shape: f32[3,4], index: 0, kind: input, shape index: {}]   ;;  %s48_s1 = inlined_call_operand.vmem [shape: f32[1,12], index: 1, kind: output, shape index: {}]  }
   0x1   :  { %v4_v0 = vld [vmem:[%s47_s0] sm:$0xf]  ;;  %s29_s0 = smov 8  }
   0x2   :  { %5 = vst [vmem:[#allocation1] sm:$0xf] %v4_v0 }
   0x9   :  { %v10_v1 = vld [vmem:[#allocation1 + $0x2] sm:$0x1]   ;;  %v6_v2 = vld [vmem:[#allocation1] sm:$0x1]   ;;  %v16_v3 = vld [vmem:[#allocation1 + $0x1] sm:$0x1]  }
   0xa   :  { %11 = vrot.lane.b32.xlu0 %v10_v1, %s29_s0  ;;  %8 = vst.msk [vmem:[#allocation0] sm:$0x1] %vm7_vm0, %v6_v2  }
   0xe   :  { %17 = vrot.lane.b32.xlu0 %v16_v3, %s30_s8 }
  0x7c   :  { %v12_v4 = vpop.permute.xlu0 %11  }
  0x7d   :  { %14 = vst.msk [vmem:[#allocation0] sm:$0x1] %vm13_vm1, %v12_v4  }
  0x80   :  { %v18_v5 = vpop.permute.xlu0 %17  }
  0x81   :  { %20 = vst.msk [vmem:[#allocation0] sm:$0x1] %vm19_vm2, %v18_v5  }
  0x88   :  { %v24_v6 = vld [vmem:[#allocation0] sm:$0x1] }
  0x89   :  { %26 = vst [vmem:[%s48_s1] sm:$0x1] %v24_v6 }

// kernel: _lambda_.11
= control target key start
LH: loop header
LB: loop body
LE: loop exit
PB: predicated region body
PF: predicated region fallthrough
CT: control target
= control target key end

     0   :  { %s617_s21 = smov 0   ;;  %s673_s0 = inlined_call_operand.vmem [shape: bf16[128,16], index: 0, kind: input, shape index: {}]   ;;  %s674_s1 = inlined_call_operand.vmem [shape: f32[1,16], index: 1, kind: input, shape index: {}]   ;;  %s675_s2 = inlined_call_operand.vmem [shape: f32[1,16], index: 2, kind: input, shape index: {}]   ;;  %s676_s3 = inlined_call_operand.vmem [shape: bf16[16,4], index: 3, kind: input, shape index: {}]   ;;  %s677_s4 = inlined_call_operand.vmem [shape: f32[1,4], index: 4, kind: input, shape index: {}]   ;;  %s678_s5 = inlined_call_operand.vmem [shape: bf16[128,4], index: 5, kind: output, shape index: {0}]   ;;  %s679_s6 = inlined_call_operand.vmem [shape: f32[4,2,4], index: 6, kind: output, shape index: {1}]  }
   0x1 LB: > { %s623_s22 = sadd.s32 4294967295, %s580_s21   ;;  %p525_p0 = scmp.ge.s32.totalorder %s580_s21, 1  ;;  %s580_s21 = sphi %s617_s21, %s17_s21  }
   0x2   : > { %p216_p1 = scmp.lt.s32.totalorder %s580_s21, 5 }
   0x4   : > { %p217_p2 = pnand %p525_p0, %p216_p1 }
   0x5   : > { %v573_v0 = vld [vmem:[%s676_s3] sm:$0xff] (!%p217_p2)   ;;  %s526_s25 = sshll.u32 (!%p217_p2), %s623_s22, 2  ;;  %vm322_vm0 = vcmask (!%p217_p2), 130048   ;;  %vm394_vm1 = vcmask (!%p217_p2), 27648   ;;  %vm399_vm2 = vcmask (!%p217_p2), 31744   ;;  %p262_p4 = scmp.lt.s32.totalorder (!%p217_p2), %s623_s22, 3 }
   0x6   : > { %220 = sbr.rel (%p217_p2) target bundleno = 270 (0x10e), region = 40  ;;  %p251_p3 = scmp.lt.s32.totalorder (!%p217_p2), %s526_s25, 15  ;;  %559 = vmatprep.subr.bf16.mxu0 (!%p217_p2), %v573_v0  ;;  %v531_v3 = vld [vmem:[%s674_s1] ss:$0 sm:$0xff] (!%p217_p2)  ;;  %vm430_vm3 = vcmask (!%p217_p2), 1040384   ;;  %vm432_vm4 = vcmask (!%p217_p2), 25600  }
   0x7   : > { %560 = vmatpush3.bf16.msra.mxu0 (!%p217_p2), %v573_v0  ;;  %v532_v8 = vld [vmem:[%s675_s2] ss:$0 sm:$0xff] (!%p217_p2) }
   0x8   : > { %v533_v27 = vld [vmem:[%s677_s4] ss:$0 sm:$0xff] (!%p217_p2) }
   0xd   : > { %s681_s25 = smov (!%p251_p3, %s526_s25), 15  ;;  %s683_s22 = smov (!%p262_p4, %s623_s22), 3 }
   0xe   : > { %s527_s26 = sshll.u32 %s681_s25, 2  ;;  %s530_s15 = sshll.u32 %s683_s22, 1 }
   0xf   : > { %s254_s29 = scalar_lea.vmem %s673_s0, %s527_s26  ;;  %s260_s14 = scalar_lea.vmem %s678_s5, %s527_s26 }
  0x10   : > { %v548_v1 = vld [vmem:[%s254_s29] sm:$0xff]   ;;  %v555_v2 = vld [vmem:[%s254_s29 + $0x8] sm:$0xff]   ;;  %s265_s18 = scalar_lea.vmem %s679_s6, %s530_s15 }
  0x11   : > { %v549_v4 = vunpack.c.l.bf16 %v548_v1  ;;  %v550_v5 = vunpack.c.h.bf16 %v548_v1  ;;  %v553_v6 = vunpack.c.l.bf16 %v555_v2  ;;  %v554_v7 = vunpack.c.h.bf16 %v555_v2 }
  0x13   : > { %v282_v9 = vmul.f32 %v549_v4, %v531_v3  ;;  %v283_v10 = vmul.f32 %v550_v5, %v531_v3  ;;  %v284_v11 = vmul.f32 %v553_v6, %v531_v3  ;;  %v285_v12 = vmul.f32 %v554_v7, %v531_v3 }
  0x15   : > { %v293_v13 = vadd.f32 %v532_v8, %v282_v9  ;;  %v294_v14 = vadd.f32 %v532_v8, %v283_v10  ;;  %v295_v15 = vadd.f32 %v532_v8, %v284_v11  ;;  %v296_v16 = vadd.f32 %v532_v8, %v285_v12 }
  0x17   : > { %v297_v17 = vmax.f32 %v293_v13, 0.0  ;;  %v298_v18 = vmax.f32 %v294_v14, 0.0  ;;  %v299_v19 = vmax.f32 %v295_v15, 0.0  ;;  %v300_v20 = vmax.f32 %v296_v16, 0.0 }
  0x19   : > { %v301_v21 = vmin.f32 %v297_v17, 6.0  ;;  %v302_v22 = vmin.f32 %v298_v18, 6.0  ;;  %v303_v23 = vmin.f32 %v299_v19, 6.0  ;;  %v304_v24 = vmin.f32 %v300_v20, 6.0 }
  0x1b   : > { %v305_v25 = vpack.c.bf16 %v302_v22, %v301_v21  ;;  %v306_v26 = vpack.c.bf16 %v304_v24, %v303_v23 }
  0x1d   : > { %561 = vmatprep.mubr.msk.bf16.mxu0 %vm322_vm0, %v305_v25 }
  0x1e   : > { %562 = vmatmul.mubr.msk.bf16.vlgmr.msra.gmra.mrb[0].mxu0 %vm322_vm0, %v306_v26 }
  0xf1   : > { %v563_v28 = vpop.f32.mrb[0].mxu0 }
  0xf2   : > { %v372_v29 = vadd.f32 %v563_v28, %v533_v27  ;;  %v363_v30 = vpop.f32.mrb[1].mxu0 }
  0xf3   : > { %v364_v31 = vadd.f32 %v533_v27, %v363_v30  ;;  %v564_v32 = vpop.f32.mrb[2].mxu0 }
  0xf4   : > { %v545_v33 = vpack.c.bf16 %v372_v29, %v372_v29  ;;  %v375_v34 = vadd.f32 %v564_v32, %v533_v27  ;;  %v366_v35 = vpop.f32.mrb[3].mxu0  ;;  %v415_v39 = vmul.f32 %v372_v29, %v372_v29  ;;  %v403_v46 = vsel %vm399_vm2, %v372_v29, 0.0 }
  0xf5   : > { %v543_v36 = vpack.c.bf16 %v364_v31, %v364_v31  ;;  %v413_v37 = vmul.f32 %v364_v31, %v364_v31  ;;  %v367_v38 = vadd.f32 %v533_v27, %v366_v35  ;;  %v400_v41 = vsel %vm399_vm2, %v364_v31, 0.0 }
  0xf6   : > { %397 = vst.msk [vmem:[%s260_s14 + $0x8] sm:$0xf] %vm394_vm1, %v545_v33  ;;  %v546_v40 = vpack.c.bf16 %v375_v34, %v375_v34  ;;  %v416_v48 = vmul.f32 %v375_v34, %v375_v34  ;;  %v420_v52 = vsel %vm399_vm2, %v415_v39, 0.0  ;;  %v405_v53 = vsel %vm399_vm2, %v375_v34, 0.0 }
  0xf7   : > { %395 = vst.msk [vmem:[%s260_s14] sm:$0xf] %vm394_vm1, %v543_v36  ;;  %v544_v42 = vpack.c.bf16 %v367_v38, %v367_v38  ;;  %v401_v43 = vsel %vm399_vm2, %v367_v38, 0.0  ;;  %v414_v44 = vmul.f32 %v367_v38, %v367_v38  ;;  %v417_v47 = vsel %vm399_vm2, %v413_v37, 0.0 }
  0xf8   : > { %398 = vst.msk [vmem:[%s260_s14 + $0xc] sm:$0xf] %vm394_vm1, %v546_v40  ;;  %v402_v45 = vadd.f32 %v401_v43, %v400_v41  ;;  %v422_v56 = vsel %vm399_vm2, %v416_v48, 0.0 }
  0xf9   : > { %396 = vst.msk [vmem:[%s260_s14 + $0x4] sm:$0xf] %vm394_vm1, %v544_v42  ;;  %v418_v49 = vsel %vm399_vm2, %v414_v44, 0.0 }
  0xfa   : > { %v404_v50 = vadd.f32 %v403_v46, %v402_v45  ;;  %v419_v51 = vadd.f32 %v418_v49, %v417_v47 }
  0xfc   : > { %v406_v54 = vadd.f32 %v405_v53, %v404_v50  ;;  %v421_v55 = vadd.f32 %v420_v52, %v419_v51 }
  0xfe   : > { %v407_v57 = vrot.slane %v406_v54, 4  ;;  %v423_v58 = vadd.f32 %v422_v56, %v421_v55 }
 0x100   : > { %v408_v59 = vadd.f32 %v407_v57, %v406_v54  ;;  %v424_v60 = vrot.slane %v423_v58, 4 }
 0x102   : > { %v409_v61 = vrot.slane %v408_v59, 2  ;;  %v425_v62 = vadd.f32 %v424_v60, %v423_v58 }
 0x104   : > { %v410_v63 = vadd.f32 %v409_v61, %v408_v59  ;;  %v426_v0 = vrot.slane %v425_v62, 2 }
 0x106   : > { %v411_v1 = vrot.slane %v410_v63, 1  ;;  %v427_v2 = vadd.f32 %v426_v0, %v425_v62 }
 0x108   : > { %v428_v3 = vrot.slane %v427_v2, 1  ;;  %v412_v4 = vadd.f32 %v411_v1, %v410_v63 }
 0x10a   : > { %v429_v5 = vadd.f32 %v428_v3, %v427_v2 }
 0x10c   : > { %v431_v6 = vsel %vm430_vm3, %v412_v4, %v429_v5 }
 0x10d   : > { %433 = vst.msk [vmem:[%s265_s18] sm:$0x3] %vm432_vm4, %v431_v6 }
 0x10e PF: > { %s17_s21 = sadd.s32 1, %s580_s21  }
 0x10f   : > { %p14_p5 = scmp.ge.s32.totalorder %s17_s21, 6  }
 0x111   :  { %16 = sbr.rel (!%p14_p5) target bundleno = 1 (0x1), region = 82 }

// kernel: _lambda_.8
= control target key start
LH: loop header
LB: loop body
LE: loop exit
PB: predicated region body
PF: predicated region fallthrough
CT: control target
= control target key end

     0   :  { %s1346_s18 = smov 0   ;;  %s2032_s0 = inlined_call_operand.vmem [shape: bf16[288,6], index: 0, kind: input, shape index: {}]   ;;  %s2033_s1 = inlined_call_operand.vmem [shape: f32[1,6], index: 1, kind: input, shape index: {}]   ;;  %s2034_s2 = inlined_call_operand.vmem [shape: bf16[3,6,2], index: 2, kind: input, shape index: {}]   ;;  %s2035_s3 = inlined_call_operand.vmem [shape: f32[1,2], index: 3, kind: input, shape index: {}]   ;;  %s2036_s4 = inlined_call_operand.vmem [shape: bf16[288,2], index: 4, kind: output, shape index: {0}]   ;;  %s2037_s5 = inlined_call_operand.vmem [shape: f32[4,2,2], index: 5, kind: output, shape index: {1}]  }
   0x1 LB: > { %s1352_s19 = sadd.s32 4294967295, %s1312_s18   ;;  %p1121_p0 = scmp.ge.s32.totalorder %s1312_s18, 1  ;;  %s1312_s18 = sphi %s1346_s18, %s16_s18  }
   0x2   : > { %p191_p1 = scmp.lt.s32.totalorder %s1312_s18, 5 }
   0x4   : > { %p192_p2 = pnand %p1121_p0, %p191_p1 }
   0x5   : > { %v1126_v0 = vld [vmem:[%s2034_s2 + $0x4] sm:$0x7] (!%p192_p2)  ;;  %vm316_vm0 = vcmask (!%p192_p2), 1042432   ;;  %s223_s22 = smul.u32 (!%p192_p2), 9, %s1352_s19  ;;  %v1314_v1 = vmov (!%p192_p2), 0.0   ;;  %vm1315_vm1 = vmmov (!%p192_p2), 0   ;;  %v401_v54 = vlaneseq (!%p192_p2) }
   0x6   : > { %195 = sbr.rel (%p192_p2) target bundleno = 324 (0x144), region = 36  ;;  %1210 = vmatprep.subr.bf16.mxu0 (!%p192_p2), %v1314_v1  ;;  %1276 = vmatprep.subr.bf16.mxu1 (!%p192_p2), %v1314_v1  ;;  %v318_v2 = vsel (!%p192_p2), %vm316_vm0, %v1126_v0, 0  ;;  %v1125_v3 = vld [vmem:[%s2033_s1] ss:$0 sm:$0xff] (!%p192_p2)  ;;  %v1137_v28 = vld [vmem:[%s2034_s2 + $0x8] sm:$0x7] (!%p192_p2) }
   0x7   : > { %1211 = vmatpush3.bf16.msra.mxu0 (!%p192_p2), %v318_v2  ;;  %1277 = vmatpush3.bf16.msra.mxu1 (!%p192_p2), %v318_v2  ;;  %p224_p3 = scmp.lt.s32.totalorder (!%p192_p2), %s223_s22, 35  ;;  %v297_v37 = vld [vmem:[%s2034_s2] sm:$0x7] (!%p192_p2)  ;;  %vm300_vm2 = vcmask (!%p192_p2), 48128   ;;  %v491_v40 = vsel (!%p192_p2), %vm316_vm0, %v1137_v28, 0  ;;  %v1429_v55 = vshrl.u32 (!%p192_p2), %v401_v54, 7 }
   0x8   : > { %1212 = vmatprep.mubr.msk.bf16.mxu0 (!%p192_p2), %vm1315_vm1, %v1314_v1  ;;  %1224 = vmatprep.mubr.msk.bf16.mxu1 (!%p192_p2), %vm1315_vm1, %v1314_v1  ;;  %v414_v41 = vsel (!%p192_p2), %vm316_vm0, %v297_v37, 0  ;;  %p235_p4 = scmp.lt.s32.totalorder (!%p192_p2), %s1352_s19, 3 }
   0x9   : > { %1254 = vmatprep.subr.bf16.mxu0 (!%p192_p2), %v1314_v1  ;;  %1232 = vmatprep.subr.bf16.mxu1 (!%p192_p2), %v1314_v1  ;;  %v1432_v56 = vmul.u32.u64.low (!%p192_p2), 3817748708, %v1429_v55  ;;  %v1433_v57 = vmul.u32.u64.high 3817748708, %v1429_v55, %v1432_v56  ;;  %v656_v59 = vadd.s32 (!%p192_p2), 8, %v1429_v55  ;;  %v657_v60 = vadd.s32 (!%p192_p2), 16, %v1429_v55 }
   0xa   : > { %v658_v62 = vadd.s32 (!%p192_p2), 24, %v1429_v55 }
   0xb   : > { %v670_v58 = vshrl.u32 (!%p192_p2), %v1433_v57, 4  ;;  %v1439_v63 = vmul.u32.u64.low (!%p192_p2), 3817748708, %v656_v59  ;;  %v1440_v0 = vmul.u32.u64.high 3817748708, %v656_v59, %v1439_v63 }
   0xd   : > { %s2091_s22 = smov (!%p224_p3, %s223_s22), 35  ;;  %v671_v61 = vmul.u32 18, %v670_v58  ;;  %s2093_s19 = smov (!%p235_p4, %s1352_s19), 3 }
   0xe   : > { %s1122_s23 = sshll.u32 %s2091_s22, 2  ;;  %s1124_s13 = sshll.u32 %s2093_s19, 1 }
   0xf   : > { %s227_s26 = scalar_lea.vmem %s2032_s0, %s1122_s23  ;;  %s1769_s12 = scalar_lea.vmem %s2036_s4, %s1122_s23 }
  0x10   : > { %v1174_v4 = vld [vmem:[%s227_s26] sm:$0xff]   ;;  %v1191_v5 = vld [vmem:[%s227_s26 + $0x18] sm:$0xff]   ;;  %v1189_v6 = vld [vmem:[%s227_s26 + $0x8] sm:$0xff]   ;;  %s238_s16 = scalar_lea.vmem %s2037_s5, %s1124_s13 }
  0x11   : > { %v1175_v7 = vunpack.c.l.bf16 %v1174_v4  ;;  %v1176_v8 = vunpack.c.h.bf16 %v1174_v4  ;;  %v1187_v9 = vunpack.c.l.bf16 %v1191_v5  ;;  %v1188_v10 = vunpack.c.h.bf16 %v1191_v5  ;;  %v248_v11 = vld [vmem:[%s227_s26 + $0x20] sm:$0xf]  ;;  %v1190_v12 = vld [vmem:[%s227_s26 + $0x10] sm:$0xff]  }
  0x12   : > { %v1179_v13 = vunpack.c.l.bf16 %v1189_v6  ;;  %v1180_v14 = vunpack.c.h.bf16 %v1189_v6  ;;  %v258_v15 = vunpack.c.l.bf16 %v248_v11  ;;  %v1183_v23 = vunpack.c.l.bf16 %v1190_v12 }
  0x13   : > { %v265_v16 = vmul.f32 %v1175_v7, %v1125_v3  ;;  %v266_v17 = vmul.f32 %v1176_v8, %v1125_v3  ;;  %v271_v18 = vmul.f32 %v1187_v9, %v1125_v3  ;;  %v272_v19 = vmul.f32 %v1188_v10, %v1125_v3 }
  0x14   : > { %v267_v20 = vmul.f32 %v1179_v13, %v1125_v3  ;;  %v268_v21 = vmul.f32 %v1180_v14, %v1125_v3  ;;  %v273_v22 = vmul.f32 %v1125_v3, %v258_v15  ;;  %v1184_v32 = vunpack.c.h.bf16 %v1190_v12 }
  0x15   : > { %v274_v24 = vmax.f32 %v265_v16, 0.0  ;;  %v275_v25 = vmax.f32 %v266_v17, 0.0  ;;  %v280_v26 = vmax.f32 %v271_v18, 0.0  ;;  %v281_v27 = vmax.f32 %v272_v19, 0.0 }
  0x16   : > { %v276_v29 = vmax.f32 %v267_v20, 0.0  ;;  %v277_v30 = vmax.f32 %v268_v21, 0.0  ;;  %v282_v31 = vmax.f32 %v273_v22, 0.0  ;;  %v269_v42 = vmul.f32 %v1183_v23, %v1125_v3 }
  0x17   : > { %v283_v33 = vmin.f32 %v274_v24, 6.0  ;;  %v284_v34 = vmin.f32 %v275_v25, 6.0  ;;  %v289_v35 = vmin.f32 %v280_v26, 6.0  ;;  %v290_v36 = vmin.f32 %v281_v27, 6.0 }
  0x18   : > { %v285_v43 = vmin.f32 %v276_v29, 6.0  ;;  %v286_v44 = vmin.f32 %v277_v30, 6.0  ;;  %v291_v45 = vmin.f32 %v282_v31, 6.0  ;;  %v270_v46 = vmul.f32 %v1184_v32, %v1125_v3 }
  0x19   : > { %v292_v38 = vpack.c.bf16 %v284_v34, %v283_v33  ;;  %v295_v39 = vpack.c.bf16 %v290_v36, %v289_v35  ;;  %v278_v49 = vmax.f32 %v269_v42, 0.0  ;;  %v659_v3 = vadd.s32 32, %v1429_v55 }
  0x1a   : > { %v293_v47 = vpack.c.bf16 %v286_v44, %v285_v43  ;;  %v296_v48 = vpack.c.bf16 %v291_v45, %v291_v45  ;;  %v279_v50 = vmax.f32 %v270_v46, 0.0  ;;  %v672_v4 = vsub.s32 %v1429_v55, %v671_v61 }
  0x1b   : > { %1213 = vmatmul.mubr.msk.bf16.vlgmr.msra.gmra.mrb[0].mxu0 %vm300_vm2, %v292_v38  ;;  %1225 = vmatmul.mubr.msk.bf16.vlgmr.msra.gmra.mrb[0].mxu1 %vm300_vm2, %v295_v39  ;;  %v287_v51 = vmin.f32 %v278_v49, 6.0  ;;  %v1447_v5 = vmul.u32.u64.low 3817748708, %v658_v62  ;;  %v1448_v6 = vmul.u32.u64.high 3817748708, %v658_v62, %v1447_v5  ;;  %v660_v9 = vadd.s32 40, %v1429_v55 }
  0x1c   : > { %1255 = vmatpush3.bf16.msra.mxu0 %v491_v40  ;;  %1216 = vmatprep.mubr.msk.bf16.mxu0 %vm1315_vm1, %v1314_v1  ;;  %v288_v52 = vmin.f32 %v279_v50, 6.0  ;;  %v1450_v7 = vmul.u32.u64.low 3817748708, %v659_v3  ;;  %v1451_v8 = vmul.u32.u64.high 3817748708, %v659_v3, %v1450_v7  ;;  %vm763_vm3 = vcmp.ne.s32.totalorder %v672_v4, 0 }
  0x1d   : > { %1228 = vmatprep.mubr.msk.bf16.mxu1 %vm1315_vm1, %v1314_v1  ;;  %1233 = vmatpush3.bf16.msra.mxu1 %v414_v41  ;;  %vm772_vm4 = vcmp.lt.s32.totalorder %v672_v4, 0  ;;  %v681_v10 = vshrl.u32 %v1440_v0, 4  ;;  %v661_v11 = vadd.s32 48, %v1429_v55  ;;  %v790_v12 = vadd.s32 18, %v672_v4 }
  0x1e   : > { %v294_v53 = vpack.c.bf16 %v288_v52, %v287_v51  ;;  %vm781_vm5 = vmand %vm772_vm4, %vm763_vm3  ;;  %v1457_v14 = vmul.u32.u64.low 3817748708, %v660_v9  ;;  %v1458_v15 = vmul.u32.u64.high 3817748708, %v660_v9, %v1457_v14  ;;  %v703_v16 = vshrl.u32 %v1448_v6, 4 }
  0x1f   : > { %v682_v17 = vmul.u32 18, %v681_v10  ;;  %v1461_v18 = vmul.u32.u64.low 3817748708, %v661_v11  ;;  %v1462_v19 = vmul.u32.u64.high 3817748708, %v661_v11, %v1461_v18  ;;  %v1464_v20 = vsel %vm781_vm5, %v790_v12, %v672_v4 }
  0x20   : > { %v714_v22 = vshrl.u32 %v1451_v8, 4  ;;  %v704_v23 = vmul.u32 18, %v703_v16  ;;  %v818_v24 = vsub.s32 0, %v1464_v20  ;;  %v725_v28 = vshrl.u32 %v1458_v15, 4 }
  0x21   : > { %v683_v25 = vsub.s32 %v656_v59, %v682_v17  ;;  %v736_v31 = vshrl.u32 %v1462_v19, 4  ;;  %v1474_v33 = vadd.s32 56, %v1429_v55  ;;  %v1477_v35 = vadd.s32 64, %v1429_v55 }
  0x22   : > { %v715_v27 = vmul.u32 18, %v714_v22  ;;  %v705_v29 = vsub.s32 %v658_v62, %v704_v23  ;;  %v1470_v30 = vmin.u32 %v818_v24, %v1464_v20  ;;  %v726_v34 = vmul.u32 18, %v725_v28 }
  0x23   : > { %1217 = vmatmul.mubr.msk.bf16.gmra.mrb[4].mxu0 %vm300_vm2, %v293_v47  ;;  %1229 = vmatmul.mubr.msk.bf16.gmra.mrb[4].mxu1 %vm300_vm2, %v296_v48  ;;  %vm764_vm6 = vcmp.ne.s32.totalorder %v683_v25, 0  ;;  %vm773_vm7 = vcmp.lt.s32.totalorder %v683_v25, 0  ;;  %v791_v36 = vadd.s32 18, %v683_v25  ;;  %vm817_vm3 = vcmp.lt.s32.totalorder %v1464_v20, 0 }
  0x24   : > { %1220 = vmatprep.mubr.msk.bf16.mxu0 %vm1315_vm1, %v1314_v1  ;;  %1234 = vmatprep.mubr.msk.bf16.mxu1 %vm1315_vm1, %v1314_v1  ;;  %v716_v32 = vsub.s32 %v659_v3, %v715_v27  ;;  %vm782_vm10 = vmand %vm773_vm7, %vm764_vm6  ;;  %vm766_vm11 = vcmp.ne.s32.totalorder %v705_v29, 0  ;;  %vm775_vm12 = vcmp.lt.s32.totalorder %v705_v29, 0  ;;  %v793_v40 = vadd.s32 18, %v705_v29 }
  0x25   : > { %v1481_v41 = vmul.u32.u64.low 3817748708, %v1474_v33  ;;  %v1482_v42 = vmul.u32.u64.high 3817748708, %v1474_v33, %v1481_v41  ;;  %vm784_vm15 = vmand %vm775_vm12, %vm766_vm11  ;;  %v727_v43 = vsub.s32 %v660_v9, %v726_v34  ;;  %v1488_v46 = vsel %vm782_vm10, %v791_v36, %v683_v25 }
  0x26   : > { %vm767_vm14 = vcmp.ne.s32.totalorder %v716_v32, 0  ;;  %vm776_vm0 = vcmp.lt.s32.totalorder %v716_v32, 0  ;;  %v1485_v44 = vmul.u32.u64.low 3817748708, %v1477_v35  ;;  %v1486_v45 = vmul.u32.u64.high 3817748708, %v1477_v35, %v1485_v44 }
  0x27   : > { %v794_v50 = vadd.s32 18, %v716_v32  ;;  %v1498_v57 = vsel %vm784_vm15, %v793_v40, %v705_v29  ;;  %v825_v61 = vsub.s32 0, %v1488_v46  ;;  %vm768_vm4 = vcmp.ne.s32.totalorder %v727_v43, 0 }
  0x28   : > { %vm777_vm5 = vcmp.lt.s32.totalorder %v727_v43, 0  ;;  %v839_v4 = vsub.s32 0, %v1498_v57  ;;  %v795_v8 = vadd.s32 18, %v727_v43  ;;  %v747_v9 = vshrl.u32 %v1482_v42, 4 }
  0x29   : > { %v1154_v10 = vmin.u32 %v825_v61, %v1488_v46  ;;  %vm824_vm12 = vcmp.lt.s32.totalorder %v1488_v46, 0 }
  0x2a   : > { %v1539_v18 = vmin.u32 %v839_v4, %v1498_v57 }
  0x2b   : > { %1221 = vmatmul.mubr.msk.bf16.gmra.mrb[8].mxu0 %vm300_vm2, %v294_v53  ;;  %1235 = vmatmul.mubr.msk.bf16.vlgmr.msra.gmra.mrb[8].mxu1 %vm300_vm2, %v292_v38  ;;  %v828_v29 = vand.u32 1, %v1154_v10 }
  0x2c   : > { %1238 = vmatprep.mubr.msk.bf16.mxu1 %vm1315_vm1, %v1314_v1  ;;  %1256 = vmatprep.mubr.msk.bf16.mxu0 %vm1315_vm1, %v1314_v1  ;;  %v842_v41 = vand.u32 1, %v1539_v18 }
  0x33   : > { %1239 = vmatmul.mubr.msk.bf16.gmra.mrb[12].mxu1 %vm300_vm2, %v293_v47  ;;  %1257 = vmatmul.mubr.msk.bf16.vlgmr.msra.gmra.mrb[12].mxu0 %vm300_vm2, %v292_v38  ;;  %v821_v38 = vand.u32 1, %v1470_v30 }
  0x34   : > { %1242 = vmatprep.mubr.msk.bf16.mxu1 %vm1315_vm1, %v1314_v1  ;;  %1260 = vmatprep.mubr.msk.bf16.mxu0 %vm1315_vm1, %v1314_v1 }
  0x35   : > { %v822_v56 = vsub.s32 0, %v821_v38 }
  0x37   : > { %v1536_v17 = vsel %vm817_vm3, %v822_v56, %v821_v38  ;;  %vm574_vm3 = vcmp.lt.s32.totalorder %v1429_v55, 6 }
  0x38   : > { %vm880_vm10 = vcmp.ne.s32.totalorder %v1536_v17, 0  ;;  %vm889_vm11 = vcmp.lt.s32.totalorder %v1536_v17, 0 }
  0x39   : > { %vm1587_vm15 = vmand %vm889_vm11, %vm880_vm10 }
  0x3b   : > { %1243 = vmatmul.mubr.msk.bf16.gmra.mrb[16].mxu1 %vm300_vm2, %v294_v53  ;;  %1261 = vmatmul.mubr.msk.bf16.gmra.mrb[16].mxu0 %vm300_vm2, %v293_v47 }
  0x3c   : > { %1246 = vmatprep.mubr.msk.bf16.mxu1 %vm1315_vm1, %v1314_v1  ;;  %1264 = vmatprep.mubr.msk.bf16.mxu0 %vm1315_vm1, %v1314_v1 }
  0x43   : > { %1247 = vmatmul.mubr.msk.bf16.gmra.mrb[20].mxu1 %vm300_vm2, %v295_v39  ;;  %1265 = vmatmul.mubr.msk.bf16.gmra.mrb[20].mxu0 %vm300_vm2, %v294_v53 }
  0x44   : > { %1250 = vmatprep.mubr.msk.bf16.mxu1 %vm1315_vm1, %v1314_v1  ;;  %1268 = vmatprep.mubr.msk.bf16.mxu0 %vm1315_vm1, %v1314_v1 }
  0x4b   : > { %1251 = vmatmul.mubr.msk.bf16.gmra.mrb[24].mxu1 %vm300_vm2, %v296_v48  ;;  %1269 = vmatmul.mubr.msk.bf16.gmra.mrb[24].mxu0 %vm300_vm2, %v295_v39  ;;  %v737_v39 = vmul.u32 18, %v736_v31 }
  0x4c   : > { %1272 = vmatprep.mubr.msk.bf16.mxu0 %vm1315_vm1, %v1314_v1  ;;  %v1442_v1 = vmul.u32.u64.low 3817748708, %v657_v60  ;;  %v1443_v2 = vmul.u32.u64.high 3817748708, %v657_v60, %v1442_v1  ;;  %vm403_vm1 = vcmp.lt.s32.totalorder %v1429_v55, 7 }
  0x4d   : > { %v738_v51 = vsub.s32 %v661_v11, %v737_v39 }
  0x4e   : > { %v692_v13 = vshrl.u32 %v1443_v2, 4 }
  0x4f   : > { %vm769_vm6 = vcmp.ne.s32.totalorder %v738_v51, 0  ;;  %vm778_vm7 = vcmp.lt.s32.totalorder %v738_v51, 0  ;;  %v796_v12 = vadd.s32 18, %v738_v51 }
  0x50   : > { %v693_v21 = vmul.u32 18, %v692_v13  ;;  %v758_v13 = vshrl.u32 %v1486_v45, 4 }
  0x52   : > { %v694_v26 = vsub.s32 %v657_v60, %v693_v21 }
  0x53   : > { %1273 = vmatmul.mubr.msk.bf16.gmra.mrb[28].mxu0 %vm300_vm2, %v296_v48  ;;  %vm1502_vm2 = vmand %vm776_vm0, %vm767_vm14  ;;  %vm838_vm14 = vcmp.lt.s32.totalorder %v1498_v57, 0 }
  0x54   : > { %vm765_vm8 = vcmp.ne.s32.totalorder %v694_v26, 0  ;;  %vm774_vm9 = vcmp.lt.s32.totalorder %v694_v26, 0  ;;  %v792_v37 = vadd.s32 18, %v694_v26  ;;  %v1513_v5 = vsel %vm1502_vm2, %v794_v50, %v716_v32 }
  0x55   : > { %vm783_vm13 = vmand %vm774_vm9, %vm765_vm8  ;;  %v846_v19 = vsub.s32 0, %v1513_v5  ;;  %v759_v32 = vmul.u32 18, %v758_v13  ;;  %vm845_vm10 = vcmp.lt.s32.totalorder %v1513_v5, 0 }
  0x56   : > { %v1490_v47 = vsel %vm783_vm13, %v792_v37, %v694_v26  ;;  %vm786_vm8 = vmand %vm777_vm5, %vm768_vm4  ;;  %v748_v26 = vmul.u32 18, %v747_v9 }
  0x57   : > { %v832_v62 = vsub.s32 0, %v1490_v47  ;;  %vm1530_vm9 = vmand %vm778_vm7, %vm769_vm6  ;;  %v1542_v25 = vsel %vm786_vm8, %v795_v8, %v727_v43  ;;  %v1561_v42 = vmin.u32 %v846_v19, %v1513_v5  ;;  %vm831_vm13 = vcmp.lt.s32.totalorder %v1490_v47, 0 }
  0x58   : > { %v1547_v31 = vsel %vm1530_vm9, %v796_v12, %v738_v51  ;;  %v853_v43 = vsub.s32 0, %v1542_v25  ;;  %v749_v45 = vsub.s32 %v1474_v33, %v748_v26  ;;  %v1571_v51 = vsub.s32 %v1477_v35, %v759_v32 }
  0x59   : > { %v1526_v11 = vmin.u32 %v832_v62, %v1490_v47  ;;  %v860_v50 = vsub.s32 0, %v1547_v31  ;;  %v843_v33 = vsub.s32 0, %v842_v41  ;;  %vm808_vm7 = vcmp.le.s32.totalorder %v1464_v20, 14 }
  0x5a   : > { %vm770_vm0 = vcmp.ne.s32.totalorder %v749_v45, 0  ;;  %vm779_vm2 = vcmp.lt.s32.totalorder %v749_v45, 0  ;;  %vm771_vm4 = vcmp.ne.s32.totalorder %v1571_v51, 0  ;;  %vm780_vm5 = vcmp.lt.s32.totalorder %v1571_v51, 0 }
  0x5b   : > { %v835_v30 = vand.u32 1, %v1526_v11  ;;  %v1597_v4 = vmin.u32 %v860_v50, %v1547_v31  ;;  %v797_v12 = vadd.s32 18, %v749_v45  ;;  %vm788_vm6 = vmand %vm779_vm2, %vm770_vm0  ;;  %vm852_vm2 = vcmp.lt.s32.totalorder %v1542_v25, 0 }
  0x5c   : > { %vm1639_vm11 = vmand %vm780_vm5, %vm771_vm4  ;;  %vm859_vm5 = vcmp.lt.s32.totalorder %v1547_v31, 0 }
  0xee   : > { %v1492_v48 = vpop.f32.mrb[0].mxu0  ;;  %v1494_v49 = vpop.f32.mrb[0].mxu1 }
  0xef   : > { %v1214_v52 = vpop.f32.mrb[1].mxu0  ;;  %v398_v53 = vrot.slane %v1494_v49, 1  ;;  %v1226_v54 = vpop.f32.mrb[1].mxu1  ;;  %v392_v63 = vrot.slane %v1492_v48, 1  ;;  %v829_v48 = vsub.s32 0, %v828_v29 }
  0xf0   : > { %v357_v59 = vpop.f32.mrb[2].mxu0  ;;  %v381_v60 = vpop.f32.mrb[2].mxu1  ;;  %v907_v52 = vadd.s32 2, %v1536_v17  ;;  %v836_v54 = vsub.s32 0, %v835_v30 }
  0xf1   : > { %v393_v0 = vrot.slane %v357_v59, 1  ;;  %v1215_v1 = vpop.f32.mrb[3].mxu0  ;;  %v399_v2 = vrot.slane %v381_v60, 1  ;;  %v1227_v3 = vpop.f32.mrb[3].mxu1  ;;  %v849_v59 = vand.u32 1, %v1561_v42  ;;  %v1579_v60 = vmin.u32 %v853_v43, %v1542_v25 }
  0xf2   : > { %v1594_v3 = vsel %vm824_vm12, %v829_v48, %v828_v29  ;;  %v916_v13 = vsel %vm1587_vm15, %v907_v52, %v1536_v17  ;;  %v1610_v14 = vsel %vm831_vm13, %v836_v54, %v835_v30 }
  0xf3   : > { %v411_v6 = vsel %vm403_vm1, %v392_v63, %v393_v0  ;;  %v1521_v7 = vsel %vm403_vm1, %v398_v53, %v399_v2  ;;  %v856_v19 = vand.u32 1, %v1579_v60  ;;  %vm881_vm8 = vcmp.ne.s32.totalorder %v1594_v3, 0 }
  0xf4   : > { %vm890_vm9 = vcmp.lt.s32.totalorder %v1594_v3, 0  ;;  %vm882_vm12 = vcmp.ne.s32.totalorder %v1610_v14, 0  ;;  %vm891_vm13 = vcmp.lt.s32.totalorder %v1610_v14, 0 }
  0xf5   : > { %vm1665_vm0 = vmand %vm890_vm9, %vm881_vm8 }
  0xf6   : > { %v362_v15 = vpop.f32.mrb[4].mxu0  ;;  %v386_v16 = vpop.f32.mrb[4].mxu1  ;;  %vm1690_vm4 = vmand %vm891_vm13, %vm882_vm12  ;;  %vm809_vm12 = vcmp.le.s32.totalorder %v1488_v46, 14 }
  0xf7   : > { %v394_v21 = vrot.slane %v362_v15, 1  ;;  %v400_v22 = vrot.slane %v386_v16, 1  ;;  %v1218_v23 = vpop.f32.mrb[5].mxu0  ;;  %v1230_v24 = vpop.f32.mrb[5].mxu1  ;;  %v1614_v15 = vsel %vm838_vm14, %v843_v33, %v842_v41  ;;  %v850_v16 = vsub.s32 0, %v849_v59 }
  0xf8   : > { %v365_v27 = vpop.f32.mrb[6].mxu0  ;;  %v389_v28 = vpop.f32.mrb[6].mxu1  ;;  %v908_v23 = vadd.s32 2, %v1594_v3  ;;  %v1649_v24 = vsel %vm788_vm6, %v797_v12, %v749_v45  ;;  %vm883_vm14 = vcmp.ne.s32.totalorder %v1614_v15, 0  ;;  %vm892_vm15 = vcmp.lt.s32.totalorder %v1614_v15, 0 }
  0xf9   : > { %v395_v34 = vrot.slane %v365_v27, 1  ;;  %v1219_v36 = vpop.f32.mrb[7].mxu0  ;;  %v1231_v37 = vpop.f32.mrb[7].mxu1  ;;  %v410_v38 = vsel %vm403_vm1, %v393_v0, %v394_v21  ;;  %v1553_v39 = vsel %vm403_vm1, %v399_v2, %v400_v22  ;;  %v1557_v40 = vsel %vm403_vm1, %v400_v22, %v392_v63  ;;  %vm1702_vm6 = vmand %vm892_vm15, %vm883_vm14 }
  0xfa   : > { %v863_v22 = vand.u32 1, %v1597_v4  ;;  %v1655_v28 = vadd.s32 2, %v1610_v14  ;;  %v1671_v36 = vsel %vm845_vm10, %v850_v16, %v849_v59  ;;  %v857_v37 = vsub.s32 0, %v856_v19 }
  0xfb   : > { %v409_v44 = vsel %vm403_vm1, %v394_v21, %v395_v34  ;;  %v798_v21 = vadd.s32 18, %v1571_v51  ;;  %v1679_v43 = vadd.s32 2, %v1614_v15  ;;  %v867_v45 = vsub.s32 0, %v1649_v24 }
  0xfc   : > { %vm884_vm8 = vcmp.ne.s32.totalorder %v1671_v36, 0  ;;  %vm893_vm9 = vcmp.lt.s32.totalorder %v1671_v36, 0  ;;  %vm646_vm10 = vcmask 11264   ;;  %v911_v0 = vadd.s32 2, %v1671_v36 }
  0xfd   : > { %v918_v4 = vsel %vm1690_vm4, %v1655_v28, %v1610_v14  ;;  %vm1746_vm14 = vmand %vm893_vm9, %vm884_vm8 }
  0xfe   : > { %v370_v56 = vpop.f32.mrb[8].mxu0  ;;  %v450_v58 = vpop.f32.mrb[8].mxu1  ;;  %v920_v49 = vsel %vm1746_vm14, %v911_v0, %v1671_v36  ;;  %vm1823_vm9 = vcmp.eq.s32.totalorder %v918_v4, 0  ;;  %vm811_vm14 = vcmp.le.s32.totalorder %v1498_v57, 14 }
  0xff   : > { %v396_v61 = vrot.slane %v370_v56, 1  ;;  %v1581_v35 = vadd.f32 %v450_v58, %v411_v6  ;;  %v1222_v62 = vpop.f32.mrb[9].mxu0  ;;  %v1236_v63 = vpop.f32.mrb[9].mxu1  ;;  %v917_v58 = vsel %vm1665_vm0, %v908_v23, %v1594_v3 }
 0x100   : > { %v373_v1 = vpop.f32.mrb[10].mxu0  ;;  %v453_v2 = vpop.f32.mrb[10].mxu1  ;;  %v1720_v62 = vsel %vm852_vm2, %v857_v37, %v856_v19  ;;  %vm1730_vm13 = vcmp.eq.s32.totalorder %v917_v58, 0 }
 0x101   : > { %v397_v6 = vrot.slane %v373_v1, 1  ;;  %v1601_v8 = vadd.f32 %v453_v2, %v410_v38  ;;  %v1223_v9 = vpop.f32.mrb[11].mxu0  ;;  %v1237_v10 = vpop.f32.mrb[11].mxu1  ;;  %v408_v11 = vsel %vm403_vm1, %v395_v34, %v396_v61  ;;  %v1676_v38 = vsel %vm1639_vm11, %v798_v21, %v1571_v51  ;;  %vm1819_vm8 = vmand %vm809_vm12, %vm1730_vm13 }
 0x102   : > { %v874_v59 = vsub.s32 0, %v1676_v38  ;;  %vm970_vm11 = vcmask 15360   ;;  %v1727_v2 = vmin.u32 %v867_v45, %v1649_v24  ;;  %vm885_vm0 = vcmp.ne.s32.totalorder %v1720_v62, 0 }
 0x103   : > { %v1621_v18 = vsel %vm403_vm1, %v396_v61, %v397_v6  ;;  %v1627_v17 = vsel %vm403_vm1, %v397_v6, %v398_v53  ;;  %vm1643_vm1 = vcmp.eq.s32.totalorder %v916_v13, 0  ;;  %v1716_v61 = vld [vmem:[%s2035_s3] ss:$0 sm:$0xff]  ;;  %vm894_vm2 = vcmp.lt.s32.totalorder %v1720_v62, 0 }
 0x104   : > { %vm1755_vm15 = vmand %vm808_vm7, %vm1643_vm1  ;;  %v1762_v13 = vmin.u32 %v874_v59, %v1676_v38  ;;  %v1782_v53 = vadd.s32 2, %v1720_v62  ;;  %vm812_vm12 = vcmp.le.s32.totalorder %v1513_v5, 14  ;;  %vm1837_vm13 = vcmp.eq.s32.totalorder %v920_v49, 0 }
 0x105   : > { %vm1796_vm4 = vmand %vm894_vm2, %vm885_vm0  ;;  %vm866_vm0 = vcmp.lt.s32.totalorder %v1649_v24, 0  ;;  %vm873_vm2 = vcmp.lt.s32.totalorder %v1676_v38, 0 }
 0x106   : > { %v458_v26 = vpop.f32.mrb[12].mxu1  ;;  %v1651_v27 = vpop.f32.mrb[12].mxu0  ;;  %v921_v58 = vsel %vm1796_vm4, %v1782_v53, %v1720_v62 }
 0x107   : > { %v1659_v29 = vadd.f32 %v458_v26, %v409_v44  ;;  %v1240_v30 = vpop.f32.mrb[13].mxu1  ;;  %v1258_v32 = vpop.f32.mrb[13].mxu0  ;;  %v864_v44 = vsub.s32 0, %v863_v22  ;;  %v565_v48 = vrot.slane %v1651_v27, 2 }
 0x108   : > { %v461_v41 = vpop.f32.mrb[14].mxu1  ;;  %v530_v42 = vpop.f32.mrb[14].mxu0 }
 0x109   : > { %v1684_v50 = vadd.f32 %v461_v41, %v408_v11  ;;  %v566_v52 = vrot.slane %v530_v42, 2  ;;  %v1259_v54 = vpop.f32.mrb[15].mxu0  ;;  %v1241_v56 = vpop.f32.mrb[15].mxu1  ;;  %v1724_v1 = vsel %vm859_vm5, %v864_v44, %v863_v22  ;;  %vm810_vm5 = vcmp.le.s32.totalorder %v1490_v47, 14 }
 0x10a   : > { %vm886_vm7 = vcmp.ne.s32.totalorder %v1724_v1, 0  ;;  %vm895_vm1 = vcmp.lt.s32.totalorder %v1724_v1, 0  ;;  %v913_v36 = vadd.s32 2, %v1724_v1  ;;  %v877_v42 = vand.u32 1, %v1762_v13 }
 0x10b   : > { %v582_v60 = vsel %vm574_vm3, %v565_v48, %v566_v52 }
 0x10c   : > { %v584_v63 = vadd.f32 %v582_v60, %v1581_v35  ;;  %v919_v35 = vsel %vm1702_vm6, %v1679_v43, %v1614_v15  ;;  %vm1810_vm6 = vmand %vm895_vm1, %vm886_vm7  ;;  %vm813_vm1 = vcmp.le.s32.totalorder %v1542_v25, 14 }
 0x10d   : > { %v922_v33 = vsel %vm1810_vm6, %v913_v36, %v1724_v1  ;;  %vm1857_vm7 = vmand %vm810_vm5, %vm1823_vm9  ;;  %v878_v1 = vsub.s32 0, %v877_v42  ;;  %vm1895_vm5 = vcmp.eq.s32.totalorder %v921_v58, 0  ;;  %vm814_vm6 = vcmp.le.s32.totalorder %v1547_v31, 14 }
 0x10e   : > { %v600_v9 = vadd.f32 %v1716_v61, %v584_v63  ;;  %v466_v11 = vpop.f32.mrb[16].mxu1  ;;  %v535_v12 = vpop.f32.mrb[16].mxu0 }
 0x10f   : > { %v1772_v20 = vadd.f32 %v466_v11, %v1621_v18  ;;  %v567_v14 = vrot.slane %v535_v12, 2  ;;  %v1244_v15 = vpop.f32.mrb[17].mxu1  ;;  %v1262_v16 = vpop.f32.mrb[17].mxu0  ;;  %v870_v18 = vand.u32 1, %v1727_v2  ;;  %v1888_v34 = vsel %vm873_vm2, %v878_v1, %v877_v42  ;;  %vm1916_vm2 = vmand %vm812_vm12, %vm1837_vm13 }
 0x110   : > { %v1164_v19 = vpack.c.bf16 %v600_v9, %v600_v9  ;;  %v469_v21 = vpop.f32.mrb[18].mxu1  ;;  %v1776_v22 = vpop.f32.mrb[18].mxu0  ;;  %v961_v23 = vsel %vm1755_vm15, %v600_v9, 0.0  ;;  %vm1828_vm15 = vcmp.eq.s32.totalorder %v919_v35, 0 }
 0x111   : > { %v581_v26 = vsel %vm574_vm3, %v566_v52, %v567_v14  ;;  %v1790_v28 = vadd.f32 %v469_v21, %v1627_v17  ;;  %v1263_v30 = vpop.f32.mrb[19].mxu0  ;;  %v1245_v32 = vpop.f32.mrb[19].mxu1  ;;  %v568_v41 = vrot.slane %v1776_v22, 2  ;;  %v994_v45 = vmul.f32 %v961_v23, %v961_v23  ;;  %vm937_vm4 = vmand %vm811_vm14, %vm1828_vm15 }
 0x112   : > { %647 = vst.msk [vmem:[%s1769_s12] sm:$0xf] %vm646_vm10, %v1164_v19  ;;  %v585_v37 = vadd.f32 %v581_v26, %v1601_v8  ;;  %v871_v56 = vsub.s32 0, %v870_v18  ;;  %v971_v59 = vsel %vm970_vm11, %v961_v23, 0.0  ;;  %vm888_vm14 = vcmp.ne.s32.totalorder %v1888_v34, 0 }
 0x113   : > { %v580_v46 = vsel %vm574_vm3, %v567_v14, %v568_v41  ;;  %v1003_v10 = vsel %vm970_vm11, %v994_v45, 0.0 }
 0x114   : > { %v601_v52 = vadd.f32 %v1716_v61, %v585_v37  ;;  %v586_v51 = vadd.f32 %v580_v46, %v1659_v29  ;;  %v1872_v14 = vsel %vm866_vm0, %v871_v56, %v870_v18  ;;  %vm897_vm0 = vcmp.lt.s32.totalorder %v1888_v34, 0 }
 0x115   : > { %vm887_vm9 = vcmp.ne.s32.totalorder %v1872_v14, 0  ;;  %vm896_vm15 = vcmp.lt.s32.totalorder %v1872_v14, 0  ;;  %v914_v54 = vadd.s32 2, %v1872_v14  ;;  %vm1947_vm13 = vmand %vm897_vm0, %vm888_vm14 }
 0x116   : > { %v1165_v60 = vpack.c.bf16 %v601_v52, %v601_v52  ;;  %v962_v63 = vsel %vm1819_vm8, %v601_v52, 0.0  ;;  %v474_v62 = vpop.f32.mrb[20].mxu1  ;;  %v543_v0 = vpop.f32.mrb[20].mxu0  ;;  %v602_v4 = vadd.f32 %v1716_v61, %v586_v51  ;;  %vm1900_vm8 = vcmp.eq.s32.totalorder %v922_v33, 0  ;;  %vm1934_vm12 = vmand %vm896_vm15, %vm887_vm9 }
 0x117   : > { %v972_v2 = vsel %vm970_vm11, %v962_v63, 0.0  ;;  %v995_v3 = vmul.f32 %v962_v63, %v962_v63  ;;  %v1864_v35 = vadd.f32 %v474_v62, %v1521_v7  ;;  %v1248_v6 = vpop.f32.mrb[21].mxu1  ;;  %v1266_v9 = vpop.f32.mrb[21].mxu0  ;;  %v569_v11 = vrot.slane %v543_v0, 2 }
 0x118   : > { %648 = vst.msk [vmem:[%s1769_s12 + $0x4] sm:$0xf] %vm646_vm10, %v1165_v60  ;;  %v973_v47 = vadd.f32 %v972_v2, %v971_v59  ;;  %v477_v12 = vpop.f32.mrb[22].mxu1  ;;  %v546_v13 = vpop.f32.mrb[22].mxu0  ;;  %v1166_v15 = vpack.c.bf16 %v602_v4, %v602_v4  ;;  %v963_v16 = vsel %vm1857_vm7, %v602_v4, 0.0  ;;  %v915_v0 = vadd.s32 2, %v1888_v34  ;;  %vm939_vm7 = vmand %vm813_vm1, %vm1895_vm5 }
 0x119   : > { %v1004_v7 = vsel %vm970_vm11, %v995_v3, 0.0  ;;  %v1878_v19 = vadd.f32 %v477_v12, %v1553_v39  ;;  %v1267_v21 = vpop.f32.mrb[23].mxu0  ;;  %v1249_v22 = vpop.f32.mrb[23].mxu1  ;;  %v974_v53 = vsel %vm970_vm11, %v963_v16, 0.0  ;;  %v996_v23 = vmul.f32 %v963_v16, %v963_v16  ;;  %vm1970_vm1 = vmand %vm814_vm6, %vm1900_vm8 }
 0x11a   : > { %v1005_v49 = vadd.f32 %v1004_v7, %v1003_v10  ;;  %v579_v26 = vsel %vm574_vm3, %v568_v41, %v569_v11  ;;  %649 = vst.msk [vmem:[%s1769_s12 + $0x8] sm:$0xf] %vm646_vm10, %v1166_v15  ;;  %v975_v18 = vadd.f32 %v974_v53, %v973_v47  ;;  %v570_v32 = vrot.slane %v546_v13, 2 }
 0x11b   : > { %v587_v30 = vadd.f32 %v579_v26, %v1684_v50  ;;  %v1006_v39 = vsel %vm970_vm11, %v996_v23, 0.0  ;;  %v923_v15 = vsel %vm1934_vm12, %v914_v54, %v1872_v14  ;;  %vm816_vm5 = vcmp.le.s32.totalorder %v1676_v38, 14 }
 0x11c   : > { %v1007_v37 = vadd.f32 %v1006_v39, %v1005_v49  ;;  %v578_v17 = vsel %vm574_vm3, %v569_v11, %v570_v32  ;;  %vm1981_vm6 = vcmp.eq.s32.totalorder %v923_v15, 0 }
 0x11d   : > { %v603_v41 = vadd.f32 %v1716_v61, %v587_v30  ;;  %v588_v57 = vadd.f32 %v578_v17, %v1772_v20 }
 0x11e   : > { %v482_v42 = vpop.f32.mrb[24].mxu1  ;;  %v551_v8 = vpop.f32.mrb[24].mxu0 }
 0x11f   : > { %v1167_v43 = vpack.c.bf16 %v603_v41, %v603_v41  ;;  %v964_v44 = vsel %vm937_vm4, %v603_v41, 0.0  ;;  %v1921_v20 = vadd.f32 %v482_v42, %v1557_v40  ;;  %v571_v52 = vrot.slane %v551_v8, 2  ;;  %v1270_v46 = vpop.f32.mrb[25].mxu0  ;;  %v1252_v56 = vpop.f32.mrb[25].mxu1 }
 0x120   : > { %v976_v51 = vsel %vm970_vm11, %v964_v44, 0.0  ;;  %v997_v58 = vmul.f32 %v964_v44, %v964_v44  ;;  %v604_v33 = vadd.f32 %v1716_v61, %v588_v57  ;;  %v554_v59 = vpop.f32.mrb[26].mxu0  ;;  %v485_v60 = vpop.f32.mrb[26].mxu1  ;;  %vm815_vm4 = vcmp.le.s32.totalorder %v1649_v24, 14 }
 0x121   : > { %650 = vst.msk [vmem:[%s1769_s12 + $0xc] sm:$0xf] %vm646_vm10, %v1167_v43  ;;  %v977_v5 = vadd.f32 %v976_v51, %v975_v18  ;;  %v577_v63 = vsel %vm574_vm3, %v570_v32, %v571_v52  ;;  %v572_v40 = vrot.slane %v554_v59, 2  ;;  %v1271_v29 = vpop.f32.mrb[27].mxu0  ;;  %v1253_v1 = vpop.f32.mrb[27].mxu1  ;;  %vm941_vm9 = vmand %vm815_vm4, %vm1981_vm6 }
 0x122   : > { %v1008_v2 = vsel %vm970_vm11, %v997_v58, 0.0  ;;  %v1168_v3 = vpack.c.bf16 %v604_v33, %v604_v33  ;;  %v965_v4 = vsel %vm1916_vm2, %v604_v33, 0.0  ;;  %v589_v6 = vadd.f32 %v577_v63, %v1790_v28 }
 0x123   : > { %v1009_v10 = vadd.f32 %v1008_v2, %v1007_v37  ;;  %v978_v47 = vsel %vm970_vm11, %v965_v4, 0.0  ;;  %v998_v11 = vmul.f32 %v965_v4, %v965_v4  ;;  %v576_v28 = vsel %vm574_vm3, %v571_v52, %v572_v40 }
 0x124   : > { %651 = vst.msk [vmem:[%s1769_s12 + $0x10] sm:$0xf] %vm646_vm10, %v1168_v3  ;;  %v979_v12 = vadd.f32 %v978_v47, %v977_v5  ;;  %v605_v13 = vadd.f32 %v1716_v61, %v589_v6  ;;  %v590_v7 = vadd.f32 %v576_v28, %v1864_v35  ;;  %v924_v35 = vsel %vm1947_vm13, %v915_v0, %v1888_v34 }
 0x125   : > { %v1010_v16 = vsel %vm970_vm11, %v998_v11, 0.0  ;;  %vm1989_vm8 = vcmp.eq.s32.totalorder %v924_v35, 0 }
 0x126   : > { %v1011_v14 = vadd.f32 %v1010_v16, %v1009_v10  ;;  %v1169_v21 = vpack.c.bf16 %v605_v13, %v605_v13  ;;  %v966_v22 = vsel %vm939_vm7, %v605_v13, 0.0  ;;  %v606_v49 = vadd.f32 %v1716_v61, %v590_v7  ;;  %v559_v53 = vpop.f32.mrb[28].mxu0 }
 0x127   : > { %v980_v31 = vsel %vm970_vm11, %v966_v22, 0.0  ;;  %v999_v23 = vmul.f32 %v966_v22, %v966_v22  ;;  %v573_v26 = vrot.slane %v559_v53, 2  ;;  %v1274_v30 = vpop.f32.mrb[29].mxu0 }
 0x128   : > { %652 = vst.msk [vmem:[%s1769_s12 + $0x14] sm:$0xf] %vm646_vm10, %v1169_v21  ;;  %v981_v32 = vadd.f32 %v980_v31, %v979_v12  ;;  %v1170_v34 = vpack.c.bf16 %v606_v49, %v606_v49  ;;  %v967_v39 = vsel %vm1970_vm1, %v606_v49, 0.0  ;;  %v562_v50 = vpop.f32.mrb[30].mxu0 }
 0x129   : > { %v1012_v37 = vsel %vm970_vm11, %v999_v23, 0.0  ;;  %v982_v41 = vsel %vm970_vm11, %v967_v39, 0.0  ;;  %v1000_v17 = vmul.f32 %v967_v39, %v967_v39  ;;  %v575_v57 = vsel %vm574_vm3, %v572_v40, %v573_v26  ;;  %v1275_v42 = vpop.f32.mrb[31].mxu0 }
 0x12a   : > { %v1013_v8 = vadd.f32 %v1012_v37, %v1011_v14  ;;  %653 = vst.msk [vmem:[%s1769_s12 + $0x18] sm:$0xf] %vm646_vm10, %v1170_v34  ;;  %v983_v43 = vadd.f32 %v982_v41, %v981_v32  ;;  %v583_v44 = vsel %vm574_vm3, %v573_v26, %v565_v48  ;;  %v591_v45 = vadd.f32 %v575_v57, %v1878_v19  ;;  %vm942_vm3 = vmand %vm816_vm5, %vm1989_vm8 }
 0x12b   : > { %v1014_v52 = vsel %vm970_vm11, %v1000_v17, 0.0  ;;  %v592_v46 = vadd.f32 %v583_v44, %v1921_v20 }
 0x12c   : > { %v1015_v56 = vadd.f32 %v1014_v52, %v1013_v8  ;;  %v607_v51 = vadd.f32 %v1716_v61, %v591_v45 }
 0x12d   : > { %v608_v55 = vadd.f32 %v1716_v61, %v592_v46 }
 0x12e   : > { %v1171_v27 = vpack.c.bf16 %v607_v51, %v607_v51  ;;  %v968_v48 = vsel %vm941_vm9, %v607_v51, 0.0 }
 0x12f   : > { %v1172_v19 = vpack.c.bf16 %v608_v55, %v608_v55  ;;  %v969_v20 = vsel %vm942_vm3, %v608_v55, 0.0  ;;  %v984_v58 = vsel %vm970_vm11, %v968_v48, 0.0  ;;  %v1001_v33 = vmul.f32 %v968_v48, %v968_v48 }
 0x130   : > { %654 = vst.msk [vmem:[%s1769_s12 + $0x1c] sm:$0xf] %vm646_vm10, %v1171_v27  ;;  %v985_v24 = vadd.f32 %v984_v58, %v983_v43  ;;  %v1002_v59 = vmul.f32 %v969_v20, %v969_v20  ;;  %v986_v38 = vsel %vm970_vm11, %v969_v20, 0.0 }
 0x131   : > { %655 = vst.msk [vmem:[%s1769_s12 + $0x20] sm:$0xf] %vm646_vm10, %v1172_v19  ;;  %v1016_v54 = vsel %vm970_vm11, %v1001_v33, 0.0  ;;  %vm1026_vm10 = vcmask 1040384  }
 0x132   : > { %v987_v61 = vadd.f32 %v986_v38, %v985_v24  ;;  %v1017_v60 = vadd.f32 %v1016_v54, %v1015_v56  ;;  %v1018_v5 = vsel %vm970_vm11, %v1002_v59, 0.0  ;;  %vm1028_vm11 = vcmask 9216  }
 0x134   : > { %v988_v63 = vrot.slane %v987_v61, 4  ;;  %v1019_v40 = vadd.f32 %v1018_v5, %v1017_v60 }
 0x136   : > { %v989_v29 = vadd.f32 %v988_v63, %v987_v61  ;;  %v1020_v62 = vrot.slane %v1019_v40, 4 }
 0x138   : > { %v990_v0 = vrot.slane %v989_v29, 2  ;;  %v1021_v1 = vadd.f32 %v1020_v62, %v1019_v40 }
 0x13a   : > { %v991_v2 = vadd.f32 %v990_v0, %v989_v29  ;;  %v1022_v3 = vrot.slane %v1021_v1, 2 }
 0x13c   : > { %v992_v4 = vrot.slane %v991_v2, 1  ;;  %v1023_v6 = vadd.f32 %v1022_v3, %v1021_v1 }
 0x13e   : > { %v1024_v9 = vrot.slane %v1023_v6, 1  ;;  %v993_v10 = vadd.f32 %v992_v4, %v991_v2 }
 0x140   : > { %v1025_v47 = vadd.f32 %v1024_v9, %v1023_v6 }
 0x142   : > { %v1027_v11 = vsel %vm1026_vm10, %v993_v10, %v1025_v47 }
 0x143   : > { %1029 = vst.msk [vmem:[%s238_s16] sm:$0x3] %vm1028_vm11, %v1027_v11 }
 0x144 PF: > { %s16_s18 = sadd.s32 1, %s1312_s18  }
 0x145   : > { %p13_p5 = scmp.ge.s32.totalorder %s16_s18, 6  }
 0x147   :  { %15 = sbr.rel (!%p13_p5) target bundleno = 1 (0x1), region = 80 }

// kernel: _lambda_.10
= control target key start
LH: loop header
LB: loop body
LE: loop exit
PB: predicated region body
PF: predicated region fallthrough
CT: control target
= control target key end

     0   :  { %s701_s24 = smov 0   ;;  %s761_s0 = inlined_call_operand.vmem [shape: bf16[128,2], index: 0, kind: input, shape index: {}]   ;;  %s762_s1 = inlined_call_operand.vmem [shape: f32[1,2], index: 1, kind: input, shape index: {}]   ;;  %s763_s2 = inlined_call_operand.vmem [shape: f32[1,2], index: 2, kind: input, shape index: {}]   ;;  %s764_s3 = inlined_call_operand.vmem [shape: bf16[2,16], index: 3, kind: input, shape index: {}]   ;;  %s765_s4 = inlined_call_operand.vmem [shape: f32[1,16], index: 4, kind: input, shape index: {}]   ;;  %s766_s5 = inlined_call_operand.vmem [shape: bf16[128,16], index: 5, kind: input, shape index: {}]   ;;  %s767_s6 = inlined_call_operand.vmem [shape: bf16[128,16], index: 6, kind: output, shape index: {0}]   ;;  %s768_s7 = inlined_call_operand.vmem [shape: f32[4,2,16], index: 7, kind: output, shape index: {1}]  }
   0x1 LB: > { %s707_s25 = sadd.s32 4294967295, %s659_s24   ;;  %p594_p0 = scmp.ge.s32.totalorder %s659_s24, 1  ;;  %s659_s24 = sphi %s701_s24, %s18_s24  }
   0x2   : > { %p252_p1 = scmp.lt.s32.totalorder %s659_s24, 5 }
   0x4   : > { %p253_p2 = pnand %p594_p0, %p252_p1 }
   0x5   : > { %v356_v0 = vld [vmem:[%s764_s3] sm:$0x1] (!%p253_p2)  ;;  %vm371_vm0 = vcmask (!%p253_p2), 1040384   ;;  %s595_s28 = sshll.u32 (!%p253_p2), %s707_s25, 2  ;;  %vm364_vm1 = vcmask (!%p253_p2), 15360   ;;  %vm452_vm2 = vcmask (!%p253_p2), 125952  }
   0x6   : > { %256 = sbr.rel (%p253_p2) target bundleno = 272 (0x110), region = 44  ;;  %644 = vmatprep.subr.msk.bf16.mxu0 (!%p253_p2), %vm371_vm0, %v356_v0  ;;  %v373_v1 = vsel (!%p253_p2), %vm371_vm0, %v356_v0, 0  ;;  %p294_p3 = scmp.lt.s32.totalorder (!%p253_p2), %s595_s28, 15  ;;  %v602_v4 = vld [vmem:[%s762_s1] ss:$0 sm:$0xff] (!%p253_p2)  ;;  %vm457_vm3 = vcmask (!%p253_p2), 130048  }
   0x7   : > { %639 = vmatpush3.bf16.msra.mxu0 (!%p253_p2), %v373_v1  ;;  %v603_v9 = vld [vmem:[%s763_s2] ss:$0 sm:$0xff] (!%p253_p2)  ;;  %p311_p4 = scmp.lt.s32.totalorder (!%p253_p2), %s707_s25, 3  ;;  %vm489_vm4 = vcmask (!%p253_p2), 123904  }
   0x8   : > { %v604_v30 = vld [vmem:[%s765_s4] ss:$0 sm:$0xff] (!%p253_p2) }
   0xd   : > { %s770_s28 = smov (!%p294_p3, %s595_s28), 15  ;;  %s772_s25 = smov (!%p311_p4, %s707_s25), 3 }
   0xe   : > { %s717_s29 = sshll.u32 %s770_s28, 2  ;;  %s601_s22 = sshll.u32 %s772_s25, 1 }
   0xf   : > { %s297_s9 = scalar_lea.vmem %s761_s0, %s717_s29  ;;  %s303_s16 = scalar_lea.vmem %s766_s5, %s717_s29 }
  0x10   : > { %v618_v2 = vld [vmem:[%s297_s9] sm:$0xff]   ;;  %v633_v3 = vld [vmem:[%s297_s9 + $0x8] sm:$0xff]   ;;  %s309_s21 = scalar_lea.vmem %s767_s6, %s717_s29  ;;  %s314_s27 = scalar_lea.vmem %s768_s7, %s601_s22 }
  0x11   : > { %v619_v5 = vunpack.c.l.bf16 %v618_v2  ;;  %v620_v6 = vunpack.c.h.bf16 %v618_v2  ;;  %v623_v7 = vunpack.c.l.bf16 %v633_v3  ;;  %v624_v8 = vunpack.c.h.bf16 %v633_v3  ;;  %v634_v28 = vld [vmem:[%s303_s16 + $0x8] sm:$0xff]   ;;  %v626_v29 = vld [vmem:[%s303_s16] sm:$0xff]  }
  0x12   : > { %v631_v31 = vunpack.c.l.bf16 %v634_v28  ;;  %v627_v33 = vunpack.c.l.bf16 %v626_v29  ;;  %v632_v36 = vunpack.c.h.bf16 %v634_v28  ;;  %v628_v39 = vunpack.c.h.bf16 %v626_v29 }
  0x13   : > { %v331_v10 = vmul.f32 %v619_v5, %v602_v4  ;;  %v332_v11 = vmul.f32 %v620_v6, %v602_v4  ;;  %v333_v12 = vmul.f32 %v623_v7, %v602_v4  ;;  %v334_v13 = vmul.f32 %v624_v8, %v602_v4 }
  0x15   : > { %v342_v14 = vadd.f32 %v603_v9, %v331_v10  ;;  %v343_v15 = vadd.f32 %v603_v9, %v332_v11  ;;  %v344_v16 = vadd.f32 %v603_v9, %v333_v12  ;;  %v345_v17 = vadd.f32 %v603_v9, %v334_v13 }
  0x17   : > { %v346_v18 = vmax.f32 %v342_v14, 0.0  ;;  %v347_v19 = vmax.f32 %v343_v15, 0.0  ;;  %v348_v20 = vmax.f32 %v344_v16, 0.0  ;;  %v349_v21 = vmax.f32 %v345_v17, 0.0 }
  0x19   : > { %v350_v22 = vmin.f32 %v346_v18, 6.0  ;;  %v351_v23 = vmin.f32 %v347_v19, 6.0  ;;  %v352_v24 = vmin.f32 %v348_v20, 6.0  ;;  %v353_v25 = vmin.f32 %v349_v21, 6.0 }
  0x1b   : > { %v354_v26 = vpack.c.bf16 %v351_v23, %v350_v22  ;;  %v355_v27 = vpack.c.bf16 %v353_v25, %v352_v24 }
  0x1d   : > { %640 = vmatprep.mubr.msk.bf16.mxu0 %vm364_vm1, %v354_v26 }
  0x1e   : > { %641 = vmatmul.mubr.msk.bf16.vlgmr.msra.gmra.mrb[0].mxu0 %vm364_vm1, %v355_v27 }
  0xf1   : > { %v642_v32 = vpop.f32.mrb[0].mxu0 }
  0xf2   : > { %v418_v34 = vadd.f32 %v642_v32, %v604_v30  ;;  %v409_v35 = vpop.f32.mrb[1].mxu0 }
  0xf3   : > { %v410_v37 = vadd.f32 %v604_v30, %v409_v35  ;;  %v643_v38 = vpop.f32.mrb[2].mxu0 }
  0xf4   : > { %v434_v40 = vadd.f32 %v631_v31, %v418_v34  ;;  %v421_v41 = vadd.f32 %v643_v38, %v604_v30  ;;  %v412_v42 = vpop.f32.mrb[3].mxu0 }
  0xf5   : > { %v432_v43 = vadd.f32 %v627_v33, %v410_v37  ;;  %v413_v44 = vadd.f32 %v604_v30, %v412_v42 }
  0xf6   : > { %v615_v45 = vpack.c.bf16 %v434_v40, %v434_v40  ;;  %v435_v46 = vadd.f32 %v632_v36, %v421_v41  ;;  %v473_v50 = vmul.f32 %v434_v40, %v434_v40  ;;  %v461_v57 = vsel %vm457_vm3, %v434_v40, 0.0 }
  0xf7   : > { %v613_v47 = vpack.c.bf16 %v432_v43, %v432_v43  ;;  %v471_v48 = vmul.f32 %v432_v43, %v432_v43  ;;  %v433_v49 = vadd.f32 %v628_v39, %v413_v44  ;;  %v458_v52 = vsel %vm457_vm3, %v432_v43, 0.0 }
  0xf8   : > { %455 = vst.msk [vmem:[%s309_s21 + $0x8] sm:$0xf] %vm452_vm2, %v615_v45  ;;  %v616_v51 = vpack.c.bf16 %v435_v46, %v435_v46  ;;  %v474_v59 = vmul.f32 %v435_v46, %v435_v46  ;;  %v478_v63 = vsel %vm457_vm3, %v473_v50, 0.0  ;;  %v463_v0 = vsel %vm457_vm3, %v435_v46, 0.0 }
  0xf9   : > { %453 = vst.msk [vmem:[%s309_s21] sm:$0xf] %vm452_vm2, %v613_v47  ;;  %v614_v53 = vpack.c.bf16 %v433_v49, %v433_v49  ;;  %v459_v54 = vsel %vm457_vm3, %v433_v49, 0.0  ;;  %v472_v55 = vmul.f32 %v433_v49, %v433_v49  ;;  %v475_v58 = vsel %vm457_vm3, %v471_v48, 0.0 }
  0xfa   : > { %456 = vst.msk [vmem:[%s309_s21 + $0xc] sm:$0xf] %vm452_vm2, %v616_v51  ;;  %v460_v56 = vadd.f32 %v459_v54, %v458_v52  ;;  %v480_v3 = vsel %vm457_vm3, %v474_v59, 0.0 }
  0xfb   : > { %454 = vst.msk [vmem:[%s309_s21 + $0x4] sm:$0xf] %vm452_vm2, %v614_v53  ;;  %v476_v60 = vsel %vm457_vm3, %v472_v55, 0.0 }
  0xfc   : > { %v462_v61 = vadd.f32 %v461_v57, %v460_v56  ;;  %v477_v62 = vadd.f32 %v476_v60, %v475_v58 }
  0xfe   : > { %v464_v1 = vadd.f32 %v463_v0, %v462_v61  ;;  %v479_v2 = vadd.f32 %v478_v63, %v477_v62 }
 0x100   : > { %v465_v4 = vrot.slane %v464_v1, 4  ;;  %v481_v5 = vadd.f32 %v480_v3, %v479_v2 }
 0x102   : > { %v466_v6 = vadd.f32 %v465_v4, %v464_v1  ;;  %v482_v7 = vrot.slane %v481_v5, 4 }
 0x104   : > { %v467_v8 = vrot.slane %v466_v6, 2  ;;  %v483_v9 = vadd.f32 %v482_v7, %v481_v5 }
 0x106   : > { %v468_v10 = vadd.f32 %v467_v8, %v466_v6  ;;  %v484_v11 = vrot.slane %v483_v9, 2 }
 0x108   : > { %v469_v12 = vrot.slane %v468_v10, 1  ;;  %v485_v13 = vadd.f32 %v484_v11, %v483_v9 }
 0x10a   : > { %v486_v14 = vrot.slane %v485_v13, 1  ;;  %v470_v15 = vadd.f32 %v469_v12, %v468_v10 }
 0x10c   : > { %v487_v16 = vadd.f32 %v486_v14, %v485_v13 }
 0x10e   : > { %v488_v17 = vsel %vm371_vm0, %v470_v15, %v487_v16 }
 0x10f   : > { %490 = vst.msk [vmem:[%s314_s27] sm:$0x3] %vm489_vm4, %v488_v17 }
 0x110 PF: > { %s18_s24 = sadd.s32 1, %s659_s24  }
 0x111   : > { %p15_p5 = scmp.ge.s32.totalorder %s18_s24, 6  }
 0x113   :  { %17 = sbr.rel (!%p15_p5) target bundleno = 1 (0x1), region = 89 }

// kernel: _lambda_.13
= control target key start
LH: loop header
LB: loop body
LE: loop exit
PB: predicated region body
PF: predicated region fallthrough
CT: control target
= control target key end

     0   :  { %s592_s21 = smov 0   ;;  %s629_s0 = inlined_call_operand.vmem [shape: bf16[128,4], index: 0, kind: input, shape index: {}]   ;;  %s630_s1 = inlined_call_operand.vmem [shape: f32[1,4], index: 1, kind: input, shape index: {}]   ;;  %s631_s2 = inlined_call_operand.vmem [shape: f32[1,4], index: 2, kind: input, shape index: {}]   ;;  %s632_s3 = inlined_call_operand.vmem [shape: bf16[4,16], index: 3, kind: input, shape index: {}]   ;;  %s633_s4 = inlined_call_operand.vmem [shape: f32[1,16], index: 4, kind: input, shape index: {}]   ;;  %s634_s5 = inlined_call_operand.vmem [shape: bf16[128,16], index: 5, kind: input, shape index: {}]   ;;  %s635_s6 = inlined_call_operand.vmem [shape: bf16[128,16], index: 6, kind: output, shape index: {}]  }
   0x1 LB: > { %s487_s22 = sadd.s32 4294967295, %s555_s21   ;;  %p491_p0 = scmp.ge.s32.totalorder %s555_s21, 1  ;;  %s555_s21 = sphi %s592_s21, %s16_s21  }
   0x2   : > { %p224_p1 = scmp.lt.s32.totalorder %s555_s21, 5 }
   0x4   : > { %p225_p2 = pnand %p491_p0, %p224_p1 }
   0x5   : > { %v318_v0 = vld [vmem:[%s632_s3] sm:$0x3] (!%p225_p2)  ;;  %vm333_vm0 = vcmask (!%p225_p2), 1041408   ;;  %s492_s25 = sshll.u32 (!%p225_p2), %s487_s22, 2  ;;  %vm326_vm1 = vcmask (!%p225_p2), 31744   ;;  %vm414_vm2 = vcmask (!%p225_p2), 125952  }
   0x6   : > { %228 = sbr.rel (%p225_p2) target bundleno = 252 (0xfc), region = 44  ;;  %540 = vmatprep.subr.msk.bf16.mxu0 (!%p225_p2), %vm333_vm0, %v318_v0  ;;  %v335_v1 = vsel (!%p225_p2), %vm333_vm0, %v318_v0, 0  ;;  %p260_p3 = scmp.lt.s32.totalorder (!%p225_p2), %s492_s25, 15  ;;  %v498_v4 = vld [vmem:[%s630_s1] ss:$0 sm:$0xff] (!%p225_p2) }
   0x7   : > { %535 = vmatpush3.bf16.msra.mxu0 (!%p225_p2), %v335_v1  ;;  %v499_v9 = vld [vmem:[%s631_s2] ss:$0 sm:$0xff] (!%p225_p2) }
   0x8   : > { %v500_v30 = vld [vmem:[%s633_s4] ss:$0 sm:$0xff] (!%p225_p2) }
   0xd   : > { %s637_s25 = smov (!%p260_p3, %s492_s25), 15 }
   0xe   : > { %s603_s26 = sshll.u32 %s637_s25, 2 }
   0xf   : > { %s263_s29 = scalar_lea.vmem %s629_s0, %s603_s26  ;;  %s269_s12 = scalar_lea.vmem %s634_s5, %s603_s26 }
  0x10   : > { %v514_v2 = vld [vmem:[%s263_s29] sm:$0xff]   ;;  %v529_v3 = vld [vmem:[%s263_s29 + $0x8] sm:$0xff]   ;;  %s275_s17 = scalar_lea.vmem %s635_s6, %s603_s26 }
  0x11   : > { %v515_v5 = vunpack.c.l.bf16 %v514_v2  ;;  %v516_v6 = vunpack.c.h.bf16 %v514_v2  ;;  %v519_v7 = vunpack.c.l.bf16 %v529_v3  ;;  %v520_v8 = vunpack.c.h.bf16 %v529_v3  ;;  %v530_v28 = vld [vmem:[%s269_s12 + $0x8] sm:$0xff]   ;;  %v522_v29 = vld [vmem:[%s269_s12] sm:$0xff]  }
  0x12   : > { %v527_v31 = vunpack.c.l.bf16 %v530_v28  ;;  %v523_v33 = vunpack.c.l.bf16 %v522_v29  ;;  %v528_v36 = vunpack.c.h.bf16 %v530_v28  ;;  %v524_v39 = vunpack.c.h.bf16 %v522_v29 }
  0x13   : > { %v293_v10 = vmul.f32 %v515_v5, %v498_v4  ;;  %v294_v11 = vmul.f32 %v516_v6, %v498_v4  ;;  %v295_v12 = vmul.f32 %v519_v7, %v498_v4  ;;  %v296_v13 = vmul.f32 %v520_v8, %v498_v4 }
  0x15   : > { %v304_v14 = vadd.f32 %v499_v9, %v293_v10  ;;  %v305_v15 = vadd.f32 %v499_v9, %v294_v11  ;;  %v306_v16 = vadd.f32 %v499_v9, %v295_v12  ;;  %v307_v17 = vadd.f32 %v499_v9, %v296_v13 }
  0x17   : > { %v308_v18 = vmax.f32 %v304_v14, 0.0  ;;  %v309_v19 = vmax.f32 %v305_v15, 0.0  ;;  %v310_v20 = vmax.f32 %v306_v16, 0.0  ;;  %v311_v21 = vmax.f32 %v307_v17, 0.0 }
  0x19   : > { %v312_v22 = vmin.f32 %v308_v18, 6.0  ;;  %v313_v23 = vmin.f32 %v309_v19, 6.0  ;;  %v314_v24 = vmin.f32 %v310_v20, 6.0  ;;  %v315_v25 = vmin.f32 %v311_v21, 6.0 }
  0x1b   : > { %v316_v26 = vpack.c.bf16 %v313_v23, %v312_v22  ;;  %v317_v27 = vpack.c.bf16 %v315_v25, %v314_v24 }
  0x1d   : > { %536 = vmatprep.mubr.msk.bf16.mxu0 %vm326_vm1, %v316_v26 }
  0x1e   : > { %537 = vmatmul.mubr.msk.bf16.vlgmr.msra.gmra.mrb[0].mxu0 %vm326_vm1, %v317_v27 }
  0xf1   : > { %v538_v32 = vpop.f32.mrb[0].mxu0 }
  0xf2   : > { %v380_v34 = vadd.f32 %v538_v32, %v500_v30  ;;  %v371_v35 = vpop.f32.mrb[1].mxu0 }
  0xf3   : > { %v372_v37 = vadd.f32 %v500_v30, %v371_v35  ;;  %v539_v38 = vpop.f32.mrb[2].mxu0 }
  0xf4   : > { %v396_v40 = vadd.f32 %v527_v31, %v380_v34  ;;  %v383_v41 = vadd.f32 %v539_v38, %v500_v30  ;;  %v374_v42 = vpop.f32.mrb[3].mxu0 }
  0xf5   : > { %v394_v43 = vadd.f32 %v523_v33, %v372_v37  ;;  %v375_v44 = vadd.f32 %v500_v30, %v374_v42 }
  0xf6   : > { %v511_v45 = vpack.c.bf16 %v396_v40, %v396_v40  ;;  %v397_v46 = vadd.f32 %v528_v36, %v383_v41 }
  0xf7   : > { %v509_v47 = vpack.c.bf16 %v394_v43, %v394_v43  ;;  %v395_v48 = vadd.f32 %v524_v39, %v375_v44 }
  0xf8   : > { %417 = vst.msk [vmem:[%s275_s17 + $0x8] sm:$0xf] %vm414_vm2, %v511_v45  ;;  %v512_v49 = vpack.c.bf16 %v397_v46, %v397_v46 }
  0xf9   : > { %415 = vst.msk [vmem:[%s275_s17] sm:$0xf] %vm414_vm2, %v509_v47  ;;  %v510_v50 = vpack.c.bf16 %v395_v48, %v395_v48 }
  0xfa   : > { %418 = vst.msk [vmem:[%s275_s17 + $0xc] sm:$0xf] %vm414_vm2, %v512_v49 }
  0xfb   : > { %416 = vst.msk [vmem:[%s275_s17 + $0x4] sm:$0xf] %vm414_vm2, %v510_v50 }
  0xfc PF: > { %s16_s21 = sadd.s32 1, %s555_s21  }
  0xfd   : > { %p13_p4 = scmp.ge.s32.totalorder %s16_s21, 6  }
  0xff   :  { %15 = sbr.rel (!%p13_p4) target bundleno = 1 (0x1), region = 77 }

// kernel: _lambda_.12
= control target key start
LH: loop header
LB: loop body
LE: loop exit
PB: predicated region body
PF: predicated region fallthrough
CT: control target
= control target key end

     0   :  { %s951_s18 = smov 0   ;;  %s1186_s0 = inlined_call_operand.vmem [shape: bf16[160,12], index: 0, kind: input, shape index: {}]   ;;  %s1187_s1 = inlined_call_operand.vmem [shape: f32[1,12], index: 1, kind: input, shape index: {}]   ;;  %s1188_s2 = inlined_call_operand.vmem [shape: bf16[3,12,4], index: 2, kind: input, shape index: {}]   ;;  %s1189_s3 = inlined_call_operand.vmem [shape: f32[1,4], index: 3, kind: input, shape index: {}]   ;;  %s1190_s4 = inlined_call_operand.vmem [shape: bf16[160,4], index: 4, kind: output, shape index: {0}]   ;;  %s1191_s5 = inlined_call_operand.vmem [shape: f32[4,2,4], index: 5, kind: output, shape index: {1}]  }
   0x1 LB: > { %s957_s19 = sadd.s32 4294967295, %s917_s18   ;;  %p789_p0 = scmp.ge.s32.totalorder %s917_s18, 1  ;;  %s917_s18 = sphi %s951_s18, %s16_s18  }
   0x2   : > { %p191_p1 = scmp.lt.s32.totalorder %s917_s18, 5 }
   0x4   : > { %p192_p2 = pnand %p789_p0, %p191_p1 }
   0x5   : > { %vm295_vm0 = vcmask (!%p192_p2), 1045504   ;;  %v919_v0 = vmov (!%p192_p2), 0.0   ;;  %v908_v1 = vld [vmem:[%s1188_s2 + $0x8] sm:$0x3f] (!%p192_p2)   ;;  %s223_s22 = smul.u32 (!%p192_p2), 5, %s957_s19  ;;  %vm920_vm1 = vmmov (!%p192_p2), 0   ;;  %v360_v34 = vlaneseq (!%p192_p2) }
   0x6   : > { %195 = sbr.rel (%p192_p2) target bundleno = 297 (0x129), region = 36  ;;  %886 = vmatprep.subr.bf16.mxu1 (!%p192_p2), %v919_v0  ;;  %844 = vmatprep.subr.bf16.mxu0 (!%p192_p2), %v919_v0  ;;  %v297_v2 = vsel (!%p192_p2), %vm295_vm0, %v908_v1, 0  ;;  %v793_v3 = vld [vmem:[%s1187_s1] ss:$0 sm:$0xff] (!%p192_p2)  ;;  %v910_v22 = vld [vmem:[%s1188_s2 + $0x10] sm:$0x3f] (!%p192_p2)  }
   0x7   : > { %846 = vmatprep.mubr.msk.bf16.mxu0 (!%p192_p2), %vm920_vm1, %v919_v0  ;;  %850 = vmatprep.mubr.msk.bf16.mxu1 (!%p192_p2), %vm920_vm1, %v919_v0  ;;  %p224_p3 = scmp.lt.s32.totalorder (!%p192_p2), %s223_s22, 19  ;;  %v909_v16 = vld [vmem:[%s1188_s2] sm:$0x3f] (!%p192_p2)   ;;  %vm285_vm2 = vcmask (!%p192_p2), 97280   ;;  %v441_v31 = vsel (!%p192_p2), %vm295_vm0, %v910_v22, 0  ;;  %v1016_v35 = vshrl.u32 (!%p192_p2), %v360_v34, 7 }
   0x8   : > { %887 = vmatpush3.bf16.msra.mxu1 (!%p192_p2), %v297_v2  ;;  %845 = vmatpush3.bf16.msra.mxu0 (!%p192_p2), %v297_v2  ;;  %v374_v30 = vsel (!%p192_p2), %vm295_vm0, %v909_v16, 0  ;;  %p235_p4 = scmp.lt.s32.totalorder (!%p192_p2), %s957_s19, 3 }
   0x9   : > { %858 = vmatprep.subr.bf16.mxu1 (!%p192_p2), %v919_v0  ;;  %872 = vmatprep.subr.bf16.mxu0 (!%p192_p2), %v919_v0  ;;  %v554_v36 = vadd.s32 (!%p192_p2), 8, %v1016_v35  ;;  %v1020_v37 = vmul.u32.u64.low (!%p192_p2), 3435973837, %v1016_v35  ;;  %v1021_v38 = vmul.u32.u64.high 3435973837, %v1016_v35, %v1020_v37  ;;  %v555_v39 = vadd.s32 (!%p192_p2), 16, %v1016_v35 }
   0xa   : > { %v556_v42 = vadd.s32 (!%p192_p2), 24, %v1016_v35  ;;  %v1037_v51 = vadd.s32 (!%p192_p2), 32, %v1016_v35  ;;  %vm362_vm3 = vcmp.lt.s32.totalorder (!%p192_p2), %v1016_v35, 7  ;;  %vm504_vm4 = vcmp.lt.s32.totalorder (!%p192_p2), %v1016_v35, 6 }
   0xb   : > { %v1024_v40 = vmul.u32.u64.low (!%p192_p2), 3435973837, %v554_v36  ;;  %v1025_v41 = vmul.u32.u64.high 3435973837, %v554_v36, %v1024_v40  ;;  %v1028_v43 = vmul.u32.u64.low (!%p192_p2), 3435973837, %v555_v39  ;;  %v1029_v44 = vmul.u32.u64.high 3435973837, %v555_v39, %v1028_v43 }
   0xc   : > { %v564_v45 = vshrl.u32 (!%p192_p2), %v1021_v38, 3  ;;  %v1032_v46 = vmul.u32.u64.low (!%p192_p2), 3435973837, %v556_v42  ;;  %v1033_v47 = vmul.u32.u64.high 3435973837, %v556_v42, %v1032_v46 }
   0xd   : > { %s1205_s22 = smov (!%p224_p3, %s223_s22), 19  ;;  %v575_v50 = vshrl.u32 %v1025_v41, 3  ;;  %v586_v63 = vshrl.u32 %v1029_v44, 3  ;;  %v1042_v1 = vmul.u32.u64.low 3435973837, %v1037_v51  ;;  %v1043_v2 = vmul.u32.u64.high 3435973837, %v1037_v51, %v1042_v1  ;;  %s1207_s19 = smov (!%p235_p4, %s957_s19), 3 }
   0xe   : > { %s790_s23 = sshll.u32 %s1205_s22, 2  ;;  %v565_v57 = vmul.u32 10, %v564_v45  ;;  %s792_s13 = sshll.u32 %s1207_s19, 1 }
   0xf   : > { %s227_s26 = scalar_lea.vmem %s1186_s0, %s790_s23  ;;  %s1120_s12 = scalar_lea.vmem %s1190_s4, %s790_s23 }
  0x10   : > { %v824_v4 = vld [vmem:[%s227_s26] sm:$0xff]   ;;  %v831_v5 = vld [vmem:[%s227_s26 + $0x8] sm:$0xff]   ;;  %v244_v6 = vld [vmem:[%s227_s26 + $0x10] sm:$0xf]  ;;  %s238_s16 = scalar_lea.vmem %s1191_s5, %s792_s13 }
  0x11   : > { %v825_v7 = vunpack.c.l.bf16 %v824_v4  ;;  %v826_v8 = vunpack.c.h.bf16 %v824_v4  ;;  %v829_v9 = vunpack.c.l.bf16 %v831_v5  ;;  %v830_v10 = vunpack.c.h.bf16 %v831_v5 }
  0x12   : > { %v250_v11 = vunpack.c.l.bf16 %v244_v6  ;;  %v566_v6 = vsub.s32 %v1016_v35, %v565_v57 }
  0x13   : > { %v257_v12 = vmul.f32 %v825_v7, %v793_v3  ;;  %v258_v13 = vmul.f32 %v826_v8, %v793_v3  ;;  %v259_v14 = vmul.f32 %v829_v9, %v793_v3  ;;  %v260_v15 = vmul.f32 %v830_v10, %v793_v3 }
  0x14   : > { %v261_v17 = vmul.f32 %v793_v3, %v250_v11  ;;  %v597_v7 = vshrl.u32 %v1033_v47, 3  ;;  %v587_v8 = vmul.u32 10, %v586_v63  ;;  %vm613_vm5 = vcmp.ne.s32.totalorder %v566_v6, 0 }
  0x15   : > { %v262_v18 = vmax.f32 %v257_v12, 0.0  ;;  %v263_v19 = vmax.f32 %v258_v13, 0.0  ;;  %v264_v20 = vmax.f32 %v259_v14, 0.0  ;;  %v265_v21 = vmax.f32 %v260_v15, 0.0 }
  0x16   : > { %v266_v23 = vmax.f32 %v261_v17, 0.0  ;;  %vm618_vm6 = vcmp.lt.s32.totalorder %v566_v6, 0  ;;  %v588_v22 = vsub.s32 %v555_v39, %v587_v8 }
  0x17   : > { %v267_v24 = vmin.f32 %v262_v18, 6.0  ;;  %v268_v25 = vmin.f32 %v263_v19, 6.0  ;;  %v269_v26 = vmin.f32 %v264_v20, 6.0  ;;  %v270_v27 = vmin.f32 %v265_v21, 6.0  ;;  %vm1072_vm9 = vmand %vm618_vm6, %vm613_vm5 }
  0x18   : > { %v271_v32 = vmin.f32 %v266_v23, 6.0  ;;  %v598_v18 = vmul.u32 10, %v597_v7  ;;  %vm615_vm11 = vcmp.ne.s32.totalorder %v588_v22, 0  ;;  %vm620_vm12 = vcmp.lt.s32.totalorder %v588_v22, 0 }
  0x19   : > { %v272_v28 = vpack.c.bf16 %v268_v25, %v267_v24  ;;  %v273_v29 = vpack.c.bf16 %v270_v27, %v269_v26  ;;  %v608_v25 = vshrl.u32 %v1043_v2, 3  ;;  %v628_v27 = vadd.s32 10, %v566_v6  ;;  %vm1092_vm13 = vmand %vm620_vm12, %vm615_vm11 }
  0x1a   : > { %v274_v33 = vpack.c.bf16 %v271_v32, %v271_v32  ;;  %v630_v41 = vadd.s32 10, %v588_v22  ;;  %vm658_vm5 = vcmask 31744   ;;  %vm694_vm11 = vcmask 1040384  }
  0x1b   : > { %847 = vmatmul.mubr.msk.bf16.vlgmr.msra.gmra.mrb[0].mxu0 %vm285_vm2, %v272_v28  ;;  %851 = vmatmul.mubr.msk.bf16.vlgmr.msra.gmra.mrb[0].mxu1 %vm285_vm2, %v273_v29  ;;  %v609_v34 = vmul.u32 10, %v608_v25  ;;  %v633_v37 = vsel %vm1072_vm9, %v628_v27, %v566_v6  ;;  %vm696_vm12 = vcmask 25600  }
  0x1c   : > { %859 = vmatpush3.bf16.msra.mxu1 %v374_v30  ;;  %873 = vmatpush3.bf16.msra.mxu0 %v441_v31  ;;  %v1076_v30 = vsub.s32 %v556_v42, %v598_v18  ;;  %v1087_v42 = vld [vmem:[%s1189_s3] ss:$0 sm:$0xff]  ;;  %vm638_vm0 = vcmp.le.s32.totalorder %v633_v37, 7 }
  0x1d   : > { %854 = vmatprep.mubr.msk.bf16.mxu1 %vm920_vm1, %v919_v0  ;;  %874 = vmatprep.mubr.msk.bf16.mxu0 %vm920_vm1, %v919_v0 }
  0x1e   : > { %vm616_vm14 = vcmp.ne.s32.totalorder %v1076_v30, 0  ;;  %vm621_vm15 = vcmp.lt.s32.totalorder %v1076_v30, 0 }
  0x23   : > { %855 = vmatmul.mubr.msk.bf16.gmra.mrb[4].mxu1 %vm285_vm2, %v274_v33  ;;  %875 = vmatmul.mubr.msk.bf16.vlgmr.msra.gmra.mrb[4].mxu0 %vm285_vm2, %v272_v28 }
  0x24   : > { %860 = vmatprep.mubr.msk.bf16.mxu1 %vm920_vm1, %v919_v0  ;;  %878 = vmatprep.mubr.msk.bf16.mxu0 %vm920_vm1, %v919_v0 }
  0x2b   : > { %861 = vmatmul.mubr.msk.bf16.vlgmr.msra.gmra.mrb[8].mxu1 %vm285_vm2, %v272_v28  ;;  %879 = vmatmul.mubr.msk.bf16.gmra.mrb[8].mxu0 %vm285_vm2, %v273_v29 }
  0x2c   : > { %864 = vmatprep.mubr.msk.bf16.mxu1 %vm920_vm1, %v919_v0  ;;  %882 = vmatprep.mubr.msk.bf16.mxu0 %vm920_vm1, %v919_v0 }
  0x33   : > { %865 = vmatmul.mubr.msk.bf16.gmra.mrb[12].mxu1 %vm285_vm2, %v273_v29  ;;  %883 = vmatmul.mubr.msk.bf16.gmra.mrb[12].mxu0 %vm285_vm2, %v274_v33 }
  0x34   : > { %868 = vmatprep.mubr.msk.bf16.mxu1 %vm920_vm1, %v919_v0  ;;  %v576_v0 = vmul.u32 10, %v575_v50  ;;  %vm1111_vm1 = vmand %vm621_vm15, %vm616_vm14 }
  0x36   : > { %v577_v11 = vsub.s32 %v554_v36, %v576_v0 }
  0x38   : > { %vm614_vm7 = vcmp.ne.s32.totalorder %v577_v11, 0  ;;  %vm619_vm8 = vcmp.lt.s32.totalorder %v577_v11, 0  ;;  %v629_v29 = vadd.s32 10, %v577_v11 }
  0x39   : > { %vm1078_vm10 = vmand %vm619_vm8, %vm614_vm7 }
  0x3a   : > { %v634_v44 = vsel %vm1078_vm10, %v629_v29, %v577_v11 }
  0x3b   : > { %869 = vmatmul.mubr.msk.bf16.gmra.mrb[16].mxu1 %vm285_vm2, %v274_v33  ;;  %vm548_vm2 = vcmask 27648  }
  0xee   : > { %v333_v48 = vpop.f32.mrb[0].mxu0  ;;  %v341_v49 = vpop.f32.mrb[0].mxu1 }
  0xef   : > { %v355_v52 = vrot.slane %v333_v48, 1  ;;  %v848_v53 = vpop.f32.mrb[1].mxu0  ;;  %v852_v54 = vpop.f32.mrb[1].mxu1  ;;  %v357_v58 = vrot.slane %v341_v49, 1 }
  0xf0   : > { %v336_v55 = vpop.f32.mrb[2].mxu0  ;;  %v344_v56 = vpop.f32.mrb[2].mxu1  ;;  %v631_v54 = vadd.s32 10, %v1076_v30 }
  0xf1   : > { %v356_v59 = vrot.slane %v336_v55, 1  ;;  %v358_v60 = vrot.slane %v344_v56, 1  ;;  %v853_v61 = vpop.f32.mrb[3].mxu1  ;;  %v849_v62 = vpop.f32.mrb[3].mxu0  ;;  %v1102_v55 = vsub.s32 %v1037_v51, %v609_v34 }
  0xf3   : > { %v366_v3 = vsel %vm362_vm3, %v355_v52, %v356_v59  ;;  %v365_v4 = vsel %vm362_vm3, %v356_v59, %v357_v58  ;;  %v1051_v5 = vsel %vm362_vm3, %v357_v58, %v358_v60  ;;  %v635_v59 = vsel %vm1092_vm13, %v630_v41, %v588_v22 }
  0xf4   : > { %vm1123_vm6 = vcmp.le.s32.totalorder %v635_v59, 7  ;;  %vm617_vm7 = vcmp.ne.s32.totalorder %v1102_v55, 0  ;;  %vm622_vm8 = vcmp.lt.s32.totalorder %v1102_v55, 0  ;;  %v632_v28 = vadd.s32 10, %v1102_v55 }
  0xf5   : > { %vm1154_vm9 = vmand %vm622_vm8, %vm617_vm7 }
  0xf6   : > { %v349_v9 = vpop.f32.mrb[4].mxu1  ;;  %v1055_v10 = vpop.f32.mrb[4].mxu0 }
  0xf7   : > { %v359_v12 = vrot.slane %v349_v9, 1  ;;  %v856_v13 = vpop.f32.mrb[5].mxu1  ;;  %v499_v14 = vrot.slane %v1055_v10, 2  ;;  %v876_v15 = vpop.f32.mrb[5].mxu0 }
  0xf8   : > { %v352_v16 = vpop.f32.mrb[6].mxu1  ;;  %v480_v17 = vpop.f32.mrb[6].mxu0 }
  0xf9   : > { %v857_v19 = vpop.f32.mrb[7].mxu1  ;;  %v500_v20 = vrot.slane %v480_v17, 2  ;;  %v877_v21 = vpop.f32.mrb[7].mxu0  ;;  %v1061_v23 = vsel %vm362_vm3, %v358_v60, %v359_v12  ;;  %v1065_v24 = vsel %vm362_vm3, %v359_v12, %v355_v52  ;;  %vm639_vm3 = vcmp.le.s32.totalorder %v634_v44, 7 }
  0xfb   : > { %v508_v26 = vsel %vm504_vm4, %v499_v14, %v500_v20 }
  0xfe   : > { %v410_v32 = vpop.f32.mrb[8].mxu1  ;;  %v485_v33 = vpop.f32.mrb[8].mxu0 }
  0xff   : > { %v411_v36 = vadd.f32 %v410_v32, %v366_v3  ;;  %v501_v38 = vrot.slane %v485_v33, 2  ;;  %v862_v39 = vpop.f32.mrb[9].mxu1  ;;  %v880_v40 = vpop.f32.mrb[9].mxu0  ;;  %v636_v3 = vsel %vm1111_vm1, %v631_v54, %v1076_v30 }
 0x100   : > { %v413_v43 = vpop.f32.mrb[10].mxu1  ;;  %v488_v45 = vpop.f32.mrb[10].mxu0  ;;  %vm641_vm10 = vcmp.le.s32.totalorder %v636_v3, 7 }
 0x101   : > { %v510_v47 = vadd.f32 %v508_v26, %v411_v36  ;;  %v414_v48 = vadd.f32 %v413_v43, %v365_v4  ;;  %v507_v49 = vsel %vm504_vm4, %v500_v20, %v501_v38  ;;  %v863_v50 = vpop.f32.mrb[11].mxu1  ;;  %v502_v52 = vrot.slane %v488_v45, 2  ;;  %v881_v53 = vpop.f32.mrb[11].mxu0 }
 0x102   : > { %v637_v36 = vsel %vm1154_vm9, %v632_v28, %v1102_v55 }
 0x103   : > { %v522_v56 = vadd.f32 %v1087_v42, %v510_v47  ;;  %v511_v57 = vadd.f32 %v507_v49, %v414_v48  ;;  %v506_v58 = vsel %vm504_vm4, %v501_v38, %v502_v52 }
 0x105   : > { %v818_v51 = vpack.c.bf16 %v522_v56, %v522_v56  ;;  %v653_v61 = vsel %vm638_vm0, %v522_v56, 0.0  ;;  %v523_v62 = vadd.f32 %v1087_v42, %v511_v57 }
 0x106   : > { %v674_v63 = vmul.f32 %v653_v61, %v653_v61  ;;  %v418_v0 = vpop.f32.mrb[12].mxu1  ;;  %v493_v2 = vpop.f32.mrb[12].mxu0  ;;  %v659_v12 = vsel %vm658_vm5, %v653_v61, 0.0 }
 0x107   : > { %549 = vst.msk [vmem:[%s1120_s12] sm:$0xf] %vm548_vm2, %v818_v51  ;;  %v819_v4 = vpack.c.bf16 %v523_v62, %v523_v62  ;;  %v654_v6 = vsel %vm639_vm3, %v523_v62, 0.0  ;;  %v419_v7 = vadd.f32 %v418_v0, %v1051_v5  ;;  %v503_v8 = vrot.slane %v493_v2, 2  ;;  %v866_v9 = vpop.f32.mrb[13].mxu1  ;;  %v884_v11 = vpop.f32.mrb[13].mxu0 }
 0x108   : > { %v660_v13 = vsel %vm658_vm5, %v654_v6, 0.0  ;;  %v675_v15 = vmul.f32 %v654_v6, %v654_v6  ;;  %v421_v16 = vpop.f32.mrb[14].mxu1  ;;  %v496_v17 = vpop.f32.mrb[14].mxu0  ;;  %v679_v25 = vsel %vm658_vm5, %v674_v63, 0.0 }
 0x109   : > { %550 = vst.msk [vmem:[%s1120_s12 + $0x4] sm:$0xf] %vm548_vm2, %v819_v4  ;;  %v661_v18 = vadd.f32 %v660_v13, %v659_v12  ;;  %v512_v19 = vadd.f32 %v506_v58, %v419_v7  ;;  %v422_v20 = vadd.f32 %v421_v16, %v1061_v23  ;;  %v505_v5 = vsel %vm504_vm4, %v502_v52, %v503_v8  ;;  %v867_v21 = vpop.f32.mrb[15].mxu1  ;;  %v885_v22 = vpop.f32.mrb[15].mxu0 }
 0x10a   : > { %v680_v26 = vsel %vm658_vm5, %v675_v15, 0.0  ;;  %v509_v27 = vsel %vm504_vm4, %v503_v8, %v499_v14  ;;  %vm642_vm4 = vcmp.le.s32.totalorder %v637_v36, 7 }
 0x10b   : > { %v681_v29 = vadd.f32 %v680_v26, %v679_v25  ;;  %v524_v23 = vadd.f32 %v1087_v42, %v512_v19  ;;  %v513_v30 = vadd.f32 %v505_v5, %v422_v20 }
 0x10d   : > { %v820_v32 = vpack.c.bf16 %v524_v23, %v524_v23  ;;  %v655_v35 = vsel %vm1123_vm6, %v524_v23, 0.0  ;;  %v525_v10 = vadd.f32 %v1087_v42, %v513_v30 }
 0x10e   : > { %v662_v14 = vsel %vm658_vm5, %v655_v35, 0.0  ;;  %v676_v33 = vmul.f32 %v655_v35, %v655_v35  ;;  %v426_v34 = vpop.f32.mrb[16].mxu1 }
 0x10f   : > { %551 = vst.msk [vmem:[%s1120_s12 + $0x8] sm:$0xf] %vm548_vm2, %v820_v32  ;;  %v663_v37 = vadd.f32 %v662_v14, %v661_v18  ;;  %v821_v38 = vpack.c.bf16 %v525_v10, %v525_v10  ;;  %v656_v39 = vsel %vm641_vm10, %v525_v10, 0.0  ;;  %v427_v40 = vadd.f32 %v426_v34, %v1065_v24  ;;  %v870_v41 = vpop.f32.mrb[17].mxu1 }
 0x110   : > { %v682_v43 = vsel %vm658_vm5, %v676_v33, 0.0  ;;  %v664_v44 = vsel %vm658_vm5, %v656_v39, 0.0  ;;  %v677_v45 = vmul.f32 %v656_v39, %v656_v39  ;;  %v429_v46 = vpop.f32.mrb[18].mxu1 }
 0x111   : > { %v683_v47 = vadd.f32 %v682_v43, %v681_v29  ;;  %552 = vst.msk [vmem:[%s1120_s12 + $0xc] sm:$0xf] %vm548_vm2, %v821_v38  ;;  %v665_v48 = vadd.f32 %v664_v44, %v663_v37  ;;  %v514_v49 = vadd.f32 %v509_v27, %v427_v40  ;;  %v871_v50 = vpop.f32.mrb[19].mxu1 }
 0x112   : > { %v684_v52 = vsel %vm658_vm5, %v677_v45, 0.0 }
 0x113   : > { %v685_v53 = vadd.f32 %v684_v52, %v683_v47  ;;  %v526_v24 = vadd.f32 %v1087_v42, %v514_v49 }
 0x115   : > { %v822_v54 = vpack.c.bf16 %v526_v24, %v526_v24  ;;  %v657_v55 = vsel %vm642_vm4, %v526_v24, 0.0 }
 0x116   : > { %v666_v56 = vsel %vm658_vm5, %v657_v55, 0.0  ;;  %v678_v57 = vmul.f32 %v657_v55, %v657_v55 }
 0x117   : > { %553 = vst.msk [vmem:[%s1120_s12 + $0x10] sm:$0xf] %vm548_vm2, %v822_v54  ;;  %v667_v58 = vadd.f32 %v666_v56, %v665_v48 }
 0x118   : > { %v686_v59 = vsel %vm658_vm5, %v678_v57, 0.0 }
 0x119   : > { %v668_v60 = vrot.slane %v667_v58, 4  ;;  %v687_v51 = vadd.f32 %v686_v59, %v685_v53 }
 0x11b   : > { %v669_v61 = vadd.f32 %v668_v60, %v667_v58  ;;  %v688_v62 = vrot.slane %v687_v51, 4 }
 0x11d   : > { %v670_v63 = vrot.slane %v669_v61, 2  ;;  %v689_v0 = vadd.f32 %v688_v62, %v687_v51 }
 0x11f   : > { %v671_v1 = vadd.f32 %v670_v63, %v669_v61  ;;  %v690_v42 = vrot.slane %v689_v0, 2 }
 0x121   : > { %v672_v2 = vrot.slane %v671_v1, 1  ;;  %v691_v3 = vadd.f32 %v690_v42, %v689_v0 }
 0x123   : > { %v692_v4 = vrot.slane %v691_v3, 1  ;;  %v673_v6 = vadd.f32 %v672_v2, %v671_v1 }
 0x125   : > { %v693_v7 = vadd.f32 %v692_v4, %v691_v3 }
 0x127   : > { %v695_v8 = vsel %vm694_vm11, %v673_v6, %v693_v7 }
 0x128   : > { %697 = vst.msk [vmem:[%s238_s16] sm:$0x3] %vm696_vm12, %v695_v8 }
 0x129 PF: > { %s16_s18 = sadd.s32 1, %s917_s18  }
 0x12a   : > { %p13_p5 = scmp.ge.s32.totalorder %s16_s18, 6  }
 0x12c   :  { %15 = sbr.rel (!%p13_p5) target bundleno = 1 (0x1), region = 80 }

</bundles_post_ra>
